<compile_context>
chip_gen: v7x
topology: tpu7x:2x2x1
jax: 0.10.0
libtpu: 0.0.40
codegen_flags: <defaults>
</compile_context>

<pallas_src>
import jax
import jax.numpy as jnp
from jax import lax
from jax.experimental import pallas as pl
from jax.experimental.pallas import tpu as pltpu

BN_EPS = 1e-5
LEAKY_SLOPE = 0.2


def _leaky_relu(x):
    return jnp.where(x > 0, x, LEAKY_SLOPE * x)


def _batch_norm(x, gamma, beta):
    # Training-mode BatchNorm1d (biased variance over the batch), folded into a
    # single FMA: scale = gamma * rsqrt(var + eps), shift = beta - mean * scale.
    mean = jnp.mean(x, axis=0, keepdims=True)
    mean_sq = jnp.mean(x * x, axis=0, keepdims=True)
    var = mean_sq - mean * mean
    scale = gamma * lax.rsqrt(var + BN_EPS)
    shift = beta - mean * scale
    return x * scale + shift


def _dot_bf16(x_f32, w_bf16_ref, b_f32_ref):
    # bf16 inputs on the MXU, f32 accumulate, f32 bias add.
    return (
        jnp.dot(
            x_f32.astype(jnp.bfloat16),
            w_bf16_ref[...],
            preferred_element_type=jnp.float32,
        )
        + b_f32_ref[...]
    )


def generator_kernel(
    z_ref,
    w1_ref, b1_ref,
    w2_ref, b2_ref, g2_ref, be2_ref,
    w3_ref, b3_ref, g3_ref, be3_ref,
    w4_ref, b4_ref, g4_ref, be4_ref,
    w5_ref, b5_ref,
    o_ref,
):
    z = z_ref[...]

    # Layer 1: Linear + LeakyReLU
    h = _leaky_relu(_dot_bf16(z, w1_ref, b1_ref))

    # Layer 2: Linear + BatchNorm + LeakyReLU
    h = _dot_bf16(h, w2_ref, b2_ref)
    h = _leaky_relu(_batch_norm(h, g2_ref[...], be2_ref[...]))

    # Layer 3: Linear + BatchNorm + LeakyReLU
    h = _dot_bf16(h, w3_ref, b3_ref)
    h = _leaky_relu(_batch_norm(h, g3_ref[...], be3_ref[...]))

    # Layer 4: Linear + BatchNorm + LeakyReLU
    h = _dot_bf16(h, w4_ref, b4_ref)
    h = _leaky_relu(_batch_norm(h, g4_ref[...], be4_ref[...]))

    # Layer 5: Linear + Tanh
    h = _dot_bf16(h, w5_ref, b5_ref)
    o_ref[...] = jnp.tanh(h)


def _full_vmem_spec(shape):
    # Whole array as a single VMEM block (no grid).
    return pl.BlockSpec(shape, lambda: (0,) * len(shape))


def generator_forward(z, params):
    """z: (B, latent_dim) float32 -> (B, input_dim) float32."""
    B = z.shape[0]
    input_dim = params["w5"].shape[1]

    args = (
        z,
        params["w1"], params["b1"],
        params["w2"], params["b2"], params["g2"], params["be2"],
        params["w3"], params["b3"], params["g3"], params["be3"],
        params["w4"], params["b4"], params["g4"], params["be4"],
        params["w5"], params["b5"],
    )

    return pl.pallas_call(
        generator_kernel,
        out_shape=jax.ShapeDtypeStruct((B, input_dim), jnp.float32),
        in_specs=[_full_vmem_spec(a.shape) for a in args],
        out_specs=_full_vmem_spec((B, input_dim)),
    )(*args)


def init_params(key, latent_dim, input_dim):
    """Deterministic init mimicking torch Linear init (uniform +-1/sqrt(fan_in)).

    Weights are stored in bf16 (bandwidth-bound kernel); biases / BN affine
    params stay in f32.
    """
    dims = [latent_dim, 128, 256, 512, 1024, input_dim]
    params = {}
    keys = jax.random.split(key, 2 * (len(dims) - 1))
    for i in range(len(dims) - 1):
        fan_in, fan_out = dims[i], dims[i + 1]
        bound = 1.0 / (fan_in ** 0.5)
        w = jax.random.uniform(
            keys[2 * i], (fan_in, fan_out), jnp.float32, -bound, bound)
        params[f"w{i+1}"] = w.astype(jnp.bfloat16)
        params[f"b{i+1}"] = jax.random.uniform(
            keys[2 * i + 1], (1, fan_out), jnp.float32, -bound, bound)
    # BatchNorm affine params (torch default: gamma=1, beta=0) for layers 2,3,4.
    for i, n in zip((2, 3, 4), (256, 512, 1024)):
        params[f"g{i}"] = jnp.ones((1, n), jnp.float32)
        params[f"be{i}"] = jnp.zeros((1, n), jnp.float32)
    return params


def generator_reference(z, params):
    """Pure-JAX reference mirroring the kernel's precision (bf16 dot inputs,
    f32 accumulate) for a tight correctness check."""

    def leaky(x):
        return jnp.where(x > 0, x, LEAKY_SLOPE * x)

    def bn(x, g, b):
        m = jnp.mean(x, axis=0, keepdims=True)
        ms = jnp.mean(x * x, axis=0, keepdims=True)
        v = ms - m * m
        scale = g * lax.rsqrt(v + BN_EPS)
        return x * scale + (b - m * scale)

    def dot(x, w, b):
        return jnp.dot(x.astype(jnp.bfloat16), w,
                       preferred_element_type=jnp.float32) + b

    h = leaky(dot(z, params["w1"], params["b1"]))
    h = leaky(bn(dot(h, params["w2"], params["b2"]), params["g2"], params["be2"]))
    h = leaky(bn(dot(h, params["w3"], params["b3"]), params["g3"], params["be3"]))
    h = leaky(bn(dot(h, params["w4"], params["b4"]), params["g4"], params["be4"]))
    return jnp.tanh(dot(h, params["w5"], params["b5"]))


if __name__ == "__main__":
    # Small shapes consistent with the module's forward: z is (batch, latent_dim).
    B, LATENT_DIM, INPUT_DIM = 8, 64, 256

    key = jax.random.PRNGKey(0)
    k_param, k_z = jax.random.split(key)
    params = init_params(k_param, LATENT_DIM, INPUT_DIM)
    z = jax.random.normal(k_z, (B, LATENT_DIM), jnp.float32)

    out = generator_forward(z, params)
    out = jax.block_until_ready(out)

    ref = generator_reference(z, params)
    assert out.shape == (B, INPUT_DIM)
    assert out.dtype == jnp.float32
    assert jnp.allclose(out, ref, atol=2e-3, rtol=2e-3), "mismatch vs reference"

    print("KERNEL_OK")
</pallas_src>

<mosaic_0001>
module attributes {stable_mosaic.version = 11 : i64} {
  func.func @generator_kernel(%arg0: memref<8x64xf32, #tpu.memory_space<vmem>>, %arg1: memref<64x128xbf16, #tpu.memory_space<vmem>>, %arg2: memref<1x128xf32, #tpu.memory_space<vmem>>, %arg3: memref<128x256xbf16, #tpu.memory_space<vmem>>, %arg4: memref<1x256xf32, #tpu.memory_space<vmem>>, %arg5: memref<1x256xf32, #tpu.memory_space<vmem>>, %arg6: memref<1x256xf32, #tpu.memory_space<vmem>>, %arg7: memref<256x512xbf16, #tpu.memory_space<vmem>>, %arg8: memref<1x512xf32, #tpu.memory_space<vmem>>, %arg9: memref<1x512xf32, #tpu.memory_space<vmem>>, %arg10: memref<1x512xf32, #tpu.memory_space<vmem>>, %arg11: memref<512x1024xbf16, #tpu.memory_space<vmem>>, %arg12: memref<1x1024xf32, #tpu.memory_space<vmem>>, %arg13: memref<1x1024xf32, #tpu.memory_space<vmem>>, %arg14: memref<1x1024xf32, #tpu.memory_space<vmem>>, %arg15: memref<1024x256xbf16, #tpu.memory_space<vmem>>, %arg16: memref<1x256xf32, #tpu.memory_space<vmem>>, %arg17: memref<8x256xf32, #tpu.memory_space<vmem>>) attributes {dimension_semantics = [], scalar_prefetch = 0 : i64, scratch_operands = 0 : i64, tpu.core_type = #tpu.core_type<tc>} {
    %c0 = arith.constant 0 : index
    %c0_0 = arith.constant 0 : index
    %0 = vector.load %arg0[%c0, %c0_0] : memref<8x64xf32, #tpu.memory_space<vmem>>, vector<8x64xf32>
    %1 = arith.truncf %0 : vector<8x64xf32> to vector<8x64xbf16>
    %c0_1 = arith.constant 0 : index
    %c0_2 = arith.constant 0 : index
    %2 = vector.load %arg1[%c0_1, %c0_2] : memref<64x128xbf16, #tpu.memory_space<vmem>>, vector<64x128xbf16>
    %cst = arith.constant dense<0.000000e+00> : vector<8x128xf32>
    %3 = tpu.matmul %1, %2, %cst {dimension_numbers = #tpu.dot_dimension_numbers<[1], [0], [0], [1], [0, 0, 1, 1], [], []>} : vector<8x64xbf16>, vector<64x128xbf16>, vector<8x128xf32> -> vector<8x128xf32>
    %c0_3 = arith.constant 0 : index
    %c0_4 = arith.constant 0 : index
    %4 = vector.load %arg2[%c0_3, %c0_4] : memref<1x128xf32, #tpu.memory_space<vmem>>, vector<1x128xf32>
    %5 = vector.broadcast %4 : vector<1x128xf32> to vector<8x128xf32>
    %6 = arith.addf %3, %5 : vector<8x128xf32>
    %cst_5 = arith.constant 0.000000e+00 : f32
    %7 = vector.broadcast %cst_5 : f32 to vector<8x128xf32>
    %8 = arith.cmpf ogt, %6, %7 : vector<8x128xf32>
    %cst_6 = arith.constant 2.000000e-01 : f32
    %9 = vector.broadcast %cst_6 : f32 to vector<8x128xf32>
    %10 = arith.mulf %9, %6 : vector<8x128xf32>
    %11 = arith.select %8, %6, %10 : vector<8x128xi1>, vector<8x128xf32>
    %12 = arith.truncf %11 : vector<8x128xf32> to vector<8x128xbf16>
    %c0_7 = arith.constant 0 : index
    %c0_8 = arith.constant 0 : index
    %13 = vector.load %arg3[%c0_7, %c0_8] : memref<128x256xbf16, #tpu.memory_space<vmem>>, vector<128x256xbf16>
    %cst_9 = arith.constant dense<0.000000e+00> : vector<8x256xf32>
    %14 = tpu.matmul %12, %13, %cst_9 {dimension_numbers = #tpu.dot_dimension_numbers<[1], [0], [0], [1], [0, 0, 1, 1], [], []>} : vector<8x128xbf16>, vector<128x256xbf16>, vector<8x256xf32> -> vector<8x256xf32>
    %c0_10 = arith.constant 0 : index
    %c0_11 = arith.constant 0 : index
    %15 = vector.load %arg4[%c0_10, %c0_11] : memref<1x256xf32, #tpu.memory_space<vmem>>, vector<1x256xf32>
    %16 = vector.broadcast %15 : vector<1x256xf32> to vector<8x256xf32>
    %17 = arith.addf %14, %16 : vector<8x256xf32>
    %c0_12 = arith.constant 0 : index
    %c0_13 = arith.constant 0 : index
    %18 = vector.load %arg5[%c0_12, %c0_13] : memref<1x256xf32, #tpu.memory_space<vmem>>, vector<1x256xf32>
    %c0_14 = arith.constant 0 : index
    %c0_15 = arith.constant 0 : index
    %19 = vector.load %arg6[%c0_14, %c0_15] : memref<1x256xf32, #tpu.memory_space<vmem>>, vector<1x256xf32>
    %cst_16 = arith.constant dense<0.000000e+00> : vector<256xf32>
    %20 = vector.multi_reduction <add>, %17, %cst_16 [0] : vector<8x256xf32> to vector<256xf32>
    %21 = vector.shape_cast %20 : vector<256xf32> to vector<1x256xf32>
    %cst_17 = arith.constant 8.000000e+00 : f32
    %22 = vector.broadcast %cst_17 : f32 to vector<1x256xf32>
    %23 = arith.divf %21, %22 : vector<1x256xf32>
    %24 = arith.mulf %17, %17 : vector<8x256xf32>
    %cst_18 = arith.constant dense<0.000000e+00> : vector<256xf32>
    %25 = vector.multi_reduction <add>, %24, %cst_18 [0] : vector<8x256xf32> to vector<256xf32>
    %26 = vector.shape_cast %25 : vector<256xf32> to vector<1x256xf32>
    %cst_19 = arith.constant 8.000000e+00 : f32
    %27 = vector.broadcast %cst_19 : f32 to vector<1x256xf32>
    %28 = arith.divf %26, %27 : vector<1x256xf32>
    %29 = arith.mulf %23, %23 : vector<1x256xf32>
    %30 = arith.subf %28, %29 : vector<1x256xf32>
    %cst_20 = arith.constant 9.99999974E-6 : f32
    %31 = vector.broadcast %cst_20 : f32 to vector<1x256xf32>
    %32 = arith.addf %30, %31 : vector<1x256xf32>
    %33 = math.rsqrt %32 : vector<1x256xf32>
    %34 = arith.mulf %18, %33 : vector<1x256xf32>
    %35 = arith.mulf %23, %34 : vector<1x256xf32>
    %36 = arith.subf %19, %35 : vector<1x256xf32>
    %37 = vector.broadcast %34 : vector<1x256xf32> to vector<8x256xf32>
    %38 = arith.mulf %17, %37 : vector<8x256xf32>
    %39 = vector.broadcast %36 : vector<1x256xf32> to vector<8x256xf32>
    %40 = arith.addf %38, %39 : vector<8x256xf32>
    %cst_21 = arith.constant 0.000000e+00 : f32
    %41 = vector.broadcast %cst_21 : f32 to vector<8x256xf32>
    %42 = arith.cmpf ogt, %40, %41 : vector<8x256xf32>
    %cst_22 = arith.constant 2.000000e-01 : f32
    %43 = vector.broadcast %cst_22 : f32 to vector<8x256xf32>
    %44 = arith.mulf %43, %40 : vector<8x256xf32>
    %45 = arith.select %42, %40, %44 : vector<8x256xi1>, vector<8x256xf32>
    %46 = arith.truncf %45 : vector<8x256xf32> to vector<8x256xbf16>
    %c0_23 = arith.constant 0 : index
    %c0_24 = arith.constant 0 : index
    %47 = vector.load %arg7[%c0_23, %c0_24] : memref<256x512xbf16, #tpu.memory_space<vmem>>, vector<256x512xbf16>
    %cst_25 = arith.constant dense<0.000000e+00> : vector<8x512xf32>
    %48 = tpu.matmul %46, %47, %cst_25 {dimension_numbers = #tpu.dot_dimension_numbers<[1], [0], [0], [1], [0, 0, 1, 1], [], []>} : vector<8x256xbf16>, vector<256x512xbf16>, vector<8x512xf32> -> vector<8x512xf32>
    %c0_26 = arith.constant 0 : index
    %c0_27 = arith.constant 0 : index
    %49 = vector.load %arg8[%c0_26, %c0_27] : memref<1x512xf32, #tpu.memory_space<vmem>>, vector<1x512xf32>
    %50 = vector.broadcast %49 : vector<1x512xf32> to vector<8x512xf32>
    %51 = arith.addf %48, %50 : vector<8x512xf32>
    %c0_28 = arith.constant 0 : index
    %c0_29 = arith.constant 0 : index
    %52 = vector.load %arg9[%c0_28, %c0_29] : memref<1x512xf32, #tpu.memory_space<vmem>>, vector<1x512xf32>
    %c0_30 = arith.constant 0 : index
    %c0_31 = arith.constant 0 : index
    %53 = vector.load %arg10[%c0_30, %c0_31] : memref<1x512xf32, #tpu.memory_space<vmem>>, vector<1x512xf32>
    %cst_32 = arith.constant dense<0.000000e+00> : vector<512xf32>
    %54 = vector.multi_reduction <add>, %51, %cst_32 [0] : vector<8x512xf32> to vector<512xf32>
    %55 = vector.shape_cast %54 : vector<512xf32> to vector<1x512xf32>
    %cst_33 = arith.constant 8.000000e+00 : f32
    %56 = vector.broadcast %cst_33 : f32 to vector<1x512xf32>
    %57 = arith.divf %55, %56 : vector<1x512xf32>
    %58 = arith.mulf %51, %51 : vector<8x512xf32>
    %cst_34 = arith.constant dense<0.000000e+00> : vector<512xf32>
    %59 = vector.multi_reduction <add>, %58, %cst_34 [0] : vector<8x512xf32> to vector<512xf32>
    %60 = vector.shape_cast %59 : vector<512xf32> to vector<1x512xf32>
    %cst_35 = arith.constant 8.000000e+00 : f32
    %61 = vector.broadcast %cst_35 : f32 to vector<1x512xf32>
    %62 = arith.divf %60, %61 : vector<1x512xf32>
    %63 = arith.mulf %57, %57 : vector<1x512xf32>
    %64 = arith.subf %62, %63 : vector<1x512xf32>
    %cst_36 = arith.constant 9.99999974E-6 : f32
    %65 = vector.broadcast %cst_36 : f32 to vector<1x512xf32>
    %66 = arith.addf %64, %65 : vector<1x512xf32>
    %67 = math.rsqrt %66 : vector<1x512xf32>
    %68 = arith.mulf %52, %67 : vector<1x512xf32>
    %69 = arith.mulf %57, %68 : vector<1x512xf32>
    %70 = arith.subf %53, %69 : vector<1x512xf32>
    %71 = vector.broadcast %68 : vector<1x512xf32> to vector<8x512xf32>
    %72 = arith.mulf %51, %71 : vector<8x512xf32>
    %73 = vector.broadcast %70 : vector<1x512xf32> to vector<8x512xf32>
    %74 = arith.addf %72, %73 : vector<8x512xf32>
    %cst_37 = arith.constant 0.000000e+00 : f32
    %75 = vector.broadcast %cst_37 : f32 to vector<8x512xf32>
    %76 = arith.cmpf ogt, %74, %75 : vector<8x512xf32>
    %cst_38 = arith.constant 2.000000e-01 : f32
    %77 = vector.broadcast %cst_38 : f32 to vector<8x512xf32>
    %78 = arith.mulf %77, %74 : vector<8x512xf32>
    %79 = arith.select %76, %74, %78 : vector<8x512xi1>, vector<8x512xf32>
    %80 = arith.truncf %79 : vector<8x512xf32> to vector<8x512xbf16>
    %c0_39 = arith.constant 0 : index
    %c0_40 = arith.constant 0 : index
    %81 = vector.load %arg11[%c0_39, %c0_40] : memref<512x1024xbf16, #tpu.memory_space<vmem>>, vector<512x1024xbf16>
    %cst_41 = arith.constant dense<0.000000e+00> : vector<8x1024xf32>
    %82 = tpu.matmul %80, %81, %cst_41 {dimension_numbers = #tpu.dot_dimension_numbers<[1], [0], [0], [1], [0, 0, 1, 1], [], []>} : vector<8x512xbf16>, vector<512x1024xbf16>, vector<8x1024xf32> -> vector<8x1024xf32>
    %c0_42 = arith.constant 0 : index
    %c0_43 = arith.constant 0 : index
    %83 = vector.load %arg12[%c0_42, %c0_43] : memref<1x1024xf32, #tpu.memory_space<vmem>>, vector<1x1024xf32>
    %84 = vector.broadcast %83 : vector<1x1024xf32> to vector<8x1024xf32>
    %85 = arith.addf %82, %84 : vector<8x1024xf32>
    %c0_44 = arith.constant 0 : index
    %c0_45 = arith.constant 0 : index
    %86 = vector.load %arg13[%c0_44, %c0_45] : memref<1x1024xf32, #tpu.memory_space<vmem>>, vector<1x1024xf32>
    %c0_46 = arith.constant 0 : index
    %c0_47 = arith.constant 0 : index
    %87 = vector.load %arg14[%c0_46, %c0_47] : memref<1x1024xf32, #tpu.memory_space<vmem>>, vector<1x1024xf32>
    %cst_48 = arith.constant dense<0.000000e+00> : vector<1024xf32>
    %88 = vector.multi_reduction <add>, %85, %cst_48 [0] : vector<8x1024xf32> to vector<1024xf32>
    %89 = vector.shape_cast %88 : vector<1024xf32> to vector<1x1024xf32>
    %cst_49 = arith.constant 8.000000e+00 : f32
    %90 = vector.broadcast %cst_49 : f32 to vector<1x1024xf32>
    %91 = arith.divf %89, %90 : vector<1x1024xf32>
    %92 = arith.mulf %85, %85 : vector<8x1024xf32>
    %cst_50 = arith.constant dense<0.000000e+00> : vector<1024xf32>
    %93 = vector.multi_reduction <add>, %92, %cst_50 [0] : vector<8x1024xf32> to vector<1024xf32>
    %94 = vector.shape_cast %93 : vector<1024xf32> to vector<1x1024xf32>
    %cst_51 = arith.constant 8.000000e+00 : f32
    %95 = vector.broadcast %cst_51 : f32 to vector<1x1024xf32>
    %96 = arith.divf %94, %95 : vector<1x1024xf32>
    %97 = arith.mulf %91, %91 : vector<1x1024xf32>
    %98 = arith.subf %96, %97 : vector<1x1024xf32>
    %cst_52 = arith.constant 9.99999974E-6 : f32
    %99 = vector.broadcast %cst_52 : f32 to vector<1x1024xf32>
    %100 = arith.addf %98, %99 : vector<1x1024xf32>
    %101 = math.rsqrt %100 : vector<1x1024xf32>
    %102 = arith.mulf %86, %101 : vector<1x1024xf32>
    %103 = arith.mulf %91, %102 : vector<1x1024xf32>
    %104 = arith.subf %87, %103 : vector<1x1024xf32>
    %105 = vector.broadcast %102 : vector<1x1024xf32> to vector<8x1024xf32>
    %106 = arith.mulf %85, %105 : vector<8x1024xf32>
    %107 = vector.broadcast %104 : vector<1x1024xf32> to vector<8x1024xf32>
    %108 = arith.addf %106, %107 : vector<8x1024xf32>
    %cst_53 = arith.constant 0.000000e+00 : f32
    %109 = vector.broadcast %cst_53 : f32 to vector<8x1024xf32>
    %110 = arith.cmpf ogt, %108, %109 : vector<8x1024xf32>
    %cst_54 = arith.constant 2.000000e-01 : f32
    %111 = vector.broadcast %cst_54 : f32 to vector<8x1024xf32>
    %112 = arith.mulf %111, %108 : vector<8x1024xf32>
    %113 = arith.select %110, %108, %112 : vector<8x1024xi1>, vector<8x1024xf32>
    %114 = arith.truncf %113 : vector<8x1024xf32> to vector<8x1024xbf16>
    %c0_55 = arith.constant 0 : index
    %c0_56 = arith.constant 0 : index
    %115 = vector.load %arg15[%c0_55, %c0_56] : memref<1024x256xbf16, #tpu.memory_space<vmem>>, vector<1024x256xbf16>
    %cst_57 = arith.constant dense<0.000000e+00> : vector<8x256xf32>
    %116 = tpu.matmul %114, %115, %cst_57 {dimension_numbers = #tpu.dot_dimension_numbers<[1], [0], [0], [1], [0, 0, 1, 1], [], []>} : vector<8x1024xbf16>, vector<1024x256xbf16>, vector<8x256xf32> -> vector<8x256xf32>
    %c0_58 = arith.constant 0 : index
    %c0_59 = arith.constant 0 : index
    %117 = vector.load %arg16[%c0_58, %c0_59] : memref<1x256xf32, #tpu.memory_space<vmem>>, vector<1x256xf32>
    %118 = vector.broadcast %117 : vector<1x256xf32> to vector<8x256xf32>
    %119 = arith.addf %116, %118 : vector<8x256xf32>
    %120 = math.tanh %119 : vector<8x256xf32>
    %c0_60 = arith.constant 0 : index
    %c0_61 = arith.constant 0 : index
    %121 = vector.load %arg17[%c0_60, %c0_61] : memref<8x256xf32, #tpu.memory_space<vmem>>, vector<8x256xf32>
    tpu.vector_store %arg17[%c0_60, %c0_61], %120 {strides = array<i32>} : memref<8x256xf32, #tpu.memory_space<vmem>>, vector<8x256xf32>,
    return
  }
}

</mosaic_0001>

<bundles_post_ra>
// kernel: tpu_custom_call.1
= control target key start
LH: loop header
LB: loop body
LE: loop exit
PB: predicated region body
PF: predicated region fallthrough
CT: control target
= control target key end

     0   :  { %s6232_s0 = inlined_call_operand.hbm [shape: f32[8,64], index: 0, kind: input, shape index: {}]   ;;  %s6233_s1 = inlined_call_operand.hbm [shape: bf16[64,128], index: 1, kind: input, shape index: {}]   ;;  %s6234_s2 = inlined_call_operand.vmem [shape: f32[1,128], index: 2, kind: input, shape index: {}]   ;;  %s6235_s3 = inlined_call_operand.hbm [shape: bf16[128,256], index: 3, kind: input, shape index: {}]   ;;  %s6236_s4 = inlined_call_operand.hbm [shape: f32[1,256], index: 4, kind: input, shape index: {}]   ;;  %s6237_s5 = inlined_call_operand.hbm [shape: f32[1,256], index: 5, kind: input, shape index: {}]   ;;  %s6238_s6 = inlined_call_operand.hbm [shape: f32[1,256], index: 6, kind: input, shape index: {}]   ;;  %s6239_s7 = inlined_call_operand.hbm [shape: bf16[256,512], index: 7, kind: input, shape index: {}]   ;;  %s6240_s8 = inlined_call_operand.vmem [shape: f32[1,512], index: 8, kind: input, shape index: {}]   ;;  %s6241_s9 = inlined_call_operand.vmem [shape: f32[1,512], index: 9, kind: input, shape index: {}]   ;;  %s6242_s10 = inlined_call_operand.vmem [shape: f32[1,512], index: 10, kind: input, shape index: {}]   ;;  %s6243_s11 = inlined_call_operand.hbm [shape: bf16[512,1024], index: 11, kind: input, shape index: {}]   ;;  %s6244_s12 = inlined_call_operand.vmem [shape: f32[1,1024], index: 12, kind: input, shape index: {}]   ;;  %s6245_s13 = inlined_call_operand.vmem [shape: f32[1,1024], index: 13, kind: input, shape index: {}]   ;;  %s6246_s14 = inlined_call_operand.vmem [shape: f32[1,1024], index: 14, kind: input, shape index: {}]   ;;  %s6247_s15 = inlined_call_operand.hbm [shape: bf16[1024,256], index: 15, kind: input, shape index: {}]   ;;  %s6248_s16 = inlined_call_operand.vmem [shape: f32[1,256], index: 16, kind: input, shape index: {}]   ;;  %s6249_s17 = inlined_call_operand.hbm [shape: f32[8,256], index: 17, kind: output, shape index: {}]  }
   0x1   :  { %6253 = sst [smem:[#allocation24_spill]] %s6232_s0 }
   0x2   :  { %6254 = sst [smem:[#allocation25_spill]] %s6233_s1 }
   0x3   :  { %6255 = sst [smem:[#allocation26_spill]] %s6248_s16 }
   0x4   :  { %6256 = sst [smem:[#allocation27_spill]] %s6249_s17 }
   0x5   :  { %22 = vsyncpa [#allocation3], 0 }
   0x6   :  { %23 = vsyncpa [#allocation6], 0 }
   0x7   :  { %24 = vsyncpa [#allocation9], 0 }
   0x8   :  { %25 = vsyncpa [#allocation12], 0 }
   0x9   :  { %26 = vsyncpa [#allocation15], 0 }
   0xa   :  { %27 = vsyncpa [#allocation4], 0  ;;  %s5629_s24 = smov [#allocation5]   ;;  %s6257_s28 = sld [smem:[#allocation25_spill]] }
   0xb   :  { %s43_s25 = sshll.u32 %s5629_s24, 4  ;;  %s44_s25 = int_to_ptr.vmem [resolvable:$true] %s43_s25 }
  0x10   :  { %s5397_s29 = scalar_lea.hbm %s6257_s28, 512 }
  0x11   :  { %p5398_p0 = scmp.ne.s32.totalorder %s6257_s28, %s5397_s29  ;;  %p5401_p1 = scmp.lt.u32.totalorder %s5397_s29, %s6257_s28 }
  0x13   :  { %p5403_p2 = pnand %p5401_p1, %p5398_p0 }
  0x15   :  { %5406 = shalt.err (!%p5403_p2)
}
  0x16   :  { %s5407_s1 = scalar_lea.vmem %s44_s25, 512  ;;  %p5412_p4 = scmp.lt.s32.totalorder %s44_s25, %s44_s25 }
  0x17   :  { %p5408_p3 = scmp.ne.s32.totalorder %s44_s25, %s5407_s1  ;;  %p5413_p5 = scmp.lt.s32.totalorder %s5407_s1, %s5407_s1 }
  0x19   :  { %p5414_p6 = por %p5413_p5, %p5412_p4 }
  0x1b   :  { %p5415_p7 = pnand %p5414_p6, %p5408_p3 }
  0x1d   :  { %5418 = shalt.err (!%p5415_p7)
}
  0x1e   :  { %s5630_s20 = smov 64   ;;  %s5631_s21 = smov 4  }
  0x1f   :  { %49 = dma.hbm_to_vmem [thread:$0]  %s6257_s28, 512, %s44_s25, [#allocation6], %s5630_s20, %s5630_s20, %s5631_s21  }
  0x20   :  { %s5632_s24 = smov [#allocation8]   ;;  %s5633_s27 = smov [#allocation11]  }
  0x21   :  { %s70_s26 = sshll.u32 %s5632_s24, 4  ;;  %s90_s29 = sshll.u32 %s5633_s27, 4  ;;  %s71_s26 = int_to_ptr.vmem [resolvable:$true] %s70_s26  ;;  %s91_s29 = int_to_ptr.vmem [resolvable:$true] %s90_s29 }
  0x22   :  { %s5419_s18 = scalar_lea.hbm %s6236_s4, 32 }
  0x23   :  { %p5420_p8 = scmp.ne.s32.totalorder %s6236_s4, %s5419_s18  ;;  %p5423_p9 = scmp.lt.u32.totalorder %s5419_s18, %s6236_s4 }
  0x25   :  { %p5425_p10 = pnand %p5423_p9, %p5420_p8 }
  0x27   :  { %5428 = shalt.err (!%p5425_p10)
}
  0x28   :  { %s5429_s25 = scalar_lea.vmem %s71_s26, 32  ;;  %p5434_p12 = scmp.lt.s32.totalorder %s71_s26, %s71_s26 }
  0x29   :  { %p5430_p11 = scmp.ne.s32.totalorder %s71_s26, %s5429_s25  ;;  %p5435_p13 = scmp.lt.s32.totalorder %s5429_s25, %s5429_s25 }
  0x2b   :  { %p5436_p0 = por %p5435_p13, %p5434_p12 }
  0x2d   :  { %p5437_p1 = pnand %p5436_p0, %p5430_p11 }
  0x2f   :  { %5440 = shalt.err (!%p5437_p1)
}
  0x30   :  { %73 = dma.hbm_to_vmem [thread:$0]  %s6236_s4, 32, %s71_s26, [#allocation9]  }
  0x31   :  { %s5441_s23 = scalar_lea.hbm %s6238_s6, 32 }
  0x32   :  { %p5442_p2 = scmp.ne.s32.totalorder %s6238_s6, %s5441_s23  ;;  %p5445_p3 = scmp.lt.u32.totalorder %s5441_s23, %s6238_s6 }
  0x34   :  { %p5447_p4 = pnand %p5445_p3, %p5442_p2 }
  0x36   :  { %5450 = shalt.err (!%p5447_p4)
}
  0x37   :  { %s5451_s0 = scalar_lea.vmem %s91_s29, 32  ;;  %p5456_p6 = scmp.lt.s32.totalorder %s91_s29, %s91_s29 }
  0x38   :  { %p5452_p5 = scmp.ne.s32.totalorder %s91_s29, %s5451_s0  ;;  %p5457_p7 = scmp.lt.s32.totalorder %s5451_s0, %s5451_s0 }
  0x3a   :  { %p5458_p8 = por %p5457_p7, %p5456_p6 }
  0x3c   :  { %p5459_p9 = pnand %p5458_p8, %p5452_p5 }
  0x3e   :  { %5462 = shalt.err (!%p5459_p9)
}
  0x3f   :  { %93 = dma.hbm_to_vmem [thread:$0]  %s6238_s6, 32, %s91_s29, [#allocation12]  }
  0x40   :  { %s5634_s30 = smov [#allocation14]   ;;  %s5463_s25 = scalar_lea.hbm %s6243_s11, 32768 }
  0x41   :  { %s117_s18 = sshll.u32 %s5634_s30, 4  ;;  %p5464_p10 = scmp.ne.s32.totalorder %s6243_s11, %s5463_s25  ;;  %s118_s18 = int_to_ptr.vmem [resolvable:$true] %s117_s18 }
  0x42   :  { %p5467_p11 = scmp.lt.u32.totalorder %s5463_s25, %s6243_s11 }
  0x44   :  { %p5469_p12 = pnand %p5467_p11, %p5464_p10 }
  0x46   :  { %5472 = shalt.err (!%p5469_p12)
}
  0x47   :  { %s5473_s23 = scalar_lea.vmem %s118_s18, 32768  ;;  %p5478_p0 = scmp.lt.s32.totalorder %s118_s18, %s118_s18 }
  0x48   :  { %p5474_p13 = scmp.ne.s32.totalorder %s118_s18, %s5473_s23  ;;  %p5479_p1 = scmp.lt.s32.totalorder %s5473_s23, %s5473_s23 }
  0x4a   :  { %p5480_p2 = por %p5479_p1, %p5478_p0 }
  0x4c   :  { %p5481_p3 = pnand %p5480_p2, %p5474_p13 }
  0x4e   :  { %5484 = shalt.err (!%p5481_p3)
}
  0x4f   :  { %s5635_s6 = smov 512   ;;  %s5636_s29 = smov 32  }
  0x50   :  { %123 = dma.hbm_to_vmem [thread:$0]  %s6243_s11, 32768, %s118_s18, [#allocation15], %s5635_s6, %s5635_s6, %s5636_s29  }
  0x51   :  { %s5637_s24 = smov [#allocation2]   ;;  %s5638_s0 = smov [#allocation7]  }
  0x52   :  { %s34_s27 = sshll.u32 %s5637_s24, 4  ;;  %s57_s4 = sshll.u32 %s5638_s0, 4  ;;  %s35_s27 = int_to_ptr.vmem [resolvable:$true] %s34_s27  ;;  %s5789_s4 = int_to_ptr.vmem [resolvable:$true] %s57_s4 }
  0x53   :  { %s6258_s19 = sld [smem:[#allocation24_spill]] }
  0x59   :  { %s5485_s1 = scalar_lea.hbm %s6258_s19, 128 }
  0x5a   :  { %p5486_p4 = scmp.ne.s32.totalorder %s6258_s19, %s5485_s1  ;;  %p5489_p5 = scmp.lt.u32.totalorder %s5485_s1, %s6258_s19 }
  0x5c   :  { %p5491_p6 = pnand %p5489_p5, %p5486_p4 }
  0x5e   :  { %5494 = shalt.err (!%p5491_p6)
}
  0x5f   :  { %s5495_s11 = scalar_lea.vmem %s35_s27, 128  ;;  %p5500_p8 = scmp.lt.s32.totalorder %s35_s27, %s35_s27 }
  0x60   :  { %p5496_p7 = scmp.ne.s32.totalorder %s35_s27, %s5495_s11  ;;  %p5501_p9 = scmp.lt.s32.totalorder %s5495_s11, %s5495_s11 }
  0x62   :  { %p5502_p10 = por %p5501_p9, %p5500_p8 }
  0x64   :  { %p5503_p11 = pnand %p5502_p10, %p5496_p7 }
  0x66   :  { %5506 = shalt.err (!%p5503_p11)
}
  0x67   :  { %37 = dma.hbm_to_vmem [thread:$0]  %s6258_s19, 128, %s35_s27, [#allocation3]  }
  0x68   :  { %s5507_s29 = scalar_lea.hbm %s6235_s3, 2048 }
  0x69   :  { %p5508_p12 = scmp.ne.s32.totalorder %s6235_s3, %s5507_s29  ;;  %p5511_p13 = scmp.lt.u32.totalorder %s5507_s29, %s6235_s3 }
  0x6b   :  { %p5513_p0 = pnand %p5511_p13, %p5508_p12 }
  0x6d   :  { %5516 = shalt.err (!%p5513_p0)
}
  0x6e   :  { %s5517_s26 = scalar_lea.vmem %s5789_s4, 2048  ;;  %p5522_p2 = scmp.lt.s32.totalorder %s5789_s4, %s5789_s4 }
  0x6f   :  { %p5518_p1 = scmp.ne.s32.totalorder %s5789_s4, %s5517_s26  ;;  %p5523_p3 = scmp.lt.s32.totalorder %s5517_s26, %s5517_s26 }
  0x71   :  { %p5524_p4 = por %p5523_p3, %p5522_p2 }
  0x73   :  { %p5525_p5 = pnand %p5524_p4, %p5518_p1 }
  0x75   :  { %5528 = shalt.err (!%p5525_p5)
}
  0x76   :  { %s5639_s27 = smov 128   ;;  %s5640_s30 = smov 8  }
  0x77   :  { %63 = dma.hbm_to_vmem [thread:$0]  %s6235_s3, 2048, %s5789_s4, [#allocation6], %s5639_s27, %s5639_s27, %s5640_s30  }
  0x78   :  { %s5641_s25 = smov [#allocation10]   ;;  %s5642_s20 = smov [#allocation13]  }
  0x79   :  { %s80_s28 = sshll.u32 %s5641_s25, 4  ;;  %s99_s21 = sshll.u32 %s5642_s20, 4  ;;  %s81_s28 = int_to_ptr.vmem [resolvable:$true] %s80_s28  ;;  %s5823_s21 = int_to_ptr.vmem [resolvable:$true] %s99_s21 }
  0x7a   :  { %s5529_s22 = scalar_lea.hbm %s6237_s5, 32 }
  0x7b   :  { %p5530_p6 = scmp.ne.s32.totalorder %s6237_s5, %s5529_s22  ;;  %p5533_p7 = scmp.lt.u32.totalorder %s5529_s22, %s6237_s5 }
  0x7d   :  { %p5535_p8 = pnand %p5533_p7, %p5530_p6 }
  0x7f   :  { %5538 = shalt.err (!%p5535_p8)
}
  0x80   :  { %s5539_s3 = scalar_lea.vmem %s81_s28, 32  ;;  %p5544_p10 = scmp.lt.s32.totalorder %s81_s28, %s81_s28 }
  0x81   :  { %p5540_p9 = scmp.ne.s32.totalorder %s81_s28, %s5539_s3  ;;  %p5545_p11 = scmp.lt.s32.totalorder %s5539_s3, %s5539_s3 }
  0x83   :  { %p5546_p12 = por %p5545_p11, %p5544_p10 }
  0x85   :  { %p5547_p13 = pnand %p5546_p12, %p5540_p9 }
  0x87   :  { %5550 = shalt.err (!%p5547_p13)
}
  0x88   :  { %83 = dma.hbm_to_vmem [thread:$0]  %s6237_s5, 32, %s81_s28, [#allocation9]  }
  0x89   :  { %s5551_s26 = scalar_lea.hbm %s6239_s7, 8192 }
  0x8a   :  { %p5552_p0 = scmp.ne.s32.totalorder %s6239_s7, %s5551_s26  ;;  %p5555_p1 = scmp.lt.u32.totalorder %s5551_s26, %s6239_s7 }
  0x8c   :  { %p5557_p2 = pnand %p5555_p1, %p5552_p0 }
  0x8e   :  { %5560 = shalt.err (!%p5557_p2)
}
  0x8f   :  { %s5561_s11 = scalar_lea.vmem %s5823_s21, 8192  ;;  %p5566_p4 = scmp.lt.s32.totalorder %s5823_s21, %s5823_s21 }
  0x90   :  { %p5562_p3 = scmp.ne.s32.totalorder %s5823_s21, %s5561_s11  ;;  %p5567_p5 = scmp.lt.s32.totalorder %s5561_s11, %s5561_s11 }
  0x92   :  { %p5568_p6 = por %p5567_p5, %p5566_p4 }
  0x94   :  { %p5569_p7 = pnand %p5568_p6, %p5562_p3 }
  0x96   :  { %5572 = shalt.err (!%p5569_p7)
}
  0x97   :  { %s5643_s5 = smov 256   ;;  %s5644_s28 = smov 16  }
  0x98   :  { %105 = dma.hbm_to_vmem [thread:$0]  %s6239_s7, 8192, %s5823_s21, [#allocation12], %s5643_s5, %s5643_s5, %s5644_s28  }
  0x99   :  { %s5645_s23 = smov [#allocation16]   ;;  %s5573_s3 = scalar_lea.hbm %s6247_s15, 16384 }
  0x9a   :  { %s135_s6 = sshll.u32 %s5645_s23, 4  ;;  %p5574_p8 = scmp.ne.s32.totalorder %s6247_s15, %s5573_s3  ;;  %s136_s6 = int_to_ptr.vmem [resolvable:$true] %s135_s6 }
  0x9b   :  { %p5577_p9 = scmp.lt.u32.totalorder %s5573_s3, %s6247_s15 }
  0x9d   :  { %p5579_p10 = pnand %p5577_p9, %p5574_p8 }
  0x9f   :  { %5582 = shalt.err (!%p5579_p10)
}
  0xa0   :  { %s5583_s26 = scalar_lea.vmem %s136_s6, 16384  ;;  %p5588_p12 = scmp.lt.s32.totalorder %s136_s6, %s136_s6 }
  0xa1   :  { %p5584_p11 = scmp.ne.s32.totalorder %s136_s6, %s5583_s26  ;;  %p5589_p13 = scmp.lt.s32.totalorder %s5583_s26, %s5583_s26 }
  0xa3   :  { %p5590_p0 = por %p5589_p13, %p5588_p12 }
  0xa5   :  { %p5591_p1 = pnand %p5590_p0, %p5584_p11 }
  0xa7   :  { %5594 = shalt.err (!%p5591_p1)
}
  0xa8   :  { %141 = dma.hbm_to_vmem [thread:$0]  %s6247_s15, 16384, %s136_s6, [#allocation15], %s5639_s27, %s5639_s27, %s5640_s30  }
  0xa9   :  { %5617 = dma.done.wait [#allocation3], 128  }
  0xaa   :  { %5618 = vsyncadd [#allocation3], 4294967168 }
  0xab   :  { %5619 = dma.done.wait [#allocation6], 2560  }
  0xac   :  { %5620 = vsyncadd [#allocation6], 4294964736 }
  0xad   :  { %5621 = dma.done.wait [#allocation9], 64  }
  0xae   :  { %5622 = vsyncadd [#allocation9], 4294967232 }
  0xaf   :  { %5623 = dma.done.wait [#allocation12], 8224  }
  0xb0   :  { %5624 = vsyncadd [#allocation12], 4294959072 }
  0xb1   :  { %5625 = dma.done.wait [#allocation15], 49152  }
  0xb2   :  { %5626 = vsyncadd [#allocation15], 4294918144  ;;  %v5646_v0 = vmov 0.0   ;;  %vm5647_vm0 = vmmov 0   ;;  %v5049_v1 = vld [vmem:[#allocation5] sm:$0xff]   ;;  %v5050_v2 = vld [vmem:[#allocation5 + $0x8] sm:$0xff]  }
  0xb3   :  { %4979 = vmatprep.subr.bf16.mxu0 %v5646_v0  ;;  %4987 = vmatprep.mubr.msk.bf16.mxu0 %vm5647_vm0, %v5646_v0  ;;  %v5053_v3 = vld [vmem:[#allocation7 + $0x4] ss:$8 sps:$4 sm:$0xff]   ;;  %v5055_v4 = vld [vmem:[#allocation7] ss:$8 sps:$4 sm:$0xff]   ;;  %v5051_v5 = vld [vmem:[#allocation5 + $0x10] sm:$0xff]   ;;  %vm213_vm1 = vcmask 523264  }
  0xb4   :  { %4980 = vmatpush3.bf16.msra.mxu0 %v5049_v1  ;;  %v5056_v6 = vld [vmem:[#allocation7 + $0x14] ss:$8 sps:$4 sm:$0xff]   ;;  %369 = vmatprep.subr.bf16.mxu1 %v5053_v3  ;;  %v5058_v7 = vld [vmem:[#allocation7 + $0x10] ss:$8 sps:$4 sm:$0xff]   ;;  %v5059_v8 = vld [vmem:[#allocation7 + $0x24] ss:$8 sps:$4 sm:$0xff]  }
  0xb5   :  { %4981 = vmatprep.subr.bf16.mxu0 %v5646_v0  ;;  %370 = vmatpush1.bf16.msra.mxu1 %v5055_v4  ;;  %v5052_v9 = vld [vmem:[#allocation5 + $0x18] sm:$0xff]   ;;  %v5061_v11 = vld [vmem:[#allocation7 + $0x20] ss:$8 sps:$4 sm:$0xff]   ;;  %v5065_v15 = vld [vmem:[#allocation7 + $0x44] ss:$8 sps:$4 sm:$0xff]   ;;  %v5648_v23 = vmov 0  }
  0xb6   :  { %371 = vmatprep.subr.bf16.mxu1 %v5056_v6  ;;  %v172_v10 = vld [vmem:[#allocation2] sm:$0xff]  ;;  %v5067_v16 = vld [vmem:[#allocation7 + $0x40] ss:$8 sps:$4 sm:$0xff]   ;;  %v5071_v19 = vld [vmem:[#allocation7 + $0x64] ss:$8 sps:$4 sm:$0xff]   ;;  %401 = vmatprep.mubr.bf16.mxu1 %v5648_v23  ;;  %s6259_s28 = sld [smem:[#allocation26_spill]] }
  0xb7   :  { %v5062_v12 = vld [vmem:[#allocation7 + $0x34] ss:$8 sps:$4 sm:$0xff]   ;;  %v173_v13 = vpack.c.bf16 %v172_v10, %v172_v10  ;;  %v5064_v14 = vld [vmem:[#allocation7 + $0x30] ss:$8 sps:$4 sm:$0xff]   ;;  %v5073_v20 = vld [vmem:[#allocation7 + $0x60] ss:$8 sps:$4 sm:$0xff]  }
  0xb8   :  { %4982 = vmatpush3.bf16.msra.mxu0 %v5050_v2  ;;  %v5068_v17 = vld [vmem:[#allocation7 + $0x54] ss:$8 sps:$4 sm:$0xff]   ;;  %v5070_v18 = vld [vmem:[#allocation7 + $0x50] ss:$8 sps:$4 sm:$0xff]   ;;  %v279_v2 = vlaneseq  ;;  %s5650_s18 = smov [#allocation17]  }
  0xb9   :  { %4983 = vmatprep.subr.bf16.mxu0 %v5646_v0  ;;  %372 = vmatpush1.bf16.msra.mxu1 %v5058_v7  ;;  %v5074_v21 = vld [vmem:[#allocation7 + $0x74] ss:$8 sps:$4 sm:$0xff]   ;;  %v5076_v22 = vld [vmem:[#allocation7 + $0x70] ss:$8 sps:$4 sm:$0xff]   ;;  %s4491_s22 = sshll.u32 %s5650_s18, 4  ;;  %s4492_s22 = int_to_ptr.vmem [resolvable:$true] %s4491_s22 }
  0xba   :  { %373 = vmatprep.subr.bf16.mxu1 %v5059_v8  ;;  %v4504_v24 = vld [vmem:[%s6234_s2] ss:$0 sm:$0xff]  ;;  %v5079_v33 = vld [vmem:[#allocation13 + $0x4] ss:$16 sps:$4 sm:$0xff]   ;;  %v5127_v1 = vld [vmem:[#allocation13 + $0xc] ss:$16 sps:$4 sm:$0xff]   ;;  %p5600_p3 = scmp.lt.s32.totalorder %s4492_s22, %s4492_s22 }
  0xbb   :  { %v5077_v34 = vld [vmem:[#allocation13] ss:$16 sps:$4 sm:$0xff]   ;;  %v5082_v35 = vld [vmem:[#allocation13 + $0x24] ss:$16 sps:$4 sm:$0xff]   ;;  %v5872_v3 = vshrl.u32 %v279_v2, 7  ;;  %s5595_s23 = scalar_lea.vmem %s4492_s22, 256 }
  0xbc   :  { %4984 = vmatpush3.bf16.msra.mxu0 %v5051_v5  ;;  %v5080_v36 = vld [vmem:[#allocation13 + $0x20] ss:$16 sps:$4 sm:$0xff]   ;;  %v5085_v37 = vld [vmem:[#allocation13 + $0x44] ss:$16 sps:$4 sm:$0xff]   ;;  %v277_v5 = vld [vmem:[#allocation8] sm:$0x3]  ;;  %p5596_p2 = scmp.ne.s32.totalorder %s4492_s22, %s5595_s23  ;;  %p5601_p4 = scmp.lt.s32.totalorder %s5595_s23, %s5595_s23 }
  0xbd   :  { %4985 = vmatprep.subr.bf16.mxu0 %v5646_v0  ;;  %374 = vmatpush1.bf16.msra.mxu1 %v5061_v11  ;;  %v5083_v38 = vld [vmem:[#allocation13 + $0x40] ss:$16 sps:$4 sm:$0xff]   ;;  %v5088_v39 = vld [vmem:[#allocation13 + $0x64] ss:$16 sps:$4 sm:$0xff]   ;;  %v5875_v4 = vsub.s32 0, %v5872_v3  ;;  %v5878_v6 = vsub.s32 1, %v5872_v3 }
  0xbe   :  { %375 = vmatprep.subr.bf16.mxu1 %v5062_v12  ;;  %v5086_v40 = vld [vmem:[#allocation13 + $0x60] ss:$16 sps:$4 sm:$0xff]   ;;  %v5091_v41 = vld [vmem:[#allocation13 + $0x84] ss:$16 sps:$4 sm:$0xff]   ;;  %p5602_p5 = por %p5601_p4, %p5600_p3 }
  0xbf   :  { %v5089_v42 = vld [vmem:[#allocation13 + $0x80] ss:$16 sps:$4 sm:$0xff]   ;;  %v5094_v43 = vld [vmem:[#allocation13 + $0xa4] ss:$16 sps:$4 sm:$0xff]   ;;  %v282_v7 = vrot.slane %v277_v5, %v5875_v4  ;;  %v286_v8 = vrot.slane %v277_v5, %v5878_v6 }
  0xc0   :  { %4986 = vmatpush3.bf16.msra.mxu0 %v5052_v9  ;;  %v5092_v44 = vld [vmem:[#allocation13 + $0xa0] ss:$16 sps:$4 sm:$0xff]   ;;  %v5097_v45 = vld [vmem:[#allocation13 + $0xc4] ss:$16 sps:$4 sm:$0xff]   ;;  %p5603_p6 = pnand %p5602_p5, %p5596_p2 }
  0xc1   :  { %376 = vmatpush1.bf16.msra.mxu1 %v5064_v14  ;;  %v5095_v46 = vld [vmem:[#allocation13 + $0xc0] ss:$16 sps:$4 sm:$0xff]   ;;  %v5100_v47 = vld [vmem:[#allocation13 + $0xe4] ss:$16 sps:$4 sm:$0xff]  }
  0xc2   :  { %377 = vmatprep.subr.bf16.mxu1 %v5065_v15  ;;  %v5098_v48 = vld [vmem:[#allocation13 + $0xe0] ss:$16 sps:$4 sm:$0xff]   ;;  %v5103_v49 = vld [vmem:[#allocation13 + $0x104] ss:$16 sps:$4 sm:$0xff]  }
  0xc3   :  { %4988 = vmatmul.mubr.msk.bf16.vlgmr.msra.gmra.mrb[0].mxu0 %vm213_vm1, %v173_v13  ;;  %v5101_v50 = vld [vmem:[#allocation13 + $0x100] ss:$16 sps:$4 sm:$0xff]   ;;  %v5106_v51 = vld [vmem:[#allocation13 + $0x124] ss:$16 sps:$4 sm:$0xff]  }
  0xc4   :  { %v5104_v52 = vld [vmem:[#allocation13 + $0x120] ss:$16 sps:$4 sm:$0xff]   ;;  %v5109_v53 = vld [vmem:[#allocation13 + $0x144] ss:$16 sps:$4 sm:$0xff]  }
  0xc5   :  { %378 = vmatpush1.bf16.msra.mxu1 %v5067_v16  ;;  %v5107_v54 = vld [vmem:[#allocation13 + $0x140] ss:$16 sps:$4 sm:$0xff]   ;;  %v5112_v55 = vld [vmem:[#allocation13 + $0x164] ss:$16 sps:$4 sm:$0xff]  }
  0xc6   :  { %379 = vmatprep.subr.bf16.mxu1 %v5068_v17  ;;  %v5110_v56 = vld [vmem:[#allocation13 + $0x160] ss:$16 sps:$4 sm:$0xff]   ;;  %v5115_v57 = vld [vmem:[#allocation13 + $0x184] ss:$16 sps:$4 sm:$0xff]  }
  0xc7   :  { %v5113_v58 = vld [vmem:[#allocation13 + $0x180] ss:$16 sps:$4 sm:$0xff]   ;;  %v5118_v60 = vld [vmem:[#allocation13 + $0x1a4] ss:$16 sps:$4 sm:$0xff]  }
  0xc8   :  { %v5116_v59 = vld [vmem:[#allocation13 + $0x1a0] ss:$16 sps:$4 sm:$0xff]   ;;  %v5121_v61 = vld [vmem:[#allocation13 + $0x1c4] ss:$16 sps:$4 sm:$0xff]  }
  0xc9   :  { %380 = vmatpush1.bf16.msra.mxu1 %v5070_v18  ;;  %v5119_v62 = vld [vmem:[#allocation13 + $0x1c0] ss:$16 sps:$4 sm:$0xff]   ;;  %v5124_v63 = vld [vmem:[#allocation13 + $0x1e4] ss:$16 sps:$4 sm:$0xff]  }
  0xca   :  { %381 = vmatprep.subr.bf16.mxu1 %v5071_v19  ;;  %v5122_v0 = vld [vmem:[#allocation13 + $0x1e0] ss:$16 sps:$4 sm:$0xff]  }
  0xcd   :  { %382 = vmatpush1.bf16.msra.mxu1 %v5073_v20 }
  0xce   :  { %383 = vmatprep.subr.bf16.mxu1 %v5074_v21 }
  0xd1   :  { %384 = vmatpush1.bf16.msra.mxu1 %v5076_v22 }
  0xd2   :  { %931 = vmatprep.subr.bf16.mxu1 %v5079_v33 }
 0x196   :  { %v251_v25 = vpop.f32.mrb[0].mxu0 }
 0x197   :  { %v252_v26 = vadd.f32 %v4504_v24, %v251_v25  ;;  %v4989_v27 = vpop.f32.mrb[1].mxu0 }
 0x198   :  { %v254_v28 = vpop.f32.mrb[2].mxu0 }
 0x199   :  { %vm257_vm2 = vcmp.gt.f32.partialorder %v252_v26, 0.0  ;;  %v258_v29 = vmul.f32 0.2, %v252_v26  ;;  %v4990_v30 = vpop.f32.mrb[3].mxu0 }
 0x19b   :  { %v259_v31 = vsel %vm257_vm2, %v252_v26, %v258_v29 }
 0x19c   :  { %v260_v32 = vpack.c.bf16 %v259_v31, %v259_v31 }
 0x19e   :  { %402 = vmatmul.mubr.bf16.vlgmr.msra.gmra.mrb[0].mxu1 %v260_v32 }
 0x19f   :  { %932 = vmatpush1.bf16.msra.mxu1 %v5077_v34 }
 0x1a0   :  { %933 = vmatprep.subr.bf16.mxu1 %v5082_v35 }
 0x1a3   :  { %934 = vmatpush1.bf16.msra.mxu1 %v5080_v36 }
 0x1a4   :  { %935 = vmatprep.subr.bf16.mxu1 %v5085_v37 }
 0x1a7   :  { %936 = vmatpush1.bf16.msra.mxu1 %v5083_v38 }
 0x1a8   :  { %937 = vmatprep.subr.bf16.mxu1 %v5088_v39 }
 0x1ab   :  { %938 = vmatpush1.bf16.msra.mxu1 %v5086_v40 }
 0x1ac   :  { %939 = vmatprep.subr.bf16.mxu1 %v5091_v41 }
 0x1af   :  { %940 = vmatpush1.bf16.msra.mxu1 %v5089_v42 }
 0x1b0   :  { %941 = vmatprep.subr.bf16.mxu1 %v5094_v43 }
 0x1b3   :  { %942 = vmatpush1.bf16.msra.mxu1 %v5092_v44 }
 0x1b4   :  { %943 = vmatprep.subr.bf16.mxu1 %v5097_v45 }
 0x1b7   :  { %944 = vmatpush1.bf16.msra.mxu1 %v5095_v46 }
 0x1b8   :  { %945 = vmatprep.subr.bf16.mxu1 %v5100_v47 }
 0x1bb   :  { %946 = vmatpush1.bf16.msra.mxu1 %v5098_v48 }
 0x1bc   :  { %947 = vmatprep.subr.bf16.mxu1 %v5103_v49 }
 0x1bf   :  { %948 = vmatpush1.bf16.msra.mxu1 %v5101_v50 }
 0x1c0   :  { %949 = vmatprep.subr.bf16.mxu1 %v5106_v51  ;;  %v5649_v51 = vmov 1966171168  }
 0x1c3   :  { %950 = vmatpush1.bf16.msra.mxu1 %v5104_v52  ;;  %v455_v52 = vunpack.c.l.s4 %v5649_v51  ;;  %v5172_v51 = vld [vmem:[#allocation13 + $0x1ec] ss:$16 sps:$4 sm:$0xff]  }
 0x1c4   :  { %951 = vmatprep.subr.bf16.mxu1 %v5109_v53 }
 0x1c5   :  { %v456_v53 = vunpack.c.0.s8 %v455_v52  ;;  %v5170_v52 = vld [vmem:[#allocation13 + $0x1e8] ss:$16 sps:$4 sm:$0xff]  }
 0x1c7   :  { %952 = vmatpush1.bf16.msra.mxu1 %v5107_v54 }
 0x1c8   :  { %953 = vmatprep.subr.bf16.mxu1 %v5112_v55  ;;  %v5883_v55 = vsub.s32 %v456_v53, %v5872_v3  ;;  %v1221_v53 = vld [vmem:[#allocation14] sm:$0xff] }
 0x1cb   :  { %954 = vmatpush1.bf16.msra.mxu1 %v5110_v56 }
 0x1cc   :  { %955 = vmatprep.subr.bf16.mxu1 %v5115_v57 }
 0x1cf   :  { %956 = vmatpush1.bf16.msra.mxu1 %v5113_v58 }
 0x1d0   :  { %957 = vmatprep.subr.bf16.mxu1 %v5118_v60 }
 0x1d3   :  { %958 = vmatpush1.bf16.msra.mxu1 %v5116_v59  ;;  %v410_v59 = vld [vmem:[#allocation10] sm:$0x3] }
 0x1d4   :  { %959 = vmatprep.subr.bf16.mxu1 %v5121_v61 }
 0x1d7   :  { %960 = vmatpush1.bf16.msra.mxu1 %v5119_v62 }
 0x1d8   :  { %961 = vmatprep.subr.bf16.mxu1 %v5124_v63 }
 0x1db   :  { %962 = vmatpush1.bf16.msra.mxu1 %v5122_v0 }
 0x1dc   :  { %972 = vmatprep.subr.bf16.mxu1 %v5127_v1 }
 0x271   :  { %v403_v9 = vpop.f32.mrb[0].mxu1 }
 0x272   :  { %v404_v10 = vadd.f32 %v403_v9, %v282_v7  ;;  %v405_v11 = vpop.f32.mrb[1].mxu1  ;;  %v411_v9 = vld [vmem:[#allocation11] sm:$0x3] }
 0x273   :  { %v406_v12 = vadd.f32 %v405_v11, %v286_v8  ;;  %v407_v13 = vpop.f32.mrb[2].mxu1 }
 0x274   :  { %v412_v14 = vrot.slane %v404_v10, 4  ;;  %v427_v15 = vmul.f32 %v404_v10, %v404_v10  ;;  %v408_v16 = vpop.f32.mrb[3].mxu1 }
 0x275   :  { %v418_v17 = vrot.slane %v406_v12, 4  ;;  %v428_v18 = vmul.f32 %v406_v12, %v406_v12 }
 0x276   :  { %v413_v19 = vadd.f32 %v412_v14, %v404_v10  ;;  %v429_v20 = vrot.slane %v427_v15, 4 }
 0x277   :  { %v419_v21 = vadd.f32 %v418_v17, %v406_v12  ;;  %v435_v22 = vrot.slane %v428_v18, 4 }
 0x278   :  { %v414_v23 = vrot.slane %v413_v19, 2  ;;  %v430_v24 = vadd.f32 %v429_v20, %v427_v15 }
 0x279   :  { %v420_v25 = vrot.slane %v419_v21, 2  ;;  %v436_v26 = vadd.f32 %v435_v22, %v428_v18 }
 0x27a   :  { %v415_v27 = vadd.f32 %v414_v23, %v413_v19  ;;  %v431_v28 = vrot.slane %v430_v24, 2  ;;  %v5130_v23 = vld [vmem:[#allocation13 + $0x2c] ss:$16 sps:$4 sm:$0xff]  }
 0x27b   :  { %v421_v29 = vadd.f32 %v420_v25, %v419_v21  ;;  %v437_v30 = vrot.slane %v436_v26, 2  ;;  %v5125_v21 = vld [vmem:[#allocation13 + $0x8] ss:$16 sps:$4 sm:$0xff]   ;;  %v5133_v25 = vld [vmem:[#allocation13 + $0x4c] ss:$16 sps:$4 sm:$0xff]  }
 0x27c   :  { %v416_v31 = vrot.slane %v415_v27, 1  ;;  %v432_v32 = vadd.f32 %v431_v28, %v430_v24  ;;  %v5128_v24 = vld [vmem:[#allocation13 + $0x28] ss:$16 sps:$4 sm:$0xff]  }
 0x27d   :  { %v422_v33 = vrot.slane %v421_v29, 1  ;;  %v438_v34 = vadd.f32 %v437_v30, %v436_v26  ;;  %v5131_v26 = vld [vmem:[#allocation13 + $0x48] ss:$16 sps:$4 sm:$0xff]  }
 0x27e   :  { %v417_v35 = vadd.f32 %v416_v31, %v415_v27  ;;  %v433_v36 = vrot.slane %v432_v32, 1  ;;  %v5136_v27 = vld [vmem:[#allocation13 + $0x6c] ss:$16 sps:$4 sm:$0xff]   ;;  %v5134_v28 = vld [vmem:[#allocation13 + $0x68] ss:$16 sps:$4 sm:$0xff]  }
 0x27f   :  { %v423_v37 = vadd.f32 %v422_v33, %v421_v29  ;;  %v439_v38 = vrot.slane %v438_v34, 1  ;;  %v5139_v29 = vld [vmem:[#allocation13 + $0x8c] ss:$16 sps:$4 sm:$0xff]   ;;  %v5137_v30 = vld [vmem:[#allocation13 + $0x88] ss:$16 sps:$4 sm:$0xff]  }
 0x280   :  { %v425_v39 = vmul.f32 0.125, %v417_v35  ;;  %v434_v40 = vadd.f32 %v433_v36, %v432_v32  ;;  %v5142_v31 = vld [vmem:[#allocation13 + $0xac] ss:$16 sps:$4 sm:$0xff]   ;;  %v5140_v32 = vld [vmem:[#allocation13 + $0xa8] ss:$16 sps:$4 sm:$0xff]  }
 0x281   :  { %v426_v41 = vmul.f32 0.125, %v423_v37  ;;  %v440_v42 = vadd.f32 %v439_v38, %v438_v34  ;;  %v5145_v33 = vld [vmem:[#allocation13 + $0xcc] ss:$16 sps:$4 sm:$0xff]   ;;  %v5143_v34 = vld [vmem:[#allocation13 + $0xc8] ss:$16 sps:$4 sm:$0xff]  }
 0x282   :  { %v441_v43 = vmul.f32 0.125, %v434_v40  ;;  %v443_v44 = vmul.f32 %v425_v39, %v425_v39  ;;  %v5148_v35 = vld [vmem:[#allocation13 + $0xec] ss:$16 sps:$4 sm:$0xff]   ;;  %v5146_v36 = vld [vmem:[#allocation13 + $0xe8] ss:$16 sps:$4 sm:$0xff]  }
 0x283   :  { %v442_v45 = vmul.f32 0.125, %v440_v42  ;;  %v444_v46 = vmul.f32 %v426_v41, %v426_v41  ;;  %v5151_v37 = vld [vmem:[#allocation13 + $0x10c] ss:$16 sps:$4 sm:$0xff]   ;;  %v5149_v38 = vld [vmem:[#allocation13 + $0x108] ss:$16 sps:$4 sm:$0xff]  }
 0x284   :  { %v445_v47 = vsub.f32 %v441_v43, %v443_v44  ;;  %v5152_v40 = vld [vmem:[#allocation13 + $0x128] ss:$16 sps:$4 sm:$0xff]   ;;  %v5160_v43 = vld [vmem:[#allocation13 + $0x16c] ss:$16 sps:$4 sm:$0xff]  }
 0x285   :  { %v446_v48 = vsub.f32 %v442_v45, %v444_v46  ;;  %v5155_v42 = vld [vmem:[#allocation13 + $0x148] ss:$16 sps:$4 sm:$0xff]   ;;  %v5163_v45 = vld [vmem:[#allocation13 + $0x18c] ss:$16 sps:$4 sm:$0xff]  }
 0x286   :  { %v447_v49 = vadd.f32 1e-05, %v445_v47  ;;  %v5158_v44 = vld [vmem:[#allocation13 + $0x168] ss:$16 sps:$4 sm:$0xff]   ;;  %v5166_v47 = vld [vmem:[#allocation13 + $0x1ac] ss:$16 sps:$4 sm:$0xff]  }
 0x287   :  { %v448_v50 = vadd.f32 1e-05, %v446_v48  ;;  %v5161_v46 = vld [vmem:[#allocation13 + $0x188] ss:$16 sps:$4 sm:$0xff]  }
 0x288   :  { %5365 = vrsqrt.f32 %v447_v49  ;;  %v5164_v48 = vld [vmem:[#allocation13 + $0x1a8] ss:$16 sps:$4 sm:$0xff]   ;;  %v5169_v49 = vld [vmem:[#allocation13 + $0x1cc] ss:$16 sps:$4 sm:$0xff]  }
 0x289   :  { %5367 = vrsqrt.f32 %v448_v50  ;;  %v5167_v50 = vld [vmem:[#allocation13 + $0x1c8] ss:$16 sps:$4 sm:$0xff]  }
 0x292   :  { %v5366_v54 = vpop.eup %5365 }
 0x293   :  { %v5368_v56 = vpop.eup %5367 }
 0x294   :  { %v453_v57 = vcombine.low %v5366_v54, %v5368_v56  ;;  %v1225_v54 = vld [vmem:[#allocation14 + $0x20] sm:$0xff] }
 0x295   :  { %v1349_v56 = vld [vmem:[#allocation14 + $0x400] sm:$0xff] }
 0x296   :  { %v460_v58 = vrot.slane %v453_v57, %v5883_v55  ;;  %v4591_v57 = vcombine.high %v1221_v53, %v1225_v54 }
 0x298   :  { %v467_v60 = vrot.slane %v460_v58, %v5883_v55  ;;  %v1353_v58 = vld [vmem:[#allocation14 + $0x420] sm:$0xff] }
 0x29a   :  { %v469_v61 = vmul.f32 %v467_v60, %v410_v59  ;;  %v4590_v59 = vcombine.low %v1221_v53, %v1225_v54  ;;  %v4718_v60 = vcombine.low %v1349_v56, %v1353_v58  ;;  %v1409_v53 = vld [vmem:[#allocation14 + $0x5e0] sm:$0xff] }
 0x29c   :  { %v474_v62 = vrot.slane %v469_v61, %v5875_v4  ;;  %v478_v63 = vrot.slane %v469_v61, %v5878_v6  ;;  %v4719_v61 = vcombine.high %v1349_v56, %v1353_v58  ;;  %v1285_v58 = vld [vmem:[#allocation14 + $0x200] sm:$0xff] }
 0x29e   :  { %v481_v0 = vmul.f32 %v474_v62, %v425_v39  ;;  %v482_v1 = vmul.f32 %v478_v63, %v426_v41  ;;  %v503_v2 = vmul.f32 %v478_v63, %v406_v12  ;;  %v502_v5 = vmul.f32 %v474_v62, %v404_v10  ;;  %v5154_v39 = vld [vmem:[#allocation13 + $0x12c] ss:$16 sps:$4 sm:$0xff]   ;;  %2840 = vmatprep.subr.bf16.mxu0 %v4719_v61  ;;  %v1229_v62 = vld [vmem:[#allocation14 + $0x40] sm:$0xff] }
 0x29f   :  { %v5157_v41 = vld [vmem:[#allocation13 + $0x14c] ss:$16 sps:$4 sm:$0xff]   ;;  %v1233_v63 = vld [vmem:[#allocation14 + $0x60] sm:$0xff]  ;;  %2841 = vmatpush1.bf16.msra.mxu0 %v4718_v60 }
 0x2a0   :  { %v485_v7 = vcombine.low %v481_v0, %v482_v1  ;;  %v1357_v0 = vld [vmem:[#allocation14 + $0x440] sm:$0xff]  ;;  %v4599_v1 = vcombine.high %v1229_v62, %v1233_v63 }
 0x2a1   :  { %v1413_v60 = vld [vmem:[#allocation14 + $0x600] sm:$0xff] }
 0x2a2   :  { %v492_v8 = vrot.slane %v485_v7, %v5883_v55 }
 0x2a4   :  { %v499_v11 = vrot.slane %v492_v8, %v5883_v55 }
 0x2a6   :  { %v501_v13 = vsub.f32 %v411_v9, %v499_v11  ;;  %v1237_v9 = vld [vmem:[#allocation14 + $0x80] sm:$0xff] }
 0x2a7   :  { %v1241_v11 = vld [vmem:[#allocation14 + $0xa0] sm:$0xff] }
 0x2a8   :  { %v512_v14 = vrot.slane %v501_v13, %v5878_v6  ;;  %v508_v15 = vrot.slane %v501_v13, %v5875_v4  ;;  %v1365_v13 = vld [vmem:[#allocation14 + $0x480] sm:$0xff] }
 0x2aa   :  { %v516_v16 = vadd.f32 %v512_v14, %v503_v2  ;;  %v515_v17 = vadd.f32 %v508_v15, %v502_v5  ;;  %v1361_v2 = vld [vmem:[#allocation14 + $0x460] sm:$0xff]  ;;  %v4598_v5 = vcombine.low %v1229_v62, %v1233_v63  ;;  %v4607_v14 = vcombine.high %v1237_v9, %v1241_v11 }
 0x2ab   :  { %v4726_v7 = vcombine.low %v1357_v0, %v1361_v2  ;;  %v4727_v8 = vcombine.high %v1357_v0, %v1361_v2  ;;  %v1369_v15 = vld [vmem:[#allocation14 + $0x4a0] sm:$0xff] }
 0x2ac   :  { %vm518_vm3 = vcmp.gt.f32.partialorder %v516_v16, 0.0  ;;  %v520_v18 = vmul.f32 0.2, %v516_v16  ;;  %vm517_vm4 = vcmp.gt.f32.partialorder %v515_v17, 0.0  ;;  %v519_v19 = vmul.f32 0.2, %v515_v17 }
 0x2ad   :  { %2842 = vmatprep.subr.bf16.mxu0 %v4727_v8  ;;  %v1417_v62 = vld [vmem:[#allocation14 + $0x620] sm:$0xff] }
 0x2ae   :  { %v522_v20 = vsel %vm518_vm3, %v516_v16, %v520_v18  ;;  %v521_v12 = vsel %vm517_vm4, %v515_v17, %v519_v19  ;;  %2843 = vmatpush1.bf16.msra.mxu0 %v4726_v7  ;;  %v4606_v16 = vcombine.low %v1237_v9, %v1241_v11  ;;  %v4734_v17 = vcombine.low %v1365_v13, %v1369_v15  ;;  %v1245_v19 = vld [vmem:[#allocation14 + $0xc0] sm:$0xff] }
 0x2af   :  { %v524_v10 = vpack.c.bf16 %v522_v20, %v522_v20  ;;  %v5893_v22 = vpack.c.bf16 %v521_v12, %v521_v12  ;;  %v4735_v18 = vcombine.high %v1365_v13, %v1369_v15  ;;  %v1249_v20 = vld [vmem:[#allocation14 + $0xe0] sm:$0xff]  ;;  %v4782_v0 = vcombine.low %v1413_v60, %v1417_v62 }
 0x2b0   :  { %v1373_v12 = vld [vmem:[#allocation14 + $0x4c0] sm:$0xff] }
 0x2b1   :  { %963 = vmatprep.mubr.bf16.mxu1 %v524_v10  ;;  %2844 = vmatprep.subr.bf16.mxu0 %v4735_v18  ;;  %v1293_v2 = vld [vmem:[#allocation14 + $0x240] sm:$0xff] }
 0x2b2   :  { %964 = vmatmul.mubr.bf16.vlgmr.msra.gmra.mrb[4].mxu1 %v5893_v22  ;;  %2845 = vmatpush1.bf16.msra.mxu0 %v4734_v17  ;;  %v1421_v7 = vld [vmem:[#allocation14 + $0x640] sm:$0xff] }
 0x2b3   :  { %973 = vmatpush1.bf16.msra.mxu1 %v5125_v21  ;;  %1004 = vmatprep.mubr.bf16.mxu1 %v524_v10  ;;  %v4615_v10 = vcombine.high %v1245_v19, %v1249_v20  ;;  %v1377_v21 = vld [vmem:[#allocation14 + $0x4e0] sm:$0xff] }
 0x2b4   :  { %974 = vmatprep.subr.bf16.mxu1 %v5130_v23  ;;  %v4742_v23 = vcombine.low %v1373_v12, %v1377_v21  ;;  %v1425_v9 = vld [vmem:[#allocation14 + $0x660] sm:$0xff] }
 0x2b5   :  { %v4790_v13 = vcombine.low %v1421_v7, %v1425_v9  ;;  %v1301_v15 = vld [vmem:[#allocation14 + $0x280] sm:$0xff] }
 0x2b6   :  { %v1429_v17 = vld [vmem:[#allocation14 + $0x680] sm:$0xff] }
 0x2b7   :  { %975 = vmatpush1.bf16.msra.mxu1 %v5128_v24  ;;  %v4743_v24 = vcombine.high %v1373_v12, %v1377_v21  ;;  %v1309_v21 = vld [vmem:[#allocation14 + $0x2c0] sm:$0xff] }
 0x2b8   :  { %976 = vmatprep.subr.bf16.mxu1 %v5133_v25  ;;  %v1253_v25 = vld [vmem:[#allocation14 + $0x100] sm:$0xff] }
 0x2b9   :  { %2846 = vmatprep.subr.bf16.mxu0 %v4743_v24 }
 0x2ba   :  { %2847 = vmatpush1.bf16.msra.mxu0 %v4742_v23  ;;  %v1437_v23 = vld [vmem:[#allocation14 + $0x6c0] sm:$0xff] }
 0x2bb   :  { %977 = vmatpush1.bf16.msra.mxu1 %v5131_v26  ;;  %v1257_v26 = vld [vmem:[#allocation14 + $0x120] sm:$0xff] }
 0x2bc   :  { %978 = vmatprep.subr.bf16.mxu1 %v5136_v27  ;;  %v1381_v27 = vld [vmem:[#allocation14 + $0x500] sm:$0xff] }
 0x2bf   :  { %979 = vmatpush1.bf16.msra.mxu1 %v5134_v28  ;;  %v4623_v28 = vcombine.high %v1253_v25, %v1257_v26 }
 0x2c0   :  { %980 = vmatprep.subr.bf16.mxu1 %v5139_v29  ;;  %v1385_v29 = vld [vmem:[#allocation14 + $0x520] sm:$0xff] }
 0x2c3   :  { %981 = vmatpush1.bf16.msra.mxu1 %v5137_v30  ;;  %v4622_v30 = vcombine.low %v1253_v25, %v1257_v26  ;;  %v1441_v25 = vld [vmem:[#allocation14 + $0x6e0] sm:$0xff] }
 0x2c4   :  { %982 = vmatprep.subr.bf16.mxu1 %v5142_v31  ;;  %v4750_v31 = vcombine.low %v1381_v27, %v1385_v29 }
 0x2c7   :  { %983 = vmatpush1.bf16.msra.mxu1 %v5140_v32  ;;  %v4751_v32 = vcombine.high %v1381_v27, %v1385_v29  ;;  %v4806_v27 = vcombine.low %v1437_v23, %v1441_v25  ;;  %v1317_v29 = vld [vmem:[#allocation14 + $0x300] sm:$0xff] }
 0x2c8   :  { %984 = vmatprep.subr.bf16.mxu1 %v5145_v33  ;;  %v1261_v33 = vld [vmem:[#allocation14 + $0x140] sm:$0xff] }
 0x2c9   :  { %2848 = vmatprep.subr.bf16.mxu0 %v4751_v32 }
 0x2ca   :  { %2849 = vmatpush1.bf16.msra.mxu0 %v4750_v31  ;;  %v1445_v31 = vld [vmem:[#allocation14 + $0x700] sm:$0xff] }
 0x2cb   :  { %985 = vmatpush1.bf16.msra.mxu1 %v5143_v34  ;;  %v1265_v34 = vld [vmem:[#allocation14 + $0x160] sm:$0xff] }
 0x2cc   :  { %986 = vmatprep.subr.bf16.mxu1 %v5148_v35  ;;  %v1389_v35 = vld [vmem:[#allocation14 + $0x540] sm:$0xff] }
 0x2cf   :  { %987 = vmatpush1.bf16.msra.mxu1 %v5146_v36  ;;  %v4631_v36 = vcombine.high %v1261_v33, %v1265_v34 }
 0x2d0   :  { %988 = vmatprep.subr.bf16.mxu1 %v5151_v37  ;;  %v1393_v37 = vld [vmem:[#allocation14 + $0x560] sm:$0xff] }
 0x2d3   :  { %989 = vmatpush1.bf16.msra.mxu1 %v5149_v38  ;;  %v4630_v38 = vcombine.low %v1261_v33, %v1265_v34  ;;  %v1449_v33 = vld [vmem:[#allocation14 + $0x720] sm:$0xff] }
 0x2d4   :  { %990 = vmatprep.subr.bf16.mxu1 %v5154_v39  ;;  %v4758_v39 = vcombine.low %v1389_v35, %v1393_v37 }
 0x2d7   :  { %991 = vmatpush1.bf16.msra.mxu1 %v5152_v40  ;;  %v4759_v40 = vcombine.high %v1389_v35, %v1393_v37  ;;  %v4814_v35 = vcombine.low %v1445_v31, %v1449_v33  ;;  %v1325_v37 = vld [vmem:[#allocation14 + $0x340] sm:$0xff] }
 0x2d8   :  { %992 = vmatprep.subr.bf16.mxu1 %v5157_v41  ;;  %v1269_v41 = vld [vmem:[#allocation14 + $0x180] sm:$0xff] }
 0x2d9   :  { %2850 = vmatprep.subr.bf16.mxu0 %v4759_v40 }
 0x2da   :  { %2851 = vmatpush1.bf16.msra.mxu0 %v4758_v39  ;;  %v1453_v39 = vld [vmem:[#allocation14 + $0x740] sm:$0xff] }
 0x2db   :  { %993 = vmatpush1.bf16.msra.mxu1 %v5155_v42  ;;  %v1273_v42 = vld [vmem:[#allocation14 + $0x1a0] sm:$0xff] }
 0x2dc   :  { %994 = vmatprep.subr.bf16.mxu1 %v5160_v43  ;;  %v1397_v43 = vld [vmem:[#allocation14 + $0x580] sm:$0xff] }
 0x2df   :  { %995 = vmatpush1.bf16.msra.mxu1 %v5158_v44  ;;  %v4639_v44 = vcombine.high %v1269_v41, %v1273_v42 }
 0x2e0   :  { %996 = vmatprep.subr.bf16.mxu1 %v5163_v45  ;;  %v1401_v45 = vld [vmem:[#allocation14 + $0x5a0] sm:$0xff] }
 0x2e3   :  { %997 = vmatpush1.bf16.msra.mxu1 %v5161_v46  ;;  %v4638_v46 = vcombine.low %v1269_v41, %v1273_v42  ;;  %v1457_v41 = vld [vmem:[#allocation14 + $0x760] sm:$0xff] }
 0x2e4   :  { %998 = vmatprep.subr.bf16.mxu1 %v5166_v47  ;;  %v4766_v47 = vcombine.low %v1397_v43, %v1401_v45 }
 0x2e7   :  { %999 = vmatpush1.bf16.msra.mxu1 %v5164_v48  ;;  %v4767_v48 = vcombine.high %v1397_v43, %v1401_v45  ;;  %v4822_v43 = vcombine.low %v1453_v39, %v1457_v41  ;;  %v5900_v45 = vld [vmem:[%s6240_s8] sm:$0xf] }
 0x2e8   :  { %1000 = vmatprep.subr.bf16.mxu1 %v5169_v49  ;;  %v1277_v49 = vld [vmem:[#allocation14 + $0x1c0] sm:$0xff] }
 0x2e9   :  { %2852 = vmatprep.subr.bf16.mxu0 %v4767_v48  ;;  %v1461_v48 = vld [vmem:[#allocation14 + $0x780] sm:$0xff] }
 0x2ea   :  { %2853 = vmatpush1.bf16.msra.mxu0 %v4766_v47  ;;  %v1337_v47 = vld [vmem:[#allocation14 + $0x3a0] sm:$0xff] }
 0x2eb   :  { %1001 = vmatpush1.bf16.msra.mxu1 %v5167_v50  ;;  %v1281_v50 = vld [vmem:[#allocation14 + $0x1e0] sm:$0xff] }
 0x2ec   :  { %1002 = vmatprep.subr.bf16.mxu1 %v5172_v51  ;;  %v1405_v51 = vld [vmem:[#allocation14 + $0x5c0] sm:$0xff]  ;;  %v4646_v54 = vcombine.low %v1277_v49, %v1281_v50 }
 0x2ed   :  { %v4774_v56 = vcombine.low %v1405_v51, %v1409_v53 }
 0x2ef   :  { %1003 = vmatpush1.bf16.msra.mxu1 %v5170_v52  ;;  %v4647_v52 = vcombine.high %v1277_v49, %v1281_v50  ;;  %v1465_v50 = vld [vmem:[#allocation14 + $0x7a0] sm:$0xff] }
 0x2f0   :  { %2799 = vmatprep.subr.bf16.mxu1 %v4591_v57  ;;  %v4775_v57 = vcombine.high %v1405_v51, %v1409_v53  ;;  %v4831_v53 = vcombine.high %v1461_v48, %v1465_v50 }
 0x2f2   :  { %1005 = vmatmul.mubr.bf16.vlgmr.msra.gmra.mrb[8].mxu1 %v5893_v22  ;;  %v4614_v22 = vcombine.low %v1245_v19, %v1249_v20  ;;  %2854 = vmatprep.subr.bf16.mxu0 %v4775_v57  ;;  %v1433_v19 = vld [vmem:[#allocation14 + $0x6a0] sm:$0xff] }
 0x2f3   :  { %2800 = vmatpush1.bf16.msra.mxu1 %v4590_v59  ;;  %v1289_v59 = vld [vmem:[#allocation14 + $0x220] sm:$0xff]  ;;  %2855 = vmatpush1.bf16.msra.mxu0 %v4774_v56  ;;  %v4798_v12 = vcombine.low %v1429_v17, %v1433_v19 }
 0x2f4   :  { %2801 = vmatprep.subr.bf16.mxu1 %v4599_v1  ;;  %v4655_v61 = vcombine.high %v1285_v58, %v1289_v59  ;;  %v4654_v63 = vcombine.low %v1285_v58, %v1289_v59  ;;  %v4783_v1 = vcombine.high %v1413_v60, %v1417_v62  ;;  %v1341_v56 = vld [vmem:[#allocation14 + $0x3c0] sm:$0xff]  ;;  %v598_v59 = vrot.slane %v5900_v45, %v5878_v6 }
 0x2f5   :  { %v1345_v57 = vld [vmem:[#allocation14 + $0x3e0] sm:$0xff] }
 0x2f6   :  { %2856 = vmatprep.subr.bf16.mxu0 %v4783_v1  ;;  %v1469_v58 = vld [vmem:[#allocation14 + $0x7c0] sm:$0xff]  ;;  %v4710_v60 = vcombine.low %v1341_v56, %v1345_v57 }
 0x2f7   :  { %2802 = vmatpush1.bf16.msra.mxu1 %v4598_v5  ;;  %v1297_v5 = vld [vmem:[#allocation14 + $0x260] sm:$0xff]  ;;  %2857 = vmatpush1.bf16.msra.mxu0 %v4782_v0 }
 0x2f8   :  { %2803 = vmatprep.subr.bf16.mxu1 %v4607_v14  ;;  %v4663_v8 = vcombine.high %v1293_v2, %v1297_v5  ;;  %v4662_v11 = vcombine.low %v1293_v2, %v1297_v5  ;;  %v4791_v14 = vcombine.high %v1421_v7, %v1425_v9  ;;  %v1473_v62 = vld [vmem:[#allocation14 + $0x7e0] sm:$0xff]  ;;  %v5910_v9 = vld [vmem:[#allocation14 + $0x8] sm:$0xff] }
 0x2f9   :  { %v4839_v0 = vcombine.high %v1469_v58, %v1473_v62 }
 0x2fa   :  { %2858 = vmatprep.subr.bf16.mxu0 %v4791_v14 }
 0x2fb   :  { %2804 = vmatpush1.bf16.msra.mxu1 %v4606_v16  ;;  %v1305_v16 = vld [vmem:[#allocation14 + $0x2a0] sm:$0xff]  ;;  %2859 = vmatpush1.bf16.msra.mxu0 %v4790_v13  ;;  %v5914_v13 = vld [vmem:[#allocation14 + $0x10] sm:$0xff] }
 0x2fc   :  { %2805 = vmatprep.subr.bf16.mxu1 %v4615_v10  ;;  %v4671_v18 = vcombine.high %v1301_v15, %v1305_v16  ;;  %v4670_v20 = vcombine.low %v1301_v15, %v1305_v16  ;;  %v4799_v10 = vcombine.high %v1429_v17, %v1433_v19 }
 0x2fe   :  { %2860 = vmatprep.subr.bf16.mxu0 %v4799_v10 }
 0x2ff   :  { %2806 = vmatpush1.bf16.msra.mxu1 %v4614_v22  ;;  %v1313_v22 = vld [vmem:[#allocation14 + $0x2e0] sm:$0xff]  ;;  %2861 = vmatpush1.bf16.msra.mxu0 %v4798_v12 }
 0x300   :  { %2807 = vmatprep.subr.bf16.mxu1 %v4623_v28  ;;  %v4679_v24 = vcombine.high %v1309_v21, %v1313_v22  ;;  %v4678_v26 = vcombine.low %v1309_v21, %v1313_v22  ;;  %v4807_v28 = vcombine.high %v1437_v23, %v1441_v25 }
 0x302   :  { %2862 = vmatprep.subr.bf16.mxu0 %v4807_v28 }
 0x303   :  { %2808 = vmatpush1.bf16.msra.mxu1 %v4622_v30  ;;  %v1321_v30 = vld [vmem:[#allocation14 + $0x320] sm:$0xff]  ;;  %2863 = vmatpush1.bf16.msra.mxu0 %v4806_v27 }
 0x304   :  { %2809 = vmatprep.subr.bf16.mxu1 %v4631_v36  ;;  %v4687_v32 = vcombine.high %v1317_v29, %v1321_v30  ;;  %v4686_v34 = vcombine.low %v1317_v29, %v1321_v30  ;;  %v4815_v36 = vcombine.high %v1445_v31, %v1449_v33 }
 0x306   :  { %2864 = vmatprep.subr.bf16.mxu0 %v4815_v36 }
 0x307   :  { %2810 = vmatpush1.bf16.msra.mxu1 %v4630_v38  ;;  %v1329_v38 = vld [vmem:[#allocation14 + $0x360] sm:$0xff]  ;;  %2865 = vmatpush1.bf16.msra.mxu0 %v4814_v35 }
 0x308   :  { %2811 = vmatprep.subr.bf16.mxu1 %v4639_v44  ;;  %v4695_v40 = vcombine.high %v1325_v37, %v1329_v38  ;;  %v4694_v42 = vcombine.low %v1325_v37, %v1329_v38  ;;  %v4823_v44 = vcombine.high %v1453_v39, %v1457_v41 }
 0x30a   :  { %2866 = vmatprep.subr.bf16.mxu0 %v4823_v44 }
 0x30b   :  { %2812 = vmatpush1.bf16.msra.mxu1 %v4638_v46  ;;  %v1333_v46 = vld [vmem:[#allocation14 + $0x380] sm:$0xff]  ;;  %2867 = vmatpush1.bf16.msra.mxu0 %v4822_v43 }
 0x30c   :  { %2813 = vmatprep.subr.bf16.mxu1 %v4647_v52  ;;  %v4703_v49 = vcombine.high %v1333_v46, %v1337_v47  ;;  %v4702_v51 = vcombine.low %v1333_v46, %v1337_v47  ;;  %v4830_v52 = vcombine.low %v1461_v48, %v1465_v50  ;;  %2868 = vmatprep.subr.bf16.mxu0 %v4831_v53 }
 0x30f   :  { %2814 = vmatpush1.bf16.msra.mxu1 %v4646_v54  ;;  %v594_v54 = vrot.slane %v5900_v45, %v5875_v4  ;;  %2869 = vmatpush1.bf16.msra.mxu0 %v4830_v52 }
 0x310   :  { %2815 = vmatprep.subr.bf16.mxu1 %v4655_v61  ;;  %v4711_v61 = vcombine.high %v1341_v56, %v1345_v57  ;;  %2870 = vmatprep.subr.bf16.mxu0 %v4839_v0 }
 0x313   :  { %2816 = vmatpush1.bf16.msra.mxu1 %v4654_v63  ;;  %v4838_v63 = vcombine.low %v1469_v58, %v1473_v62 }
 0x314   :  { %2817 = vmatprep.subr.bf16.mxu1 %v4663_v8 }
 0x315   :  { %2871 = vmatpush1.bf16.msra.mxu0 %v4838_v63 }
 0x317   :  { %2818 = vmatpush1.bf16.msra.mxu1 %v4662_v11  ;;  %v5912_v11 = vld [vmem:[#allocation14 + $0x28] sm:$0xff] }
 0x318   :  { %2819 = vmatprep.subr.bf16.mxu1 %v4671_v18  ;;  %v4593_v17 = vcombine.high %v5910_v9, %v5912_v11  ;;  %v5921_v18 = vld [vmem:[#allocation14 + $0x30] sm:$0xff]  ;;  %v4592_v12 = vcombine.low %v5910_v9, %v5912_v11 }
 0x319   :  { %v4594_v10 = vcombine.low %v5914_v13, %v5921_v18  ;;  %v4595_v23 = vcombine.high %v5914_v13, %v5921_v18 }
 0x31b   :  { %2820 = vmatpush1.bf16.msra.mxu1 %v4670_v20  ;;  %2963 = vmatprep.subr.bf16.mxu0 %v4595_v23 }
 0x31c   :  { %2821 = vmatprep.subr.bf16.mxu1 %v4679_v24 }
 0x31f   :  { %2822 = vmatpush1.bf16.msra.mxu1 %v4678_v26 }
 0x320   :  { %2823 = vmatprep.subr.bf16.mxu1 %v4687_v32 }
 0x323   :  { %2824 = vmatpush1.bf16.msra.mxu1 %v4686_v34 }
 0x324   :  { %2825 = vmatprep.subr.bf16.mxu1 %v4695_v40 }
 0x327   :  { %2826 = vmatpush1.bf16.msra.mxu1 %v4694_v42 }
 0x328   :  { %2827 = vmatprep.subr.bf16.mxu1 %v4703_v49 }
 0x32b   :  { %2828 = vmatpush1.bf16.msra.mxu1 %v4702_v51 }
 0x32c   :  { %2829 = vmatprep.subr.bf16.mxu1 %v4711_v61 }
 0x32f   :  { %2830 = vmatpush1.bf16.msra.mxu1 %v4710_v60  ;;  %v5946_v60 = vsub.s32 3, %v5872_v3 }
 0x330   :  { %2881 = vmatprep.subr.bf16.mxu1 %v4593_v17 }
 0x331   :  { %v606_v62 = vrot.slane %v5900_v45, %v5946_v60 }
 0x385   :  { %v965_v1 = vpop.f32.mrb[4].mxu1 }
 0x386   :  { %v5906_v2 = vadd.f32 %v965_v1, %v594_v54  ;;  %v967_v5 = vpop.f32.mrb[5].mxu1 }
 0x387   :  { %v5908_v7 = vadd.f32 %v967_v5, %v598_v59  ;;  %v969_v8 = vpop.f32.mrb[6].mxu1  ;;  %v5943_v59 = vsub.s32 2, %v5872_v3 }
 0x388   :  { %v1015_v14 = vrot.slane %v5906_v2, 4  ;;  %v1043_v15 = vmul.f32 %v5906_v2, %v5906_v2  ;;  %v970_v16 = vpop.f32.mrb[7].mxu1 }
 0x389   :  { %v1021_v19 = vrot.slane %v5908_v7, 4  ;;  %v1044_v20 = vmul.f32 %v5908_v7, %v5908_v7  ;;  %v602_v61 = vrot.slane %v5900_v45, %v5943_v59 }
 0x38a   :  { %v1016_v21 = vadd.f32 %v1015_v14, %v5906_v2  ;;  %v1047_v22 = vrot.slane %v1043_v15, 4 }
 0x38b   :  { %v1022_v24 = vadd.f32 %v1021_v19, %v5908_v7  ;;  %v1053_v25 = vrot.slane %v1044_v20, 4 }
 0x38c   :  { %v1017_v26 = vrot.slane %v1016_v21, 2  ;;  %v1048_v27 = vadd.f32 %v1047_v22, %v1043_v15 }
 0x38d   :  { %v1023_v28 = vrot.slane %v1022_v24, 2  ;;  %v1054_v29 = vadd.f32 %v1053_v25, %v1044_v20 }
 0x38e   :  { %v1018_v30 = vadd.f32 %v1017_v26, %v1016_v21  ;;  %v1049_v31 = vrot.slane %v1048_v27, 2 }
 0x38f   :  { %v1024_v32 = vadd.f32 %v1023_v28, %v1022_v24  ;;  %v1055_v33 = vrot.slane %v1054_v29, 2 }
 0x390   :  { %v1019_v34 = vrot.slane %v1018_v30, 1  ;;  %v1050_v35 = vadd.f32 %v1049_v31, %v1048_v27 }
 0x391   :  { %v1025_v36 = vrot.slane %v1024_v32, 1  ;;  %v1056_v37 = vadd.f32 %v1055_v33, %v1054_v29 }
 0x392   :  { %v1020_v38 = vadd.f32 %v1019_v34, %v1018_v30  ;;  %v1051_v39 = vrot.slane %v1050_v35, 1 }
 0x393   :  { %v1026_v40 = vadd.f32 %v1025_v36, %v1024_v32  ;;  %v1057_v41 = vrot.slane %v1056_v37, 1 }
 0x394   :  { %v5934_v42 = vmul.f32 0.125, %v1020_v38  ;;  %v1052_v43 = vadd.f32 %v1051_v39, %v1050_v35 }
 0x395   :  { %v5936_v44 = vmul.f32 0.125, %v1026_v40  ;;  %v1058_v46 = vadd.f32 %v1057_v41, %v1056_v37 }
 0x396   :  { %v1071_v47 = vmul.f32 0.125, %v1052_v43  ;;  %v1075_v48 = vmul.f32 %v5934_v42, %v5934_v42 }
 0x397   :  { %v1072_v49 = vmul.f32 0.125, %v1058_v46  ;;  %v1076_v50 = vmul.f32 %v5936_v44, %v5936_v44 }
 0x398   :  { %v1079_v51 = vsub.f32 %v1071_v47, %v1075_v48 }
 0x399   :  { %v1080_v52 = vsub.f32 %v1072_v49, %v1076_v50 }
 0x39a   :  { %v1083_v53 = vadd.f32 1e-05, %v1079_v51 }
 0x39b   :  { %v1084_v54 = vadd.f32 1e-05, %v1080_v52 }
 0x39c   :  { %5369 = vrsqrt.f32 %v1083_v53 }
 0x39d   :  { %5371 = vrsqrt.f32 %v1084_v54 }
 0x3a6   :  { %v5370_v56 = vpop.eup %5369 }
 0x3a7   :  { %v5372_v57 = vpop.eup %5371 }
 0x3a8   :  { %v1095_v58 = vcombine.low %v5370_v56, %v5372_v57 }
 0x3c5   :  { %v1006_v63 = vpop.f32.mrb[8].mxu1 }
 0x3c6   :  { %v5952_v0 = vadd.f32 %v1006_v63, %v602_v61  ;;  %v1008_v1 = vpop.f32.mrb[9].mxu1  ;;  %v1103_v61 = vrot.slane %v1095_v58, %v5883_v55 }
 0x3c7   :  { %v1009_v5 = vadd.f32 %v1008_v1, %v606_v62  ;;  %v1010_v8 = vpop.f32.mrb[10].mxu1  ;;  %v1013_v1 = vld [vmem:[%s6241_s9] sm:$0xf] }
 0x3c8   :  { %v1027_v14 = vrot.slane %v5952_v0, 4  ;;  %v1045_v15 = vmul.f32 %v5952_v0, %v5952_v0  ;;  %v1011_v16 = vpop.f32.mrb[11].mxu1 }
 0x3c9   :  { %v1033_v17 = vrot.slane %v1009_v5, 4  ;;  %v1046_v19 = vmul.f32 %v1009_v5, %v1009_v5 }
 0x3ca   :  { %v1028_v20 = vadd.f32 %v1027_v14, %v5952_v0  ;;  %v1059_v21 = vrot.slane %v1045_v15, 4 }
 0x3cb   :  { %v1034_v22 = vadd.f32 %v1033_v17, %v1009_v5  ;;  %v1065_v23 = vrot.slane %v1046_v19, 4 }
 0x3cc   :  { %v1029_v45 = vrot.slane %v1028_v20, 2  ;;  %v1060_v24 = vadd.f32 %v1059_v21, %v1045_v15 }
 0x3cd   :  { %v1035_v25 = vrot.slane %v1034_v22, 2  ;;  %v1066_v26 = vadd.f32 %v1065_v23, %v1046_v19 }
 0x3ce   :  { %v1030_v27 = vadd.f32 %v1029_v45, %v1028_v20  ;;  %v1061_v28 = vrot.slane %v1060_v24, 2 }
 0x3cf   :  { %v1036_v29 = vadd.f32 %v1035_v25, %v1034_v22  ;;  %v1067_v30 = vrot.slane %v1066_v26, 2 }
 0x3d0   :  { %v1031_v31 = vrot.slane %v1030_v27, 1  ;;  %v1062_v32 = vadd.f32 %v1061_v28, %v1060_v24 }
 0x3d1   :  { %v1037_v33 = vrot.slane %v1036_v29, 1  ;;  %v1068_v34 = vadd.f32 %v1067_v30, %v1066_v26 }
 0x3d2   :  { %v1032_v35 = vadd.f32 %v1031_v31, %v1030_v27  ;;  %v1063_v36 = vrot.slane %v1062_v32, 1 }
 0x3d3   :  { %v1038_v37 = vadd.f32 %v1037_v33, %v1036_v29  ;;  %v1069_v38 = vrot.slane %v1068_v34, 1 }
 0x3d4   :  { %v1041_v39 = vmul.f32 0.125, %v1032_v35  ;;  %v1064_v40 = vadd.f32 %v1063_v36, %v1062_v32 }
 0x3d5   :  { %v1042_v41 = vmul.f32 0.125, %v1038_v37  ;;  %v1070_v43 = vadd.f32 %v1069_v38, %v1068_v34  ;;  %v1230_v38 = vld [vmem:[#allocation14 + $0x48] sm:$0xff] }
 0x3d6   :  { %v1073_v46 = vmul.f32 0.125, %v1064_v40  ;;  %v1077_v47 = vmul.f32 %v1041_v39, %v1041_v39 }
 0x3d7   :  { %v1074_v48 = vmul.f32 0.125, %v1070_v43  ;;  %v1078_v49 = vmul.f32 %v1042_v41, %v1042_v41 }
 0x3d8   :  { %v1081_v50 = vsub.f32 %v1073_v46, %v1077_v47  ;;  %v1234_v46 = vld [vmem:[#allocation14 + $0x68] sm:$0xff]  ;;  %v1231_v47 = vld [vmem:[#allocation14 + $0x50] sm:$0xff] }
 0x3d9   :  { %v1082_v51 = vsub.f32 %v1074_v48, %v1078_v49  ;;  %v1235_v48 = vld [vmem:[#allocation14 + $0x70] sm:$0xff] }
 0x3da   :  { %v1085_v52 = vadd.f32 1e-05, %v1081_v50 }
 0x3db   :  { %v1086_v53 = vadd.f32 1e-05, %v1082_v51 }
 0x3dc   :  { %5373 = vrsqrt.f32 %v1085_v52 }
 0x3dd   :  { %5375 = vrsqrt.f32 %v1086_v53 }
 0x3e6   :  { %v5374_v54 = vpop.eup %5373 }
 0x3e7   :  { %v5376_v56 = vpop.eup %5375 }
 0x3e8   :  { %v1096_v57 = vcombine.low %v5374_v54, %v5376_v56  ;;  %v1238_v56 = vld [vmem:[#allocation14 + $0x88] sm:$0xff] }
 0x3ea   :  { %v1110_v62 = vrot.slane %v1096_v57, %v5883_v55  ;;  %v4601_v57 = vcombine.high %v1230_v38, %v1234_v46 }
 0x3ec   :  { %v1111_v63 = vcombine.low %v1103_v61, %v1110_v62  ;;  %v4603_v61 = vcombine.high %v1231_v47, %v1235_v48  ;;  %v1242_v62 = vld [vmem:[#allocation14 + $0xa8] sm:$0xff] }
 0x3ed   :  { %v4608_v9 = vcombine.low %v1238_v56, %v1242_v62 }
 0x3ee   :  { %v1118_v8 = vrot.slane %v1111_v63, %v5883_v55  ;;  %v1239_v63 = vld [vmem:[#allocation14 + $0x90] sm:$0xff] }
 0x3f0   :  { %v1120_v14 = vmul.f32 %v1118_v8, %v1013_v1  ;;  %v1243_v1 = vld [vmem:[#allocation14 + $0xb0] sm:$0xff]  ;;  %v4600_v8 = vcombine.low %v1230_v38, %v1234_v46 }
 0x3f1   :  { %v4610_v11 = vcombine.low %v1239_v63, %v1243_v1  ;;  %v1279_v38 = vld [vmem:[#allocation14 + $0x1d0] sm:$0xff] }
 0x3f2   :  { %v1125_v15 = vrot.slane %v1120_v14, %v5875_v4  ;;  %v1129_v16 = vrot.slane %v1120_v14, %v5878_v6  ;;  %v1133_v17 = vrot.slane %v1120_v14, %v5943_v59  ;;  %v1137_v19 = vrot.slane %v1120_v14, %v5946_v60 }
 0x3f3   :  { %v4602_v14 = vcombine.low %v1231_v47, %v1235_v48  ;;  %v1286_v47 = vld [vmem:[#allocation14 + $0x208] sm:$0xff] }
 0x3f4   :  { %v1142_v58 = vmul.f32 %v1125_v15, %v5934_v42  ;;  %v1143_v20 = vmul.f32 %v1129_v16, %v5936_v44  ;;  %v1144_v21 = vmul.f32 %v1133_v17, %v1041_v39  ;;  %v1145_v22 = vmul.f32 %v1137_v19, %v1042_v41  ;;  %v1014_v42 = vld [vmem:[%s6242_s10] sm:$0xf]  ;;  %v1290_v48 = vld [vmem:[#allocation14 + $0x228] sm:$0xff] }
 0x3f5   :  { %v1179_v23 = vmul.f32 %v1137_v19, %v1009_v5  ;;  %v1177_v45 = vmul.f32 %v1129_v16, %v5908_v7  ;;  %v1176_v24 = vmul.f32 %v1125_v15, %v5906_v2  ;;  %v1178_v25 = vmul.f32 %v1133_v17, %v5952_v0  ;;  %v1246_v17 = vld [vmem:[#allocation14 + $0xc8] sm:$0xff] }
 0x3f6   :  { %v1150_v26 = vcombine.low %v1142_v58, %v1143_v20  ;;  %v1151_v27 = vcombine.low %v1144_v21, %v1145_v22  ;;  %v4609_v15 = vcombine.high %v1238_v56, %v1242_v62  ;;  %v4611_v16 = vcombine.high %v1239_v63, %v1243_v1  ;;  %v1250_v19 = vld [vmem:[#allocation14 + $0xe8] sm:$0xff]  ;;  %v1247_v58 = vld [vmem:[#allocation14 + $0xd0] sm:$0xff] }
 0x3f7   :  { %v1251_v20 = vld [vmem:[#allocation14 + $0xf0] sm:$0xff]  ;;  %v4617_v13 = vcombine.high %v1246_v17, %v1250_v19  ;;  %v1294_v63 = vld [vmem:[#allocation14 + $0x248] sm:$0xff] }
 0x3f8   :  { %v1158_v28 = vrot.slane %v1150_v26, %v5883_v55  ;;  %v1165_v29 = vrot.slane %v1151_v27, %v5883_v55  ;;  %v4619_v18 = vcombine.high %v1247_v58, %v1251_v20  ;;  %v1255_v21 = vld [vmem:[#allocation14 + $0x110] sm:$0xff]  ;;  %v1262_v26 = vld [vmem:[#allocation14 + $0x148] sm:$0xff] }
 0x3f9   :  { %v1259_v22 = vld [vmem:[#allocation14 + $0x130] sm:$0xff]  ;;  %v1266_v27 = vld [vmem:[#allocation14 + $0x168] sm:$0xff] }
 0x3fa   :  { %v1166_v30 = vcombine.low %v1158_v28, %v1165_v29  ;;  %v1263_v28 = vld [vmem:[#allocation14 + $0x150] sm:$0xff]  ;;  %v1298_v1 = vld [vmem:[#allocation14 + $0x268] sm:$0xff] }
 0x3fb   :  { %v1267_v29 = vld [vmem:[#allocation14 + $0x170] sm:$0xff] }
 0x3fc   :  { %v1173_v44 = vrot.slane %v1166_v30, %v5883_v55 }
 0x3fe   :  { %v1175_v5 = vsub.f32 %v1014_v42, %v1173_v44  ;;  %v4626_v42 = vcombine.low %v1255_v21, %v1259_v22  ;;  %v4633_v44 = vcombine.high %v1262_v26, %v1266_v27 }
 0x400   :  { %v1196_v7 = vrot.slane %v1175_v5, %v5946_v60  ;;  %v1188_v2 = vrot.slane %v1175_v5, %v5878_v6  ;;  %v1184_v0 = vrot.slane %v1175_v5, %v5875_v4  ;;  %v1192_v31 = vrot.slane %v1175_v5, %v5943_v59 }
 0x401   :  { %v4635_v5 = vcombine.high %v1263_v28, %v1267_v29 }
 0x402   :  { %v1204_v32 = vadd.f32 %v1196_v7, %v1179_v23  ;;  %v1202_v33 = vadd.f32 %v1188_v2, %v1177_v45  ;;  %v1201_v34 = vadd.f32 %v1184_v0, %v1176_v24  ;;  %v1203_v35 = vadd.f32 %v1192_v31, %v1178_v25  ;;  %v1270_v7 = vld [vmem:[#allocation14 + $0x188] sm:$0xff]  ;;  %v1271_v0 = vld [vmem:[#allocation14 + $0x190] sm:$0xff] }
 0x403   :  { %v4616_v23 = vcombine.low %v1246_v17, %v1250_v19  ;;  %v4618_v45 = vcombine.low %v1247_v58, %v1251_v20  ;;  %v4627_v25 = vcombine.high %v1255_v21, %v1259_v22  ;;  %v1274_v2 = vld [vmem:[#allocation14 + $0x1a8] sm:$0xff]  ;;  %v1275_v31 = vld [vmem:[#allocation14 + $0x1b0] sm:$0xff]  ;;  %v4665_v17 = vcombine.high %v1294_v63, %v1298_v1 }
 0x404   :  { %vm1206_vm5 = vcmp.gt.f32.partialorder %v1202_v33, 0.0  ;;  %v1210_v36 = vmul.f32 0.2, %v1202_v33  ;;  %vm1208_vm6 = vcmp.gt.f32.partialorder %v1204_v32, 0.0  ;;  %v1212_v37 = vmul.f32 0.2, %v1204_v32 }
 0x405   :  { %vm1205_vm7 = vcmp.gt.f32.partialorder %v1201_v34, 0.0  ;;  %v1209_v39 = vmul.f32 0.2, %v1201_v34  ;;  %vm1207_vm8 = vcmp.gt.f32.partialorder %v1203_v35, 0.0  ;;  %v1211_v40 = vmul.f32 0.2, %v1203_v35 }
 0x406   :  { %v1214_v41 = vsel %vm1206_vm5, %v1202_v33, %v1210_v36  ;;  %v1216_v43 = vsel %vm1208_vm6, %v1204_v32, %v1212_v37  ;;  %v4632_v32 = vcombine.low %v1262_v26, %v1266_v27  ;;  %v4634_v33 = vcombine.low %v1263_v28, %v1267_v29  ;;  %v1278_v36 = vld [vmem:[#allocation14 + $0x1c8] sm:$0xff] }
 0x407   :  { %v5983_v49 = vpack.c.bf16 %v1214_v41, %v1214_v41  ;;  %v5985_v50 = vpack.c.bf16 %v1216_v43, %v1216_v43  ;;  %v1213_v51 = vsel %vm1205_vm7, %v1201_v34, %v1209_v39  ;;  %v1215_v52 = vsel %vm1207_vm8, %v1203_v35, %v1211_v40  ;;  %v1282_v37 = vld [vmem:[#allocation14 + $0x1e8] sm:$0xff]  ;;  %v1283_v39 = vld [vmem:[#allocation14 + $0x1f0] sm:$0xff] }
 0x408   :  { %v5987_v53 = vpack.c.bf16 %v1213_v51, %v1213_v51  ;;  %v5989_v54 = vpack.c.bf16 %v1215_v52, %v1215_v52  ;;  %v4641_v34 = vcombine.high %v1270_v7, %v1274_v2  ;;  %v4643_v35 = vcombine.high %v1271_v0, %v1275_v31  ;;  %v1287_v51 = vld [vmem:[#allocation14 + $0x210] sm:$0xff]  ;;  %v1302_v58 = vld [vmem:[#allocation14 + $0x288] sm:$0xff] }
 0x409   :  { %2831 = vmatprep.mubr.bf16.mxu1 %v5983_v49  ;;  %2872 = vmatprep.mubr.bf16.mxu0 %v5985_v50  ;;  %v4640_v40 = vcombine.low %v1270_v7, %v1274_v2  ;;  %v4642_v41 = vcombine.low %v1271_v0, %v1275_v31  ;;  %v4649_v43 = vcombine.high %v1278_v36, %v1282_v37  ;;  %v1291_v52 = vld [vmem:[#allocation14 + $0x230] sm:$0xff]  ;;  %v1306_v20 = vld [vmem:[#allocation14 + $0x2a8] sm:$0xff] }
 0x40a   :  { %2832 = vmatmul.mubr.bf16.vlgmr.msra.gmra.mrb[12].mxu1 %v5987_v53  ;;  %2873 = vmatmul.mubr.bf16.vlgmr.msra.gmra.mrb[4].mxu0 %v5989_v54  ;;  %v4651_v46 = vcombine.high %v1279_v38, %v1283_v39  ;;  %v4648_v56 = vcombine.low %v1278_v36, %v1282_v37  ;;  %v4659_v62 = vcombine.high %v1287_v51, %v1291_v52  ;;  %v1310_v21 = vld [vmem:[#allocation14 + $0x2c8] sm:$0xff] }
 0x40b   :  { %2882 = vmatpush1.bf16.msra.mxu1 %v4592_v12  ;;  %2964 = vmatpush1.bf16.msra.mxu0 %v4594_v10  ;;  %v1254_v12 = vld [vmem:[#allocation14 + $0x108] sm:$0xff] }
 0x40c   :  { %2913 = vmatprep.mubr.bf16.mxu1 %v5983_v49  ;;  %2995 = vmatprep.mubr.bf16.mxu0 %v5983_v49  ;;  %v1258_v10 = vld [vmem:[#allocation14 + $0x128] sm:$0xff] }
 0x40d   :  { %2883 = vmatprep.subr.bf16.mxu1 %v4601_v57  ;;  %2965 = vmatprep.subr.bf16.mxu0 %v4603_v61  ;;  %v4625_v24 = vcombine.high %v1254_v12, %v1258_v10  ;;  %v4624_v30 = vcombine.low %v1254_v12, %v1258_v10  ;;  %v4650_v57 = vcombine.low %v1279_v38, %v1283_v39  ;;  %v1314_v22 = vld [vmem:[#allocation14 + $0x2e8] sm:$0xff] }
 0x40e   :  { %v4657_v61 = vcombine.high %v1286_v47, %v1290_v48  ;;  %v4673_v12 = vcombine.high %v1302_v58, %v1306_v20  ;;  %v4681_v26 = vcombine.high %v1310_v21, %v1314_v22  ;;  %v1318_v28 = vld [vmem:[#allocation14 + $0x308] sm:$0xff] }
 0x40f   :  { %2884 = vmatpush1.bf16.msra.mxu1 %v4600_v8  ;;  %2966 = vmatpush1.bf16.msra.mxu0 %v4602_v14  ;;  %v1295_v8 = vld [vmem:[#allocation14 + $0x250] sm:$0xff]  ;;  %v1322_v29 = vld [vmem:[#allocation14 + $0x328] sm:$0xff] }
 0x410   :  { %2885 = vmatprep.subr.bf16.mxu1 %v4609_v15  ;;  %2967 = vmatprep.subr.bf16.mxu0 %v4611_v16  ;;  %v1299_v14 = vld [vmem:[#allocation14 + $0x270] sm:$0xff]  ;;  %v4656_v15 = vcombine.low %v1286_v47, %v1290_v48  ;;  %v4658_v16 = vcombine.low %v1287_v51, %v1291_v52  ;;  %v4689_v7 = vcombine.high %v1318_v28, %v1322_v29  ;;  %v1326_v0 = vld [vmem:[#allocation14 + $0x348] sm:$0xff] }
 0x411   :  { %v4667_v19 = vcombine.high %v1295_v8, %v1299_v14  ;;  %v1330_v31 = vld [vmem:[#allocation14 + $0x368] sm:$0xff] }
 0x412   :  { %v4697_v36 = vcombine.high %v1326_v0, %v1330_v31  ;;  %v1334_v38 = vld [vmem:[#allocation14 + $0x388] sm:$0xff] }
 0x413   :  { %2886 = vmatpush1.bf16.msra.mxu1 %v4608_v9  ;;  %2968 = vmatpush1.bf16.msra.mxu0 %v4610_v11  ;;  %v1303_v9 = vld [vmem:[#allocation14 + $0x290] sm:$0xff]  ;;  %v1338_v39 = vld [vmem:[#allocation14 + $0x3a8] sm:$0xff] }
 0x414   :  { %2887 = vmatprep.subr.bf16.mxu1 %v4617_v13  ;;  %2969 = vmatprep.subr.bf16.mxu0 %v4619_v18  ;;  %v1307_v11 = vld [vmem:[#allocation14 + $0x2b0] sm:$0xff]  ;;  %v4664_v13 = vcombine.low %v1294_v63, %v1298_v1  ;;  %v4666_v18 = vcombine.low %v1295_v8, %v1299_v14  ;;  %v4705_v47 = vcombine.high %v1334_v38, %v1338_v39  ;;  %v1342_v51 = vld [vmem:[#allocation14 + $0x3c8] sm:$0xff] }
 0x415   :  { %v4675_v10 = vcombine.high %v1303_v9, %v1307_v11  ;;  %v1346_v52 = vld [vmem:[#allocation14 + $0x3e8] sm:$0xff] }
 0x416   :  { %v4713_v63 = vcombine.high %v1342_v51, %v1346_v52  ;;  %v1350_v8 = vld [vmem:[#allocation14 + $0x408] sm:$0xff] }
 0x417   :  { %2888 = vmatpush1.bf16.msra.mxu1 %v4616_v23  ;;  %2970 = vmatpush1.bf16.msra.mxu0 %v4618_v45  ;;  %v1311_v23 = vld [vmem:[#allocation14 + $0x2d0] sm:$0xff]  ;;  %v1354_v14 = vld [vmem:[#allocation14 + $0x428] sm:$0xff] }
 0x418   :  { %2889 = vmatprep.subr.bf16.mxu1 %v4625_v24  ;;  %2971 = vmatprep.subr.bf16.mxu0 %v4627_v25  ;;  %v1315_v45 = vld [vmem:[#allocation14 + $0x2f0] sm:$0xff]  ;;  %v4672_v24 = vcombine.low %v1302_v58, %v1306_v20  ;;  %v4674_v25 = vcombine.low %v1303_v9, %v1307_v11  ;;  %v4721_v58 = vcombine.high %v1350_v8, %v1354_v14  ;;  %v1358_v9 = vld [vmem:[#allocation14 + $0x448] sm:$0xff] }
 0x419   :  { %v4683_v27 = vcombine.high %v1311_v23, %v1315_v45  ;;  %v1362_v11 = vld [vmem:[#allocation14 + $0x468] sm:$0xff] }
 0x41b   :  { %2890 = vmatpush1.bf16.msra.mxu1 %v4624_v30  ;;  %2972 = vmatpush1.bf16.msra.mxu0 %v4626_v42  ;;  %v1319_v30 = vld [vmem:[#allocation14 + $0x310] sm:$0xff] }
 0x41c   :  { %2891 = vmatprep.subr.bf16.mxu1 %v4633_v44  ;;  %2973 = vmatprep.subr.bf16.mxu0 %v4635_v5  ;;  %v1323_v42 = vld [vmem:[#allocation14 + $0x330] sm:$0xff]  ;;  %v4680_v44 = vcombine.low %v1310_v21, %v1314_v22  ;;  %v4682_v5 = vcombine.low %v1311_v23, %v1315_v45  ;;  %v4729_v21 = vcombine.high %v1358_v9, %v1362_v11  ;;  %v1366_v23 = vld [vmem:[#allocation14 + $0x488] sm:$0xff] }
 0x41d   :  { %v4691_v2 = vcombine.high %v1319_v30, %v1323_v42  ;;  %v1370_v45 = vld [vmem:[#allocation14 + $0x4a8] sm:$0xff] }
 0x41f   :  { %2892 = vmatpush1.bf16.msra.mxu1 %v4632_v32  ;;  %2974 = vmatpush1.bf16.msra.mxu0 %v4634_v33  ;;  %v1327_v32 = vld [vmem:[#allocation14 + $0x350] sm:$0xff] }
 0x420   :  { %2893 = vmatprep.subr.bf16.mxu1 %v4641_v34  ;;  %2975 = vmatprep.subr.bf16.mxu0 %v4643_v35  ;;  %v1331_v33 = vld [vmem:[#allocation14 + $0x370] sm:$0xff]  ;;  %v4688_v34 = vcombine.low %v1318_v28, %v1322_v29  ;;  %v4690_v35 = vcombine.low %v1319_v30, %v1323_v42  ;;  %v4737_v28 = vcombine.high %v1366_v23, %v1370_v45  ;;  %v1374_v30 = vld [vmem:[#allocation14 + $0x4c8] sm:$0xff] }
 0x421   :  { %v4699_v37 = vcombine.high %v1327_v32, %v1331_v33  ;;  %v1378_v42 = vld [vmem:[#allocation14 + $0x4e8] sm:$0xff] }
 0x423   :  { %2894 = vmatpush1.bf16.msra.mxu1 %v4640_v40  ;;  %2976 = vmatpush1.bf16.msra.mxu0 %v4642_v41  ;;  %v1335_v40 = vld [vmem:[#allocation14 + $0x390] sm:$0xff] }
 0x424   :  { %2895 = vmatprep.subr.bf16.mxu1 %v4649_v43  ;;  %2977 = vmatprep.subr.bf16.mxu0 %v4651_v46  ;;  %v1339_v41 = vld [vmem:[#allocation14 + $0x3b0] sm:$0xff]  ;;  %v4696_v43 = vcombine.low %v1326_v0, %v1330_v31  ;;  %v4698_v46 = vcombine.low %v1327_v32, %v1331_v33  ;;  %v4745_v0 = vcombine.high %v1374_v30, %v1378_v42  ;;  %v1382_v32 = vld [vmem:[#allocation14 + $0x508] sm:$0xff] }
 0x425   :  { %v4707_v48 = vcombine.high %v1335_v40, %v1339_v41  ;;  %v1386_v33 = vld [vmem:[#allocation14 + $0x528] sm:$0xff] }
 0x427   :  { %2896 = vmatpush1.bf16.msra.mxu1 %v4648_v56  ;;  %2978 = vmatpush1.bf16.msra.mxu0 %v4650_v57  ;;  %v1343_v56 = vld [vmem:[#allocation14 + $0x3d0] sm:$0xff] }
 0x428   :  { %2897 = vmatprep.subr.bf16.mxu1 %v4657_v61  ;;  %2979 = vmatprep.subr.bf16.mxu0 %v4659_v62  ;;  %v1347_v57 = vld [vmem:[#allocation14 + $0x3f0] sm:$0xff]  ;;  %v4704_v61 = vcombine.low %v1334_v38, %v1338_v39  ;;  %v4706_v62 = vcombine.low %v1335_v40, %v1339_v41  ;;  %v4753_v38 = vcombine.high %v1382_v32, %v1386_v33  ;;  %v1390_v40 = vld [vmem:[#allocation14 + $0x548] sm:$0xff] }
 0x429   :  { %v4715_v1 = vcombine.high %v1343_v56, %v1347_v57  ;;  %v1394_v41 = vld [vmem:[#allocation14 + $0x568] sm:$0xff] }
 0x42b   :  { %2898 = vmatpush1.bf16.msra.mxu1 %v4656_v15  ;;  %2980 = vmatpush1.bf16.msra.mxu0 %v4658_v16  ;;  %v1351_v15 = vld [vmem:[#allocation14 + $0x410] sm:$0xff] }
 0x42c   :  { %2899 = vmatprep.subr.bf16.mxu1 %v4665_v17  ;;  %2981 = vmatprep.subr.bf16.mxu0 %v4667_v19  ;;  %v1355_v16 = vld [vmem:[#allocation14 + $0x430] sm:$0xff]  ;;  %v4712_v17 = vcombine.low %v1342_v51, %v1346_v52  ;;  %v4714_v19 = vcombine.low %v1343_v56, %v1347_v57  ;;  %v4761_v51 = vcombine.high %v1390_v40, %v1394_v41  ;;  %v1398_v56 = vld [vmem:[#allocation14 + $0x588] sm:$0xff] }
 0x42d   :  { %v4723_v20 = vcombine.high %v1351_v15, %v1355_v16  ;;  %v1402_v57 = vld [vmem:[#allocation14 + $0x5a8] sm:$0xff] }
 0x42f   :  { %2900 = vmatpush1.bf16.msra.mxu1 %v4664_v13  ;;  %2982 = vmatpush1.bf16.msra.mxu0 %v4666_v18  ;;  %v1359_v13 = vld [vmem:[#allocation14 + $0x450] sm:$0xff] }
 0x430   :  { %2901 = vmatprep.subr.bf16.mxu1 %v4673_v12  ;;  %2983 = vmatprep.subr.bf16.mxu0 %v4675_v10  ;;  %v1363_v18 = vld [vmem:[#allocation14 + $0x470] sm:$0xff]  ;;  %v4720_v12 = vcombine.low %v1350_v8, %v1354_v14  ;;  %v4722_v10 = vcombine.low %v1351_v15, %v1355_v16  ;;  %v4769_v8 = vcombine.high %v1398_v56, %v1402_v57  ;;  %v1406_v15 = vld [vmem:[#allocation14 + $0x5c8] sm:$0xff] }
 0x431   :  { %v4731_v22 = vcombine.high %v1359_v13, %v1363_v18  ;;  %v1410_v16 = vld [vmem:[#allocation14 + $0x5e8] sm:$0xff] }
 0x433   :  { %2902 = vmatpush1.bf16.msra.mxu1 %v4672_v24  ;;  %2984 = vmatpush1.bf16.msra.mxu0 %v4674_v25  ;;  %v1367_v24 = vld [vmem:[#allocation14 + $0x490] sm:$0xff] }
 0x434   :  { %2903 = vmatprep.subr.bf16.mxu1 %v4681_v26  ;;  %2985 = vmatprep.subr.bf16.mxu0 %v4683_v27  ;;  %v1371_v25 = vld [vmem:[#allocation14 + $0x4b0] sm:$0xff]  ;;  %v4728_v26 = vcombine.low %v1358_v9, %v1362_v11  ;;  %v4730_v27 = vcombine.low %v1359_v13, %v1363_v18  ;;  %v4777_v9 = vcombine.high %v1406_v15, %v1410_v16  ;;  %v1414_v13 = vld [vmem:[#allocation14 + $0x608] sm:$0xff] }
 0x435   :  { %v4739_v29 = vcombine.high %v1367_v24, %v1371_v25  ;;  %v1418_v18 = vld [vmem:[#allocation14 + $0x628] sm:$0xff] }
 0x437   :  { %2904 = vmatpush1.bf16.msra.mxu1 %v4680_v44  ;;  %2986 = vmatpush1.bf16.msra.mxu0 %v4682_v5  ;;  %v1375_v44 = vld [vmem:[#allocation14 + $0x4d0] sm:$0xff] }
 0x438   :  { %2905 = vmatprep.subr.bf16.mxu1 %v4689_v7  ;;  %2987 = vmatprep.subr.bf16.mxu0 %v4691_v2  ;;  %v1379_v5 = vld [vmem:[#allocation14 + $0x4f0] sm:$0xff]  ;;  %v4736_v7 = vcombine.low %v1366_v23, %v1370_v45  ;;  %v4738_v2 = vcombine.low %v1367_v24, %v1371_v25  ;;  %v4785_v23 = vcombine.high %v1414_v13, %v1418_v18  ;;  %v1422_v24 = vld [vmem:[#allocation14 + $0x648] sm:$0xff] }
 0x439   :  { %v4747_v31 = vcombine.high %v1375_v44, %v1379_v5  ;;  %v1426_v25 = vld [vmem:[#allocation14 + $0x668] sm:$0xff] }
 0x43b   :  { %2906 = vmatpush1.bf16.msra.mxu1 %v4688_v34  ;;  %2988 = vmatpush1.bf16.msra.mxu0 %v4690_v35  ;;  %v1383_v34 = vld [vmem:[#allocation14 + $0x510] sm:$0xff] }
 0x43c   :  { %2907 = vmatprep.subr.bf16.mxu1 %v4697_v36  ;;  %2989 = vmatprep.subr.bf16.mxu0 %v4699_v37  ;;  %v1387_v35 = vld [vmem:[#allocation14 + $0x530] sm:$0xff]  ;;  %v4744_v36 = vcombine.low %v1374_v30, %v1378_v42  ;;  %v4746_v37 = vcombine.low %v1375_v44, %v1379_v5  ;;  %v4793_v30 = vcombine.high %v1422_v24, %v1426_v25  ;;  %v1430_v44 = vld [vmem:[#allocation14 + $0x688] sm:$0xff] }
 0x43d   :  { %v4755_v39 = vcombine.high %v1383_v34, %v1387_v35  ;;  %v1434_v5 = vld [vmem:[#allocation14 + $0x6a8] sm:$0xff] }
 0x43f   :  { %2908 = vmatpush1.bf16.msra.mxu1 %v4696_v43  ;;  %2990 = vmatpush1.bf16.msra.mxu0 %v4698_v46  ;;  %v1391_v43 = vld [vmem:[#allocation14 + $0x550] sm:$0xff] }
 0x440   :  { %2909 = vmatprep.subr.bf16.mxu1 %v4705_v47  ;;  %2991 = vmatprep.subr.bf16.mxu0 %v4707_v48  ;;  %v1395_v46 = vld [vmem:[#allocation14 + $0x570] sm:$0xff]  ;;  %v4752_v47 = vcombine.low %v1382_v32, %v1386_v33  ;;  %v4754_v48 = vcombine.low %v1383_v34, %v1387_v35  ;;  %v4801_v32 = vcombine.high %v1430_v44, %v1434_v5  ;;  %v1438_v34 = vld [vmem:[#allocation14 + $0x6c8] sm:$0xff] }
 0x441   :  { %v4763_v52 = vcombine.high %v1391_v43, %v1395_v46  ;;  %v1442_v35 = vld [vmem:[#allocation14 + $0x6e8] sm:$0xff] }
 0x443   :  { %2910 = vmatpush1.bf16.msra.mxu1 %v4704_v61  ;;  %2992 = vmatpush1.bf16.msra.mxu0 %v4706_v62  ;;  %v1399_v61 = vld [vmem:[#allocation14 + $0x590] sm:$0xff] }
 0x444   :  { %2911 = vmatprep.subr.bf16.mxu1 %v4713_v63  ;;  %2993 = vmatprep.subr.bf16.mxu0 %v4715_v1  ;;  %v1403_v62 = vld [vmem:[#allocation14 + $0x5b0] sm:$0xff]  ;;  %v4760_v63 = vcombine.low %v1390_v40, %v1394_v41  ;;  %v4762_v1 = vcombine.low %v1391_v43, %v1395_v46  ;;  %v4809_v40 = vcombine.high %v1438_v34, %v1442_v35  ;;  %v1446_v43 = vld [vmem:[#allocation14 + $0x708] sm:$0xff] }
 0x445   :  { %v4771_v14 = vcombine.high %v1399_v61, %v1403_v62  ;;  %v1450_v46 = vld [vmem:[#allocation14 + $0x728] sm:$0xff] }
 0x447   :  { %2912 = vmatpush1.bf16.msra.mxu1 %v4712_v17  ;;  %2994 = vmatpush1.bf16.msra.mxu0 %v4714_v19  ;;  %v1407_v17 = vld [vmem:[#allocation14 + $0x5d0] sm:$0xff] }
 0x448   :  { %2922 = vmatprep.subr.bf16.mxu1 %v4721_v58  ;;  %3004 = vmatprep.subr.bf16.mxu0 %v4723_v20  ;;  %v1411_v19 = vld [vmem:[#allocation14 + $0x5f0] sm:$0xff]  ;;  %v4768_v58 = vcombine.low %v1398_v56, %v1402_v57  ;;  %v4770_v20 = vcombine.low %v1399_v61, %v1403_v62  ;;  %v4817_v56 = vcombine.high %v1446_v43, %v1450_v46  ;;  %v1454_v61 = vld [vmem:[#allocation14 + $0x748] sm:$0xff] }
 0x449   :  { %v4779_v11 = vcombine.high %v1407_v17, %v1411_v19  ;;  %v1458_v62 = vld [vmem:[#allocation14 + $0x768] sm:$0xff] }
 0x44a   :  { %2914 = vmatmul.mubr.bf16.vlgmr.msra.gmra.mrb[16].mxu1 %v5987_v53  ;;  %2996 = vmatmul.mubr.bf16.vlgmr.msra.gmra.mrb[8].mxu0 %v5987_v53 }
 0x44b   :  { %2923 = vmatpush1.bf16.msra.mxu1 %v4720_v12  ;;  %2954 = vmatprep.mubr.bf16.mxu1 %v5985_v50  ;;  %v1415_v12 = vld [vmem:[#allocation14 + $0x610] sm:$0xff] }
 0x44c   :  { %3005 = vmatpush1.bf16.msra.mxu0 %v4722_v10  ;;  %3036 = vmatprep.mubr.bf16.mxu0 %v5985_v50  ;;  %v1419_v10 = vld [vmem:[#allocation14 + $0x630] sm:$0xff] }
 0x44d   :  { %2924 = vmatprep.subr.bf16.mxu1 %v4729_v21  ;;  %3006 = vmatprep.subr.bf16.mxu0 %v4731_v22  ;;  %v4776_v21 = vcombine.low %v1406_v15, %v1410_v16  ;;  %v4778_v22 = vcombine.low %v1407_v17, %v1411_v19  ;;  %v4787_v45 = vcombine.high %v1415_v12, %v1419_v10  ;;  %v1462_v17 = vld [vmem:[#allocation14 + $0x788] sm:$0xff] }
 0x44e   :  { %v4825_v15 = vcombine.high %v1454_v61, %v1458_v62  ;;  %v1466_v19 = vld [vmem:[#allocation14 + $0x7a8] sm:$0xff] }
 0x44f   :  { %2925 = vmatpush1.bf16.msra.mxu1 %v4728_v26  ;;  %v1423_v26 = vld [vmem:[#allocation14 + $0x650] sm:$0xff] }
 0x450   :  { %3007 = vmatpush1.bf16.msra.mxu0 %v4730_v27  ;;  %2926 = vmatprep.subr.bf16.mxu1 %v4737_v28  ;;  %v1427_v27 = vld [vmem:[#allocation14 + $0x670] sm:$0xff]  ;;  %v4784_v28 = vcombine.low %v1414_v13, %v1418_v18  ;;  %v4833_v13 = vcombine.high %v1462_v17, %v1466_v19 }
 0x451   :  { %3008 = vmatprep.subr.bf16.mxu0 %v4739_v29  ;;  %v4786_v29 = vcombine.low %v1415_v12, %v1419_v10  ;;  %v4795_v42 = vcombine.high %v1423_v26, %v1427_v27  ;;  %v1470_v12 = vld [vmem:[#allocation14 + $0x7c8] sm:$0xff] }
 0x452   :  { %v1474_v10 = vld [vmem:[#allocation14 + $0x7e8] sm:$0xff] }
 0x453   :  { %2927 = vmatpush1.bf16.msra.mxu1 %v4736_v7  ;;  %v1431_v7 = vld [vmem:[#allocation14 + $0x690] sm:$0xff] }
 0x454   :  { %3009 = vmatpush1.bf16.msra.mxu0 %v4738_v2  ;;  %2928 = vmatprep.subr.bf16.mxu1 %v4745_v0  ;;  %v1435_v2 = vld [vmem:[#allocation14 + $0x6b0] sm:$0xff]  ;;  %v4792_v0 = vcombine.low %v1422_v24, %v1426_v25  ;;  %v4841_v24 = vcombine.high %v1470_v12, %v1474_v10 }
 0x455   :  { %3010 = vmatprep.subr.bf16.mxu0 %v4747_v31  ;;  %v4794_v31 = vcombine.low %v1423_v26, %v1427_v27  ;;  %v4803_v33 = vcombine.high %v1431_v7, %v1435_v2  ;;  %v1224_v26 = vld [vmem:[#allocation14 + $0x18] sm:$0xff] }
 0x456   :  { %v1228_v27 = vld [vmem:[#allocation14 + $0x38] sm:$0xff] }
 0x457   :  { %2929 = vmatpush1.bf16.msra.mxu1 %v4744_v36  ;;  %v1439_v36 = vld [vmem:[#allocation14 + $0x6d0] sm:$0xff] }
 0x458   :  { %3011 = vmatpush1.bf16.msra.mxu0 %v4746_v37  ;;  %2930 = vmatprep.subr.bf16.mxu1 %v4753_v38  ;;  %v1443_v37 = vld [vmem:[#allocation14 + $0x6f0] sm:$0xff]  ;;  %v4800_v38 = vcombine.low %v1430_v44, %v1434_v5  ;;  %v1236_v44 = vld [vmem:[#allocation14 + $0x78] sm:$0xff]  ;;  %v4596_v5 = vcombine.low %v1224_v26, %v1228_v27 }
 0x459   :  { %3012 = vmatprep.subr.bf16.mxu0 %v4755_v39  ;;  %v4802_v39 = vcombine.low %v1431_v7, %v1435_v2  ;;  %v4811_v41 = vcombine.high %v1439_v36, %v1443_v37  ;;  %v1240_v2 = vld [vmem:[#allocation14 + $0x98] sm:$0xff] }
 0x45b   :  { %2931 = vmatpush1.bf16.msra.mxu1 %v4752_v47  ;;  %v1447_v47 = vld [vmem:[#allocation14 + $0x710] sm:$0xff] }
 0x45c   :  { %3013 = vmatpush1.bf16.msra.mxu0 %v4754_v48  ;;  %2932 = vmatprep.subr.bf16.mxu1 %v4761_v51  ;;  %v1451_v48 = vld [vmem:[#allocation14 + $0x730] sm:$0xff]  ;;  %v4808_v51 = vcombine.low %v1438_v34, %v1442_v35  ;;  %v1252_v34 = vld [vmem:[#allocation14 + $0xf8] sm:$0xff] }
 0x45d   :  { %3014 = vmatprep.subr.bf16.mxu0 %v4763_v52  ;;  %v4810_v52 = vcombine.low %v1439_v36, %v1443_v37  ;;  %v4819_v57 = vcombine.high %v1447_v47, %v1451_v48  ;;  %v1256_v37 = vld [vmem:[#allocation14 + $0x118] sm:$0xff] }
 0x45f   :  { %2933 = vmatpush1.bf16.msra.mxu1 %v4760_v63  ;;  %v1455_v63 = vld [vmem:[#allocation14 + $0x750] sm:$0xff] }
 0x460   :  { %3015 = vmatpush1.bf16.msra.mxu0 %v4762_v1  ;;  %2934 = vmatprep.subr.bf16.mxu1 %v4769_v8  ;;  %v1459_v1 = vld [vmem:[#allocation14 + $0x770] sm:$0xff]  ;;  %v4816_v8 = vcombine.low %v1446_v43, %v1450_v46  ;;  %v1268_v43 = vld [vmem:[#allocation14 + $0x178] sm:$0xff] }
 0x461   :  { %3016 = vmatprep.subr.bf16.mxu0 %v4771_v14  ;;  %v4818_v14 = vcombine.low %v1447_v47, %v1451_v48  ;;  %v4827_v16 = vcombine.high %v1455_v63, %v1459_v1  ;;  %v1272_v47 = vld [vmem:[#allocation14 + $0x198] sm:$0xff] }
 0x462   :  { %v1276_v48 = vld [vmem:[#allocation14 + $0x1b8] sm:$0xff] }
 0x463   :  { %2935 = vmatpush1.bf16.msra.mxu1 %v4768_v58  ;;  %v1463_v58 = vld [vmem:[#allocation14 + $0x790] sm:$0xff] }
 0x464   :  { %3017 = vmatpush1.bf16.msra.mxu0 %v4770_v20  ;;  %2936 = vmatprep.subr.bf16.mxu1 %v4777_v9  ;;  %v1467_v20 = vld [vmem:[#allocation14 + $0x7b0] sm:$0xff]  ;;  %v4824_v9 = vcombine.low %v1454_v61, %v1458_v62  ;;  %v4644_v61 = vcombine.low %v1272_v47, %v1276_v48 }
 0x465   :  { %3018 = vmatprep.subr.bf16.mxu0 %v4779_v11  ;;  %v4826_v11 = vcombine.low %v1455_v63, %v1459_v1  ;;  %v4835_v18 = vcombine.high %v1463_v58, %v1467_v20  ;;  %v1288_v63 = vld [vmem:[#allocation14 + $0x218] sm:$0xff] }
 0x466   :  { %v1292_v1 = vld [vmem:[#allocation14 + $0x238] sm:$0xff] }
 0x467   :  { %2937 = vmatpush1.bf16.msra.mxu1 %v4776_v21  ;;  %v1471_v21 = vld [vmem:[#allocation14 + $0x7d0] sm:$0xff] }
 0x468   :  { %3019 = vmatpush1.bf16.msra.mxu0 %v4778_v22  ;;  %2938 = vmatprep.subr.bf16.mxu1 %v4785_v23  ;;  %v1475_v22 = vld [vmem:[#allocation14 + $0x7f0] sm:$0xff]  ;;  %v4832_v23 = vcombine.low %v1462_v17, %v1466_v19  ;;  %v4660_v17 = vcombine.low %v1288_v63, %v1292_v1 }
 0x469   :  { %3020 = vmatprep.subr.bf16.mxu0 %v4787_v45  ;;  %v4834_v45 = vcombine.low %v1463_v58, %v1467_v20  ;;  %v4843_v25 = vcombine.high %v1471_v21, %v1475_v22  ;;  %v1304_v58 = vld [vmem:[#allocation14 + $0x298] sm:$0xff] }
 0x46a   :  { %v1308_v20 = vld [vmem:[#allocation14 + $0x2b8] sm:$0xff] }
 0x46b   :  { %2939 = vmatpush1.bf16.msra.mxu1 %v4784_v28  ;;  %v4840_v28 = vcombine.low %v1470_v12, %v1474_v10  ;;  %v4676_v12 = vcombine.low %v1304_v58, %v1308_v20 }
 0x46c   :  { %3021 = vmatpush1.bf16.msra.mxu0 %v4786_v29  ;;  %2940 = vmatprep.subr.bf16.mxu1 %v4793_v30  ;;  %v4842_v29 = vcombine.low %v1471_v21, %v1475_v22  ;;  %v4597_v30 = vcombine.high %v1224_v26, %v1228_v27  ;;  %v1320_v21 = vld [vmem:[#allocation14 + $0x318] sm:$0xff] }
 0x46d   :  { %3022 = vmatprep.subr.bf16.mxu0 %v4795_v42  ;;  %v1232_v42 = vld [vmem:[#allocation14 + $0x58] sm:$0xff] }
 0x46e   :  { %v4605_v7 = vcombine.high %v1232_v42, %v1236_v44  ;;  %v1324_v22 = vld [vmem:[#allocation14 + $0x338] sm:$0xff] }
 0x46f   :  { %2941 = vmatpush1.bf16.msra.mxu1 %v4792_v0  ;;  %v1244_v0 = vld [vmem:[#allocation14 + $0xb8] sm:$0xff]  ;;  %v4692_v26 = vcombine.low %v1320_v21, %v1324_v22 }
 0x470   :  { %3023 = vmatpush1.bf16.msra.mxu0 %v4794_v31  ;;  %2942 = vmatprep.subr.bf16.mxu1 %v4801_v32  ;;  %v4604_v31 = vcombine.low %v1232_v42, %v1236_v44  ;;  %v4613_v32 = vcombine.high %v1240_v2, %v1244_v0  ;;  %v4612_v35 = vcombine.low %v1240_v2, %v1244_v0  ;;  %v1344_v44 = vld [vmem:[#allocation14 + $0x3d8] sm:$0xff] }
 0x471   :  { %3024 = vmatprep.subr.bf16.mxu0 %v4803_v33  ;;  %v1248_v33 = vld [vmem:[#allocation14 + $0xd8] sm:$0xff] }
 0x472   :  { %v4621_v36 = vcombine.high %v1248_v33, %v1252_v34  ;;  %v1352_v0 = vld [vmem:[#allocation14 + $0x418] sm:$0xff] }
 0x473   :  { %2943 = vmatpush1.bf16.msra.mxu1 %v4800_v38  ;;  %v1260_v38 = vld [vmem:[#allocation14 + $0x138] sm:$0xff] }
 0x474   :  { %3025 = vmatpush1.bf16.msra.mxu0 %v4802_v39  ;;  %2944 = vmatprep.subr.bf16.mxu1 %v4809_v40  ;;  %v4620_v39 = vcombine.low %v1248_v33, %v1252_v34  ;;  %v4629_v40 = vcombine.high %v1256_v37, %v1260_v38  ;;  %v4628_v46 = vcombine.low %v1256_v37, %v1260_v38  ;;  %v1360_v34 = vld [vmem:[#allocation14 + $0x458] sm:$0xff] }
 0x475   :  { %3026 = vmatprep.subr.bf16.mxu0 %v4811_v41  ;;  %v1264_v41 = vld [vmem:[#allocation14 + $0x158] sm:$0xff] }
 0x476   :  { %v1368_v38 = vld [vmem:[#allocation14 + $0x498] sm:$0xff] }
 0x477   :  { %2945 = vmatpush1.bf16.msra.mxu1 %v4808_v51  ;;  %v4636_v51 = vcombine.low %v1264_v41, %v1268_v43 }
 0x478   :  { %3027 = vmatpush1.bf16.msra.mxu0 %v4810_v52  ;;  %2946 = vmatprep.subr.bf16.mxu1 %v4817_v56  ;;  %v4645_v52 = vcombine.high %v1272_v47, %v1276_v48  ;;  %v1280_v56 = vld [vmem:[#allocation14 + $0x1d8] sm:$0xff] }
 0x479   :  { %3028 = vmatprep.subr.bf16.mxu0 %v4819_v57  ;;  %v1284_v57 = vld [vmem:[#allocation14 + $0x1f8] sm:$0xff] }
 0x47a   :  { %v4653_v62 = vcombine.high %v1280_v56, %v1284_v57  ;;  %v1384_v48 = vld [vmem:[#allocation14 + $0x518] sm:$0xff] }
 0x47b   :  { %2947 = vmatpush1.bf16.msra.mxu1 %v4816_v8  ;;  %v4652_v8 = vcombine.low %v1280_v56, %v1284_v57  ;;  %v1392_v57 = vld [vmem:[#allocation14 + $0x558] sm:$0xff] }
 0x47c   :  { %3029 = vmatpush1.bf16.msra.mxu0 %v4818_v14  ;;  %2948 = vmatprep.subr.bf16.mxu1 %v4825_v15  ;;  %v4661_v14 = vcombine.high %v1288_v63, %v1292_v1  ;;  %v1296_v15 = vld [vmem:[#allocation14 + $0x258] sm:$0xff] }
 0x47d   :  { %3030 = vmatprep.subr.bf16.mxu0 %v4827_v16  ;;  %v1300_v16 = vld [vmem:[#allocation14 + $0x278] sm:$0xff] }
 0x47e   :  { %v4669_v19 = vcombine.high %v1296_v15, %v1300_v16  ;;  %v1400_v63 = vld [vmem:[#allocation14 + $0x598] sm:$0xff] }
 0x47f   :  { %2949 = vmatpush1.bf16.msra.mxu1 %v4824_v9  ;;  %v4668_v9 = vcombine.low %v1296_v15, %v1300_v16  ;;  %v1404_v1 = vld [vmem:[#allocation14 + $0x5b8] sm:$0xff] }
 0x480   :  { %3031 = vmatpush1.bf16.msra.mxu0 %v4826_v11  ;;  %2950 = vmatprep.subr.bf16.mxu1 %v4833_v13  ;;  %v4677_v11 = vcombine.high %v1304_v58, %v1308_v20  ;;  %v1312_v13 = vld [vmem:[#allocation14 + $0x2d8] sm:$0xff]  ;;  %v4773_v16 = vcombine.high %v1400_v63, %v1404_v1 }
 0x481   :  { %3032 = vmatprep.subr.bf16.mxu0 %v4835_v18  ;;  %v1316_v18 = vld [vmem:[#allocation14 + $0x2f8] sm:$0xff] }
 0x482   :  { %v4685_v10 = vcombine.high %v1312_v13, %v1316_v18  ;;  %v1408_v58 = vld [vmem:[#allocation14 + $0x5d8] sm:$0xff] }
 0x483   :  { %2951 = vmatpush1.bf16.msra.mxu1 %v4832_v23  ;;  %v4684_v23 = vcombine.low %v1312_v13, %v1316_v18  ;;  %v1412_v20 = vld [vmem:[#allocation14 + $0x5f8] sm:$0xff] }
 0x484   :  { %3033 = vmatpush1.bf16.msra.mxu0 %v4834_v45  ;;  %2952 = vmatprep.subr.bf16.mxu1 %v4841_v24  ;;  %v4693_v45 = vcombine.high %v1320_v21, %v1324_v22  ;;  %v1328_v24 = vld [vmem:[#allocation14 + $0x358] sm:$0xff]  ;;  %v4772_v21 = vcombine.low %v1400_v63, %v1404_v1 }
 0x485   :  { %3034 = vmatprep.subr.bf16.mxu0 %v4843_v25  ;;  %v1332_v25 = vld [vmem:[#allocation14 + $0x378] sm:$0xff] }
 0x486   :  { %v4701_v27 = vcombine.high %v1328_v24, %v1332_v25 }
 0x487   :  { %2953 = vmatpush1.bf16.msra.mxu1 %v4840_v28  ;;  %v1336_v28 = vld [vmem:[#allocation14 + $0x398] sm:$0xff] }
 0x488   :  { %3035 = vmatpush1.bf16.msra.mxu0 %v4842_v29  ;;  %3045 = vmatprep.subr.bf16.mxu1 %v4597_v30  ;;  %v1340_v29 = vld [vmem:[#allocation14 + $0x3b8] sm:$0xff]  ;;  %v4700_v30 = vcombine.low %v1328_v24, %v1332_v25  ;;  %v4781_v24 = vcombine.high %v1408_v58, %v1412_v20 }
 0x489   :  { %v4709_v42 = vcombine.high %v1336_v28, %v1340_v29 }
 0x48a   :  { %2955 = vmatmul.mubr.bf16.vlgmr.msra.gmra.mrb[16].mxu1 %v5989_v54 }
 0x48b   :  { %3037 = vmatmul.mubr.bf16.vlgmr.msra.gmra.mrb[8].mxu0 %v5989_v54  ;;  %3046 = vmatpush1.bf16.msra.mxu1 %v4596_v5  ;;  %v1348_v5 = vld [vmem:[#allocation14 + $0x3f8] sm:$0xff] }
 0x48c   :  { %3077 = vmatprep.mubr.bf16.mxu1 %v5983_v49  ;;  %3047 = vmatprep.subr.bf16.mxu1 %v4605_v7  ;;  %v4637_v49 = vcombine.high %v1264_v41, %v1268_v43  ;;  %v4708_v7 = vcombine.low %v1336_v28, %v1340_v29  ;;  %v4717_v2 = vcombine.high %v1344_v44, %v1348_v5  ;;  %v1376_v43 = vld [vmem:[#allocation14 + $0x4d8] sm:$0xff] }
 0x48f   :  { %3048 = vmatpush1.bf16.msra.mxu1 %v4604_v31  ;;  %v1356_v31 = vld [vmem:[#allocation14 + $0x438] sm:$0xff] }
 0x490   :  { %3049 = vmatprep.subr.bf16.mxu1 %v4613_v32  ;;  %v4716_v32 = vcombine.low %v1344_v44, %v1348_v5  ;;  %v4725_v33 = vcombine.high %v1352_v0, %v1356_v31  ;;  %v4780_v44 = vcombine.low %v1408_v58, %v1412_v20 }
 0x493   :  { %3050 = vmatpush1.bf16.msra.mxu1 %v4612_v35  ;;  %v1364_v35 = vld [vmem:[#allocation14 + $0x478] sm:$0xff] }
 0x494   :  { %3051 = vmatprep.subr.bf16.mxu1 %v4621_v36  ;;  %v4724_v36 = vcombine.low %v1352_v0, %v1356_v31  ;;  %v4733_v37 = vcombine.high %v1360_v34, %v1364_v35 }
 0x497   :  { %3052 = vmatpush1.bf16.msra.mxu1 %v4620_v39  ;;  %v1372_v39 = vld [vmem:[#allocation14 + $0x4b8] sm:$0xff] }
 0x498   :  { %3053 = vmatprep.subr.bf16.mxu1 %v4629_v40  ;;  %v4732_v40 = vcombine.low %v1360_v34, %v1364_v35  ;;  %v4741_v41 = vcombine.high %v1368_v38, %v1372_v39 }
 0x49b   :  { %3054 = vmatpush1.bf16.msra.mxu1 %v4628_v46  ;;  %v1380_v46 = vld [vmem:[#allocation14 + $0x4f8] sm:$0xff] }
 0x49c   :  { %3055 = vmatprep.subr.bf16.mxu1 %v4637_v49  ;;  %v4740_v49 = vcombine.low %v1368_v38, %v1372_v39  ;;  %v4749_v47 = vcombine.high %v1376_v43, %v1380_v46 }
 0x49f   :  { %3056 = vmatpush1.bf16.msra.mxu1 %v4636_v51  ;;  %v1388_v51 = vld [vmem:[#allocation14 + $0x538] sm:$0xff] }
 0x4a0   :  { %3057 = vmatprep.subr.bf16.mxu1 %v4645_v52  ;;  %v4748_v52 = vcombine.low %v1376_v43, %v1380_v46  ;;  %v4757_v56 = vcombine.high %v1384_v48, %v1388_v51 }
 0x4a3   :  { %3058 = vmatpush1.bf16.msra.mxu1 %v4644_v61  ;;  %v4756_v61 = vcombine.low %v1384_v48, %v1388_v51 }
 0x4a4   :  { %3059 = vmatprep.subr.bf16.mxu1 %v4653_v62 }
 0x4a7   :  { %3060 = vmatpush1.bf16.msra.mxu1 %v4652_v8 }
 0x4a8   :  { %3061 = vmatprep.subr.bf16.mxu1 %v4661_v14 }
 0x4ab   :  { %3062 = vmatpush1.bf16.msra.mxu1 %v4660_v17 }
 0x4ac   :  { %3063 = vmatprep.subr.bf16.mxu1 %v4669_v19 }
 0x4af   :  { %3064 = vmatpush1.bf16.msra.mxu1 %v4668_v9 }
 0x4b0   :  { %3065 = vmatprep.subr.bf16.mxu1 %v4677_v11 }
 0x4b3   :  { %3066 = vmatpush1.bf16.msra.mxu1 %v4676_v12 }
 0x4b4   :  { %3067 = vmatprep.subr.bf16.mxu1 %v4685_v10 }
 0x4b7   :  { %3068 = vmatpush1.bf16.msra.mxu1 %v4684_v23 }
 0x4b8   :  { %3069 = vmatprep.subr.bf16.mxu1 %v4693_v45 }
 0x4bb   :  { %3070 = vmatpush1.bf16.msra.mxu1 %v4692_v26  ;;  %v1416_v26 = vld [vmem:[#allocation14 + $0x618] sm:$0xff] }
 0x4bc   :  { %3071 = vmatprep.subr.bf16.mxu1 %v4701_v27  ;;  %v1420_v27 = vld [vmem:[#allocation14 + $0x638] sm:$0xff] }
 0x4bd   :  { %v4788_v38 = vcombine.low %v1416_v26, %v1420_v27 }
 0x4bf   :  { %3072 = vmatpush1.bf16.msra.mxu1 %v4700_v30 }
 0x4c0   :  { %3073 = vmatprep.subr.bf16.mxu1 %v4709_v42 }
 0x4c3   :  { %3074 = vmatpush1.bf16.msra.mxu1 %v4708_v7 }
 0x4c4   :  { %3075 = vmatprep.subr.bf16.mxu1 %v4717_v2  ;;  %v4789_v2 = vcombine.high %v1416_v26, %v1420_v27 }
 0x4c7   :  { %3076 = vmatpush1.bf16.msra.mxu1 %v4716_v32  ;;  %v1424_v32 = vld [vmem:[#allocation14 + $0x658] sm:$0xff] }
 0x4c8   :  { %3086 = vmatprep.subr.bf16.mxu1 %v4725_v33  ;;  %v1428_v33 = vld [vmem:[#allocation14 + $0x678] sm:$0xff] }
 0x4ca   :  { %3078 = vmatmul.mubr.bf16.vlgmr.msra.gmra.mrb[20].mxu1 %v5987_v53  ;;  %v1396_v53 = vld [vmem:[#allocation14 + $0x578] sm:$0xff] }
 0x4cb   :  { %3087 = vmatpush1.bf16.msra.mxu1 %v4724_v36  ;;  %3118 = vmatprep.mubr.bf16.mxu1 %v5985_v50  ;;  %v6015_v50 = vld [vmem:[%s6244_s12] sm:$0xff]  ;;  %v4765_v62 = vcombine.high %v1392_v57, %v1396_v53  ;;  %v4764_v14 = vcombine.low %v1392_v57, %v1396_v53  ;;  %v4796_v57 = vcombine.low %v1424_v32, %v1428_v33 }
 0x4cc   :  { %3088 = vmatprep.subr.bf16.mxu1 %v4733_v37  ;;  %v1482_v8 = vrot.slane %v6015_v50, %v5875_v4  ;;  %v1486_v15 = vrot.slane %v6015_v50, %v5878_v6 }
 0x4cf   :  { %3089 = vmatpush1.bf16.msra.mxu1 %v4732_v40 }
 0x4d0   :  { %3090 = vmatprep.subr.bf16.mxu1 %v4741_v41  ;;  %v4797_v41 = vcombine.high %v1424_v32, %v1428_v33 }
 0x4d3   :  { %3091 = vmatpush1.bf16.msra.mxu1 %v4740_v49  ;;  %v1432_v49 = vld [vmem:[#allocation14 + $0x698] sm:$0xff] }
 0x4d4   :  { %3092 = vmatprep.subr.bf16.mxu1 %v4749_v47  ;;  %v1436_v47 = vld [vmem:[#allocation14 + $0x6b8] sm:$0xff] }
 0x4d5   :  { %v4804_v58 = vcombine.low %v1432_v49, %v1436_v47 }
 0x4d7   :  { %3093 = vmatpush1.bf16.msra.mxu1 %v4748_v52 }
 0x4d8   :  { %3094 = vmatprep.subr.bf16.mxu1 %v4757_v56 }
 0x4db   :  { %3095 = vmatpush1.bf16.msra.mxu1 %v4756_v61 }
 0x4dc   :  { %3096 = vmatprep.subr.bf16.mxu1 %v4765_v62  ;;  %v4805_v62 = vcombine.high %v1432_v49, %v1436_v47 }
 0x4dd   :  { %v2833_v17 = vpop.f32.mrb[12].mxu1  ;;  %v2874_v19 = vpop.f32.mrb[4].mxu0 }
 0x4de   :  { %v2834_v9 = vadd.f32 %v2833_v17, %v1482_v8  ;;  %v2835_v11 = vpop.f32.mrb[13].mxu1  ;;  %v2876_v13 = vpop.f32.mrb[5].mxu0  ;;  %v1440_v8 = vld [vmem:[#allocation14 + $0x6d8] sm:$0xff] }
 0x4df   :  { %v2836_v18 = vadd.f32 %v2835_v11, %v1486_v15  ;;  %3097 = vmatpush1.bf16.msra.mxu1 %v4764_v14  ;;  %v2837_v12 = vpop.f32.mrb[14].mxu1  ;;  %v2878_v10 = vpop.f32.mrb[6].mxu0  ;;  %v1444_v14 = vld [vmem:[#allocation14 + $0x6f8] sm:$0xff] }
 0x4e0   :  { %v6021_v22 = vadd.f32 %v2874_v19, %v2834_v9  ;;  %v2838_v23 = vpop.f32.mrb[15].mxu1  ;;  %v2879_v45 = vpop.f32.mrb[7].mxu0  ;;  %3098 = vmatprep.subr.bf16.mxu1 %v4773_v16  ;;  %v4813_v11 = vcombine.high %v1440_v8, %v1444_v14  ;;  %v1448_v12 = vld [vmem:[#allocation14 + $0x718] sm:$0xff] }
 0x4e1   :  { %v6023_v25 = vadd.f32 %v2876_v13, %v2836_v18  ;;  %v1452_v10 = vld [vmem:[#allocation14 + $0x738] sm:$0xff]  ;;  %v4812_v45 = vcombine.low %v1440_v8, %v1444_v14 }
 0x4e2   :  { %v3129_v28 = vrot.slane %v6021_v22, 4  ;;  %v3185_v29 = vmul.f32 %v6021_v22, %v6021_v22  ;;  %v4821_v26 = vcombine.high %v1448_v12, %v1452_v10 }
 0x4e3   :  { %v3135_v30 = vrot.slane %v6023_v25, 4  ;;  %v3186_v42 = vmul.f32 %v6023_v25, %v6023_v25  ;;  %3099 = vmatpush1.bf16.msra.mxu1 %v4772_v21 }
 0x4e4   :  { %v3130_v5 = vadd.f32 %v3129_v28, %v6021_v22  ;;  %v3193_v7 = vrot.slane %v3185_v29, 4  ;;  %3100 = vmatprep.subr.bf16.mxu1 %v4781_v24  ;;  %v1456_v28 = vld [vmem:[#allocation14 + $0x758] sm:$0xff] }
 0x4e5   :  { %v3136_v0 = vadd.f32 %v3135_v30, %v6023_v25  ;;  %v3199_v31 = vrot.slane %v3186_v42, 4  ;;  %v4820_v30 = vcombine.low %v1448_v12, %v1452_v10 }
 0x4e6   :  { %v3131_v34 = vrot.slane %v3130_v5, 2  ;;  %v3194_v35 = vadd.f32 %v3193_v7, %v3185_v29  ;;  %v1460_v29 = vld [vmem:[#allocation14 + $0x778] sm:$0xff] }
 0x4e7   :  { %v3137_v36 = vrot.slane %v3136_v0, 2  ;;  %v3200_v37 = vadd.f32 %v3199_v31, %v3186_v42  ;;  %3101 = vmatpush1.bf16.msra.mxu1 %v4780_v44  ;;  %v4829_v42 = vcombine.high %v1456_v28, %v1460_v29  ;;  %v1464_v44 = vld [vmem:[#allocation14 + $0x798] sm:$0xff]  ;;  %v4828_v7 = vcombine.low %v1456_v28, %v1460_v29 }
 0x4e8   :  { %v3132_v39 = vadd.f32 %v3131_v34, %v3130_v5  ;;  %v3195_v40 = vrot.slane %v3194_v35, 2  ;;  %3102 = vmatprep.subr.bf16.mxu1 %v4789_v2  ;;  %v1468_v5 = vld [vmem:[#allocation14 + $0x7b8] sm:$0xff] }
 0x4e9   :  { %v3138_v43 = vadd.f32 %v3137_v36, %v3136_v0  ;;  %v3201_v46 = vrot.slane %v3200_v37, 2  ;;  %v4837_v2 = vcombine.high %v1464_v44, %v1468_v5  ;;  %v1472_v0 = vld [vmem:[#allocation14 + $0x7d8] sm:$0xff]  ;;  %v4836_v32 = vcombine.low %v1464_v44, %v1468_v5 }
 0x4ea   :  { %v3133_v48 = vrot.slane %v3132_v39, 1  ;;  %v3196_v51 = vadd.f32 %v3195_v40, %v3194_v35  ;;  %v1476_v31 = vld [vmem:[#allocation14 + $0x7f8] sm:$0xff] }
 0x4eb   :  { %v3139_v52 = vrot.slane %v3138_v43, 1  ;;  %v3202_v56 = vadd.f32 %v3201_v46, %v3200_v37  ;;  %3103 = vmatpush1.bf16.msra.mxu1 %v4788_v38  ;;  %v4845_v34 = vcombine.high %v1472_v0, %v1476_v31  ;;  %v4844_v37 = vcombine.low %v1472_v0, %v1476_v31  ;;  %v5176_v28 = vld [vmem:[#allocation16 + $0x10] ss:$8 sps:$4 sm:$0xff]  }
 0x4ec   :  { %v3134_v53 = vadd.f32 %v3133_v48, %v3132_v39  ;;  %v3197_v61 = vrot.slane %v3196_v51, 1  ;;  %3104 = vmatprep.subr.bf16.mxu1 %v4797_v41  ;;  %v1490_v38 = vrot.slane %v6015_v50, %v5943_v59  ;;  %v1494_v39 = vrot.slane %v6015_v50, %v5946_v60 }
 0x4ed   :  { %v3140_v63 = vadd.f32 %v3139_v52, %v3138_v43  ;;  %v3203_v1 = vrot.slane %v3202_v56, 1 }
 0x4ee   :  { %v6033_v15 = vmul.f32 0.125, %v3134_v53  ;;  %v3198_v16 = vadd.f32 %v3197_v61, %v3196_v51 }
 0x4ef   :  { %v6035_v17 = vmul.f32 0.125, %v3140_v63  ;;  %v3204_v19 = vadd.f32 %v3203_v1, %v3202_v56  ;;  %3105 = vmatpush1.bf16.msra.mxu1 %v4796_v57 }
 0x4f0   :  { %v3241_v20 = vmul.f32 0.125, %v3198_v16  ;;  %v3249_v9 = vmul.f32 %v6033_v15, %v6033_v15  ;;  %3106 = vmatprep.subr.bf16.mxu1 %v4805_v62 }
 0x4f1   :  { %v3242_v13 = vmul.f32 0.125, %v3204_v19  ;;  %v3250_v18 = vmul.f32 %v6035_v17, %v6035_v17 }
 0x4f2   :  { %v3257_v21 = vsub.f32 %v3241_v20, %v3249_v9  ;;  %v5175_v20 = vld [vmem:[#allocation16 + $0x4] ss:$8 sps:$4 sm:$0xff]  }
 0x4f3   :  { %v3258_v23 = vsub.f32 %v3242_v13, %v3250_v18  ;;  %3107 = vmatpush1.bf16.msra.mxu1 %v4804_v58  ;;  %v5173_v13 = vld [vmem:[#allocation16] ss:$8 sps:$4 sm:$0xff]   ;;  %4317 = vmatprep.subr.bf16.mxu0 %v5175_v20  ;;  %v5199_v20 = vld [vmem:[#allocation16 + $0x84] ss:$8 sps:$4 sm:$0xff]  }
 0x4f4   :  { %v3265_v24 = vadd.f32 1e-05, %v3257_v21  ;;  %3108 = vmatprep.subr.bf16.mxu1 %v4813_v11  ;;  %4318 = vmatpush1.bf16.msra.mxu0 %v5173_v13  ;;  %v5200_v13 = vld [vmem:[#allocation16 + $0x90] ss:$8 sps:$4 sm:$0xff]  }
 0x4f5   :  { %v3266_v27 = vadd.f32 1e-05, %v3258_v23 }
 0x4f6   :  { %5377 = vrsqrt.f32 %v3265_v24  ;;  %v5178_v24 = vld [vmem:[#allocation16 + $0x14] ss:$8 sps:$4 sm:$0xff]  }
 0x4f7   :  { %5379 = vrsqrt.f32 %v3266_v27  ;;  %3109 = vmatpush1.bf16.msra.mxu1 %v4812_v45  ;;  %4319 = vmatprep.subr.bf16.mxu0 %v5178_v24  ;;  %v5215_v24 = vld [vmem:[#allocation16 + $0xe0] ss:$8 sps:$4 sm:$0xff]  }
 0x4f8   :  { %3110 = vmatprep.subr.bf16.mxu1 %v4821_v26  ;;  %4320 = vmatpush1.bf16.msra.mxu0 %v5176_v28  ;;  %v5223_v28 = vld [vmem:[#allocation16 + $0x104] ss:$8 sps:$4 sm:$0xff]  }
 0x4fb   :  { %3111 = vmatpush1.bf16.msra.mxu1 %v4820_v30 }
 0x4fc   :  { %3112 = vmatprep.subr.bf16.mxu1 %v4829_v42 }
 0x4ff   :  { %3113 = vmatpush1.bf16.msra.mxu1 %v4828_v7 }
 0x500   :  { %v6041_v33 = vpop.eup %5377  ;;  %3114 = vmatprep.subr.bf16.mxu1 %v4837_v2  ;;  %v5181_v2 = vld [vmem:[#allocation16 + $0x24] ss:$8 sps:$4 sm:$0xff]  }
 0x501   :  { %v6043_v35 = vpop.eup %5379  ;;  %4321 = vmatprep.subr.bf16.mxu0 %v5181_v2 }
 0x502   :  { %v3289_v36 = vcombine.low %v6041_v33, %v6043_v35  ;;  %v5203_v33 = vld [vmem:[#allocation16 + $0xa0] ss:$8 sps:$4 sm:$0xff]   ;;  %v5208_v35 = vld [vmem:[#allocation16 + $0xb4] ss:$8 sps:$4 sm:$0xff]  }
 0x503   :  { %3115 = vmatpush1.bf16.msra.mxu1 %v4836_v32  ;;  %v5179_v32 = vld [vmem:[#allocation16 + $0x20] ss:$8 sps:$4 sm:$0xff]  }
 0x504   :  { %3116 = vmatprep.subr.bf16.mxu1 %v4845_v34  ;;  %4322 = vmatpush1.bf16.msra.mxu0 %v5179_v32 }
 0x507   :  { %3117 = vmatpush1.bf16.msra.mxu1 %v4844_v37 }
 0x50a   :  { %3119 = vmatmul.mubr.bf16.vlgmr.msra.gmra.mrb[20].mxu1 %v5989_v54 }
 0x55d   :  { %v2956_v40 = vpop.f32.mrb[16].mxu1 }
 0x55e   :  { %v6052_v41 = vadd.f32 %v2956_v40, %v1490_v38  ;;  %v6054_v43 = vpop.f32.mrb[8].mxu0  ;;  %v2958_v46 = vpop.f32.mrb[17].mxu1  ;;  %v5184_v40 = vld [vmem:[#allocation16 + $0x34] ss:$8 sps:$4 sm:$0xff]  }
 0x55f   :  { %v6056_v49 = vadd.f32 %v2958_v46, %v1494_v39  ;;  %v6058_v47 = vpop.f32.mrb[9].mxu0  ;;  %v2960_v48 = vpop.f32.mrb[18].mxu1  ;;  %4323 = vmatprep.subr.bf16.mxu0 %v5184_v40 }
 0x560   :  { %v3141_v51 = vrot.slane %v6052_v41, 4  ;;  %v3187_v54 = vmul.f32 %v6052_v41, %v6052_v41  ;;  %v3042_v52 = vpop.f32.mrb[10].mxu0  ;;  %v2961_v56 = vpop.f32.mrb[19].mxu1  ;;  %v5182_v48 = vld [vmem:[#allocation16 + $0x30] ss:$8 sps:$4 sm:$0xff]  }
 0x561   :  { %v3147_v57 = vrot.slane %v6056_v49, 4  ;;  %v3188_v53 = vmul.f32 %v6056_v49, %v6056_v49  ;;  %v3043_v61 = vpop.f32.mrb[11].mxu0  ;;  %4324 = vmatpush1.bf16.msra.mxu0 %v5182_v48  ;;  %v5185_v52 = vld [vmem:[#allocation16 + $0x40] ss:$8 sps:$4 sm:$0xff]   ;;  %v5190_v56 = vld [vmem:[#allocation16 + $0x54] ss:$8 sps:$4 sm:$0xff]  }
 0x562   :  { %v3142_v62 = vadd.f32 %v6052_v41, %v3141_v51  ;;  %v3205_v63 = vrot.slane %v3187_v54, 4 }
 0x563   :  { %v3148_v1 = vadd.f32 %v6056_v49, %v3147_v57  ;;  %v3211_v8 = vrot.slane %v3188_v53, 4  ;;  %v5188_v57 = vld [vmem:[#allocation16 + $0x50] ss:$8 sps:$4 sm:$0xff]  }
 0x564   :  { %v3143_v14 = vrot.slane %v3142_v62, 2  ;;  %v3206_v16 = vadd.f32 %v3205_v63, %v3187_v54  ;;  %v5187_v54 = vld [vmem:[#allocation16 + $0x44] ss:$8 sps:$4 sm:$0xff]  }
 0x565   :  { %v3149_v19 = vrot.slane %v3148_v1, 2  ;;  %v3212_v58 = vadd.f32 %v3211_v8, %v3188_v53  ;;  %4325 = vmatprep.subr.bf16.mxu0 %v5187_v54  ;;  %v5193_v53 = vld [vmem:[#allocation16 + $0x64] ss:$8 sps:$4 sm:$0xff]   ;;  %v5196_v8 = vld [vmem:[#allocation16 + $0x74] ss:$8 sps:$4 sm:$0xff]  }
 0x566   :  { %v3144_v9 = vadd.f32 %v3143_v14, %v3142_v62  ;;  %v3207_v11 = vrot.slane %v3206_v16, 2  ;;  %4326 = vmatpush1.bf16.msra.mxu0 %v5185_v52  ;;  %v5191_v62 = vld [vmem:[#allocation16 + $0x60] ss:$8 sps:$4 sm:$0xff]   ;;  %v5194_v14 = vld [vmem:[#allocation16 + $0x70] ss:$8 sps:$4 sm:$0xff]  }
 0x567   :  { %v3150_v18 = vadd.f32 %v3149_v19, %v3148_v1  ;;  %v3213_v12 = vrot.slane %v3212_v58, 2  ;;  %4327 = vmatprep.subr.bf16.mxu0 %v5190_v56 }
 0x568   :  { %v3145_v10 = vrot.slane %v3144_v9, 1  ;;  %v3208_v21 = vadd.f32 %v3207_v11, %v3206_v16  ;;  %v6080_v16 = vrot.slane %v3289_v36, %v5883_v55  ;;  %v5202_v11 = vld [vmem:[#allocation16 + $0x94] ss:$8 sps:$4 sm:$0xff]   ;;  %v5206_v36 = vld [vmem:[#allocation16 + $0xb0] ss:$8 sps:$4 sm:$0xff]  }
 0x569   :  { %v3151_v23 = vrot.slane %v3150_v18, 1  ;;  %v3214_v45 = vadd.f32 %v3213_v12, %v3212_v58  ;;  %v5211_v12 = vld [vmem:[#allocation16 + $0xc4] ss:$8 sps:$4 sm:$0xff]  }
 0x56a   :  { %v3146_v26 = vadd.f32 %v3145_v10, %v3144_v9  ;;  %v3209_v27 = vrot.slane %v3208_v21, 1  ;;  %4328 = vmatpush1.bf16.msra.mxu0 %v5188_v57  ;;  %v5197_v9 = vld [vmem:[#allocation16 + $0x80] ss:$8 sps:$4 sm:$0xff]  }
 0x56b   :  { %v3152_v29 = vadd.f32 %v3151_v23, %v3150_v18  ;;  %v3215_v30 = vrot.slane %v3214_v45, 1  ;;  %4329 = vmatprep.subr.bf16.mxu0 %v5193_v53  ;;  %v5205_v18 = vld [vmem:[#allocation16 + $0xa4] ss:$8 sps:$4 sm:$0xff]   ;;  %v5209_v10 = vld [vmem:[#allocation16 + $0xc0] ss:$8 sps:$4 sm:$0xff]   ;;  %v6112_v53 = vsub.s32 6, %v5872_v3 }
 0x56c   :  { %v6068_v42 = vmul.f32 0.125, %v3146_v26  ;;  %v3210_v44 = vadd.f32 %v3209_v27, %v3208_v21  ;;  %v5214_v21 = vld [vmem:[#allocation16 + $0xd4] ss:$8 sps:$4 sm:$0xff]   ;;  %v5212_v23 = vld [vmem:[#allocation16 + $0xd0] ss:$8 sps:$4 sm:$0xff]  }
 0x56d   :  { %v6070_v5 = vmul.f32 0.125, %v3152_v29  ;;  %v3216_v7 = vadd.f32 %v3215_v30, %v3214_v45  ;;  %v5217_v45 = vld [vmem:[#allocation16 + $0xe4] ss:$8 sps:$4 sm:$0xff]   ;;  %v5220_v26 = vld [vmem:[#allocation16 + $0xf4] ss:$8 sps:$4 sm:$0xff]   ;;  %v6088_v29 = vsub.s32 4, %v5872_v3 }
 0x56e   :  { %v3243_v0 = vmul.f32 0.125, %v3210_v44  ;;  %v3251_v31 = vmul.f32 %v6068_v42, %v6068_v42  ;;  %4330 = vmatpush1.bf16.msra.mxu0 %v5191_v62  ;;  %v5218_v27 = vld [vmem:[#allocation16 + $0xf0] ss:$8 sps:$4 sm:$0xff]   ;;  %v6091_v30 = vsub.s32 5, %v5872_v3 }
 0x56f   :  { %v3244_v34 = vmul.f32 0.125, %v3216_v7  ;;  %v3252_v37 = vmul.f32 %v6070_v5, %v6070_v5  ;;  %4331 = vmatprep.subr.bf16.mxu0 %v5196_v8  ;;  %v1498_v44 = vrot.slane %v6015_v50, %v6088_v29 }
 0x570   :  { %v3259_v38 = vsub.f32 %v3243_v0, %v3251_v31  ;;  %v1502_v7 = vrot.slane %v6015_v50, %v6091_v30 }
 0x571   :  { %v3260_v39 = vsub.f32 %v3244_v34, %v3252_v37  ;;  %v6098_v2 = vadd.f32 %v6054_v43, %v1498_v44 }
 0x572   :  { %v3267_v46 = vadd.f32 1e-05, %v3259_v38  ;;  %4332 = vmatpush1.bf16.msra.mxu0 %v5194_v14  ;;  %v6101_v0 = vadd.f32 %v6058_v47, %v1502_v7  ;;  %v1506_v14 = vrot.slane %v6015_v50, %v6112_v53 }
 0x573   :  { %v3268_v51 = vadd.f32 1e-05, %v3260_v39  ;;  %4333 = vmatprep.subr.bf16.mxu0 %v5199_v20  ;;  %v3153_v31 = vrot.slane %v6098_v2, 4  ;;  %v3189_v32 = vmul.f32 %v6098_v2, %v6098_v2 }
 0x574   :  { %5381 = vrsqrt.f32 %v3267_v46  ;;  %v3159_v34 = vrot.slane %v6101_v0, 4  ;;  %v3190_v37 = vmul.f32 %v6101_v0, %v6101_v0 }
 0x575   :  { %5383 = vrsqrt.f32 %v3268_v51  ;;  %v3154_v38 = vadd.f32 %v6098_v2, %v3153_v31  ;;  %v3217_v39 = vrot.slane %v3189_v32, 4 }
 0x576   :  { %4334 = vmatpush1.bf16.msra.mxu0 %v5197_v9  ;;  %v3160_v40 = vadd.f32 %v6101_v0, %v3159_v34  ;;  %v3223_v43 = vrot.slane %v3190_v37, 4 }
 0x577   :  { %4335 = vmatprep.subr.bf16.mxu0 %v5202_v11  ;;  %v3155_v46 = vrot.slane %v3154_v38, 2  ;;  %v3218_v48 = vadd.f32 %v3217_v39, %v3189_v32 }
 0x578   :  { %v3161_v47 = vrot.slane %v3160_v40, 2  ;;  %v3224_v51 = vadd.f32 %v3223_v43, %v3190_v37 }
 0x579   :  { %v3156_v54 = vadd.f32 %v3155_v46, %v3154_v38  ;;  %v3219_v52 = vrot.slane %v3218_v48, 2 }
 0x57a   :  { %4336 = vmatpush1.bf16.msra.mxu0 %v5200_v13  ;;  %v3162_v56 = vadd.f32 %v3161_v47, %v3160_v40  ;;  %v3225_v57 = vrot.slane %v3224_v51, 2 }
 0x57b   :  { %4337 = vmatprep.subr.bf16.mxu0 %v5205_v18  ;;  %v3157_v62 = vrot.slane %v3156_v54, 1 }
 0x57c   :  { %v3226_v8 = vadd.f32 %v3225_v57, %v3224_v51 }
 0x57d   :  { %v3158_v9 = vadd.f32 %v3157_v62, %v3156_v54 }
 0x57e   :  { %v5382_v61 = vpop.eup %5381  ;;  %4338 = vmatpush1.bf16.msra.mxu0 %v5203_v33  ;;  %v3227_v18 = vrot.slane %v3226_v8, 1 }
 0x57f   :  { %v5384_v63 = vpop.eup %5383  ;;  %4339 = vmatprep.subr.bf16.mxu0 %v5208_v35 }
 0x580   :  { %v3290_v1 = vcombine.low %v5382_v61, %v5384_v63  ;;  %v6115_v61 = vsub.s32 7, %v5872_v3  ;;  %v3220_v63 = vadd.f32 %v3219_v52, %v3218_v48 }
 0x582   :  { %v6083_v19 = vrot.slane %v3290_v1, %v5883_v55  ;;  %4340 = vmatpush1.bf16.msra.mxu0 %v5206_v36  ;;  %v3163_v1 = vrot.slane %v3162_v56, 1  ;;  %v1510_v20 = vrot.slane %v6015_v50, %v6115_v61  ;;  %v3221_v11 = vrot.slane %v3220_v63, 1 }
 0x583   :  { %4341 = vmatprep.subr.bf16.mxu0 %v5211_v12 }
 0x584   :  { %v3321_v58 = vcombine.low %v6080_v16, %v6083_v19  ;;  %v3164_v13 = vadd.f32 %v3163_v1, %v3162_v56 }
 0x586   :  { %4342 = vmatpush1.bf16.msra.mxu0 %v5209_v10  ;;  %v6125_v10 = vmul.f32 0.125, %v3158_v9 }
 0x587   :  { %4343 = vmatprep.subr.bf16.mxu0 %v5214_v21  ;;  %v3222_v21 = vadd.f32 %v3221_v11, %v3220_v63 }
 0x588   :  { %v3253_v37 = vmul.f32 %v6125_v10, %v6125_v10 }
 0x589   :  { %v3245_v34 = vmul.f32 0.125, %v3222_v21 }
 0x58a   :  { %4344 = vmatpush1.bf16.msra.mxu0 %v5212_v23 }
 0x58b   :  { %4345 = vmatprep.subr.bf16.mxu0 %v5217_v45  ;;  %v3261_v56 = vsub.f32 %v3245_v34, %v3253_v37 }
 0x58e   :  { %4346 = vmatpush1.bf16.msra.mxu0 %v5215_v24  ;;  %v6130_v24 = vmul.f32 0.125, %v3164_v13  ;;  %v3269_v13 = vadd.f32 1e-05, %v3261_v56 }
 0x58f   :  { %4347 = vmatprep.subr.bf16.mxu0 %v5220_v26  ;;  %v3228_v26 = vadd.f32 %v3227_v18, %v3226_v8 }
 0x590   :  { %v3254_v43 = vmul.f32 %v6130_v24, %v6130_v24  ;;  %5385 = vrsqrt.f32 %v3269_v13 }
 0x591   :  { %v3246_v40 = vmul.f32 0.125, %v3228_v26 }
 0x592   :  { %4348 = vmatpush1.bf16.msra.mxu0 %v5218_v27 }
 0x593   :  { %4358 = vmatprep.subr.bf16.mxu0 %v5223_v28  ;;  %v3262_v63 = vsub.f32 %v3246_v40, %v3254_v43 }
 0x5dd   :  { %v3120_v33 = vpop.f32.mrb[20].mxu1 }
 0x5de   :  { %v6121_v35 = vadd.f32 %v3120_v33, %v1506_v14  ;;  %v3122_v36 = vpop.f32.mrb[21].mxu1 }
 0x5df   :  { %v6123_v3 = vadd.f32 %v3122_v36, %v1510_v20  ;;  %v3124_v12 = vpop.f32.mrb[22].mxu1  ;;  %v3270_v36 = vadd.f32 1e-05, %v3262_v63 }
 0x5e0   :  { %v3165_v23 = vrot.slane %v6121_v35, 4  ;;  %v3191_v45 = vmul.f32 %v6121_v35, %v6121_v35  ;;  %v3125_v50 = vpop.f32.mrb[23].mxu1 }
 0x5e1   :  { %v3171_v27 = vrot.slane %v6123_v3, 4  ;;  %v3192_v28 = vmul.f32 %v6123_v3, %v6123_v3  ;;  %5387 = vrsqrt.f32 %v3270_v36 }
 0x5e2   :  { %v3166_v44 = vadd.f32 %v6121_v35, %v3165_v23  ;;  %v3229_v7 = vrot.slane %v3191_v45, 4 }
 0x5e3   :  { %v3172_v31 = vadd.f32 %v6123_v3, %v3171_v27  ;;  %v3235_v32 = vrot.slane %v3192_v28, 4 }
 0x5e4   :  { %v3167_v38 = vrot.slane %v3166_v44, 2  ;;  %v3230_v39 = vadd.f32 %v3229_v7, %v3191_v45 }
 0x5e5   :  { %v3173_v46 = vrot.slane %v3172_v31, 2  ;;  %v3236_v48 = vadd.f32 %v3235_v32, %v3192_v28 }
 0x5e6   :  { %v3168_v47 = vadd.f32 %v3167_v38, %v3166_v44  ;;  %v3231_v51 = vrot.slane %v3230_v39, 2 }
 0x5e7   :  { %v3174_v54 = vadd.f32 %v3173_v46, %v3172_v31  ;;  %v3237_v52 = vrot.slane %v3236_v48, 2  ;;  %v5386_v31 = vpop.eup %5385 }
 0x5e8   :  { %v3169_v57 = vrot.slane %v3168_v47, 1  ;;  %v3232_v62 = vadd.f32 %v3231_v51, %v3230_v39  ;;  %v3127_v51 = vld [vmem:[%s6245_s13] sm:$0xff] }
 0x5e9   :  { %v3175_v1 = vrot.slane %v3174_v54, 1  ;;  %v3238_v8 = vadd.f32 %v3237_v52, %v3236_v48  ;;  %v3329_v48 = vrot.slane %v3321_v58, %v5883_v55 }
 0x5ea   :  { %v3170_v14 = vadd.f32 %v3169_v57, %v3168_v47  ;;  %v3233_v20 = vrot.slane %v3232_v62, 1 }
 0x5eb   :  { %v3176_v9 = vadd.f32 %v3175_v1, %v3174_v54  ;;  %v3239_v11 = vrot.slane %v3238_v8, 1  ;;  %v5388_v32 = vpop.eup %5387 }
 0x5ec   :  { %v3183_v18 = vmul.f32 0.125, %v3170_v14  ;;  %v3234_v33 = vadd.f32 %v3233_v20, %v3232_v62  ;;  %v3291_v37 = vcombine.low %v5386_v31, %v5388_v32 }
 0x5ed   :  { %v3184_v12 = vmul.f32 0.125, %v3176_v9  ;;  %v3240_v21 = vadd.f32 %v3239_v11, %v3238_v8 }
 0x5ee   :  { %v3247_v23 = vmul.f32 0.125, %v3234_v33  ;;  %v3255_v45 = vmul.f32 %v3183_v18, %v3183_v18  ;;  %v3313_v40 = vrot.slane %v3291_v37, %v5883_v55 }
 0x5ef   :  { %v3248_v50 = vmul.f32 0.125, %v3240_v21  ;;  %v3256_v26 = vmul.f32 %v3184_v12, %v3184_v12 }
 0x5f0   :  { %v3263_v27 = vsub.f32 %v3247_v23, %v3255_v45 }
 0x5f1   :  { %v3264_v28 = vsub.f32 %v3248_v50, %v3256_v26 }
 0x5f2   :  { %v3271_v44 = vadd.f32 1e-05, %v3263_v27 }
 0x5f3   :  { %v3272_v7 = vadd.f32 1e-05, %v3264_v28 }
 0x5f4   :  { %5389 = vrsqrt.f32 %v3271_v44 }
 0x5f5   :  { %5391 = vrsqrt.f32 %v3272_v7 }
 0x5fe   :  { %v5390_v34 = vpop.eup %5389 }
 0x5ff   :  { %v5392_v38 = vpop.eup %5391 }
 0x600   :  { %v3292_v39 = vcombine.low %v5390_v34, %v5392_v38 }
 0x602   :  { %v3320_v43 = vrot.slane %v3292_v39, %v5883_v55 }
 0x604   :  { %v3322_v46 = vcombine.low %v3313_v40, %v3320_v43 }
 0x606   :  { %v3336_v47 = vrot.slane %v3322_v46, %v5883_v55 }
 0x608   :  { %v3337_v54 = vcombine.low %v3329_v48, %v3336_v47 }
 0x60a   :  { %v3339_v52 = vmul.f32 %v3337_v54, %v3127_v51 }
 0x60c   :  { %v3360_v56 = vrot.slane %v3339_v52, %v6088_v29  ;;  %v3364_v57 = vrot.slane %v3339_v52, %v6091_v30  ;;  %v3368_v62 = vrot.slane %v3339_v52, %v6112_v53  ;;  %v3372_v63 = vrot.slane %v3339_v52, %v6115_v61 }
 0x60d   :  { %v3344_v1 = vrot.slane %v3339_v52, %v5875_v4  ;;  %v3348_v16 = vrot.slane %v3339_v52, %v5878_v6  ;;  %v3352_v19 = vrot.slane %v3339_v52, %v5943_v59  ;;  %v3356_v58 = vrot.slane %v3339_v52, %v5946_v60  ;;  %v5221_v52 = vld [vmem:[#allocation16 + $0x100] ss:$8 sps:$4 sm:$0xff]  }
 0x60e   :  { %v3385_v8 = vmul.f32 %v3360_v56, %v6125_v10  ;;  %v3386_v14 = vmul.f32 %v3364_v57, %v6130_v24  ;;  %v3387_v20 = vmul.f32 %v3368_v62, %v3183_v18  ;;  %v3388_v9 = vmul.f32 %v3372_v63, %v3184_v12 }
 0x60f   :  { %v3455_v11 = vmul.f32 %v6123_v3, %v3372_v63  ;;  %v3381_v13 = vmul.f32 %v3344_v1, %v6033_v15  ;;  %v3382_v33 = vmul.f32 %v3348_v16, %v6035_v17  ;;  %v3383_v36 = vmul.f32 %v3352_v19, %v6068_v42 }
 0x610   :  { %v3399_v21 = vcombine.low %v3385_v8, %v3386_v14  ;;  %v3400_v23 = vcombine.low %v3387_v20, %v3388_v9  ;;  %v3384_v45 = vmul.f32 %v3356_v58, %v6070_v5  ;;  %v3449_v50 = vmul.f32 %v3348_v16, %v6023_v25  ;;  %v5229_v16 = vld [vmem:[#allocation16 + $0x124] ss:$8 sps:$4 sm:$0xff]   ;;  %v5230_v8 = vld [vmem:[#allocation16 + $0x130] ss:$8 sps:$4 sm:$0xff]   ;;  %v5233_v20 = vld [vmem:[#allocation16 + $0x140] ss:$8 sps:$4 sm:$0xff]  }
 0x611   :  { %v3397_v26 = vcombine.low %v3381_v13, %v3382_v33  ;;  %v3448_v10 = vmul.f32 %v3344_v1, %v6021_v22  ;;  %v3451_v24 = vmul.f32 %v6056_v49, %v3356_v58  ;;  %v3454_v42 = vmul.f32 %v6121_v35, %v3368_v62  ;;  %v3128_v22 = vld [vmem:[%s6246_s14] sm:$0xff]  ;;  %v5235_v14 = vld [vmem:[#allocation16 + $0x144] ss:$8 sps:$4 sm:$0xff]   ;;  %v5239_v33 = vld [vmem:[#allocation16 + $0x160] ss:$8 sps:$4 sm:$0xff]  }
 0x612   :  { %v3421_v18 = vrot.slane %v3399_v21, %v5883_v55  ;;  %v3428_v3 = vrot.slane %v3400_v23, %v5883_v55  ;;  %v3398_v15 = vcombine.low %v3383_v36, %v3384_v45  ;;  %v3450_v7 = vmul.f32 %v6052_v41, %v3352_v19  ;;  %v5226_v62 = vld [vmem:[#allocation16 + $0x114] ss:$8 sps:$4 sm:$0xff]   ;;  %v5224_v1 = vld [vmem:[#allocation16 + $0x110] ss:$8 sps:$4 sm:$0xff]   ;;  %v5227_v19 = vld [vmem:[#allocation16 + $0x120] ss:$8 sps:$4 sm:$0xff]  }
 0x613   :  { %v3407_v17 = vrot.slane %v3397_v26, %v5883_v55  ;;  %v3453_v31 = vmul.f32 %v6101_v0, %v3364_v57  ;;  %v3452_v35 = vmul.f32 %v6098_v2, %v3360_v56  ;;  %v5232_v58 = vld [vmem:[#allocation16 + $0x134] ss:$8 sps:$4 sm:$0xff]   ;;  %v5241_v13 = vld [vmem:[#allocation16 + $0x164] ss:$8 sps:$4 sm:$0xff]   ;;  %v5242_v21 = vld [vmem:[#allocation16 + $0x170] ss:$8 sps:$4 sm:$0xff]  }
 0x614   :  { %v3430_v12 = vcombine.low %v3421_v18, %v3428_v3  ;;  %v3414_v27 = vrot.slane %v3398_v15, %v5883_v55  ;;  %v5238_v9 = vld [vmem:[#allocation16 + $0x154] ss:$8 sps:$4 sm:$0xff]   ;;  %v5247_v23 = vld [vmem:[#allocation16 + $0x184] ss:$8 sps:$4 sm:$0xff]   ;;  %v5245_v45 = vld [vmem:[#allocation16 + $0x180] ss:$8 sps:$4 sm:$0xff]  }
 0x615   :  { %v5244_v36 = vld [vmem:[#allocation16 + $0x174] ss:$8 sps:$4 sm:$0xff]   ;;  %v5248_v26 = vld [vmem:[#allocation16 + $0x190] ss:$8 sps:$4 sm:$0xff]   ;;  %v5259_v15 = vld [vmem:[#allocation16 + $0x1c4] ss:$8 sps:$4 sm:$0xff]  }
 0x616   :  { %v3444_v5 = vrot.slane %v3430_v12, %v5883_v55  ;;  %v3429_v25 = vcombine.low %v3407_v17, %v3414_v27  ;;  %v5256_v18 = vld [vmem:[#allocation16 + $0x1b4] ss:$8 sps:$4 sm:$0xff]   ;;  %v5254_v3 = vld [vmem:[#allocation16 + $0x1b0] ss:$8 sps:$4 sm:$0xff]   ;;  %v5257_v17 = vld [vmem:[#allocation16 + $0x1c0] ss:$8 sps:$4 sm:$0xff]  }
 0x617   :  { %v5260_v12 = vld [vmem:[#allocation16 + $0x1d0] ss:$8 sps:$4 sm:$0xff]   ;;  %v5265_v27 = vld [vmem:[#allocation16 + $0x1e4] ss:$8 sps:$4 sm:$0xff]  }
 0x618   :  { %v3437_v28 = vrot.slane %v3429_v25, %v5883_v55  ;;  %v5268_v25 = vld [vmem:[#allocation16 + $0x1f4] ss:$8 sps:$4 sm:$0xff]  }
 0x61a   :  { %v3445_v49 = vcombine.low %v3437_v28, %v3444_v5  ;;  %v5263_v5 = vld [vmem:[#allocation16 + $0x1e0] ss:$8 sps:$4 sm:$0xff]  }
 0x61c   :  { %v3447_v44 = vsub.f32 %v3128_v22, %v3445_v49  ;;  %v5266_v49 = vld [vmem:[#allocation16 + $0x1f0] ss:$8 sps:$4 sm:$0xff]  }
 0x61e   :  { %v3464_v32 = vrot.slane %v3447_v44, %v5878_v6  ;;  %v3460_v34 = vrot.slane %v3447_v44, %v5875_v4  ;;  %v3472_v37 = vrot.slane %v3447_v44, %v5946_v60  ;;  %v3468_v55 = vrot.slane %v3447_v44, %v5943_v59 }
 0x61f   :  { %v3480_v38 = vrot.slane %v3447_v44, %v6091_v30  ;;  %v3476_v39 = vrot.slane %v3447_v44, %v6088_v29  ;;  %v3488_v40 = vrot.slane %v3447_v44, %v6115_v61  ;;  %v3484_v41 = vrot.slane %v3447_v44, %v6112_v53  ;;  %v5271_v44 = vld [vmem:[#allocation16 + $0x204] ss:$8 sps:$4 sm:$0xff]  }
 0x620   :  { %v3498_v43 = vadd.f32 %v3464_v32, %v3449_v50  ;;  %v3497_v0 = vadd.f32 %v3460_v34, %v3448_v10  ;;  %v3500_v46 = vadd.f32 %v3472_v37, %v3451_v24  ;;  %v6190_v2 = vadd.f32 %v3468_v55, %v3450_v7  ;;  %v5250_v50 = vld [vmem:[#allocation16 + $0x194] ss:$8 sps:$4 sm:$0xff]   ;;  %v5253_v10 = vld [vmem:[#allocation16 + $0x1a4] ss:$8 sps:$4 sm:$0xff]   ;;  %v5251_v24 = vld [vmem:[#allocation16 + $0x1a0] ss:$8 sps:$4 sm:$0xff]  }
 0x621   :  { %v6192_v48 = vadd.f32 %v3480_v38, %v3453_v31  ;;  %v6194_v47 = vadd.f32 %v3476_v39, %v3452_v35  ;;  %v6196_v60 = vadd.f32 %v3488_v40, %v3455_v11  ;;  %v6198_v59 = vadd.f32 %v3484_v41, %v3454_v42  ;;  %v5236_v11 = vld [vmem:[#allocation16 + $0x150] ss:$8 sps:$4 sm:$0xff]   ;;  %v5262_v42 = vld [vmem:[#allocation16 + $0x1d4] ss:$8 sps:$4 sm:$0xff]   ;;  %v5269_v35 = vld [vmem:[#allocation16 + $0x200] ss:$8 sps:$4 sm:$0xff]  }
 0x622   :  { %vm3506_vm9 = vcmp.gt.f32.partialorder %v3498_v43, 0.0  ;;  %v3514_v30 = vmul.f32 0.2, %v3498_v43  ;;  %vm3505_vm10 = vcmp.gt.f32.partialorder %v3497_v0, 0.0  ;;  %v3513_v29 = vmul.f32 0.2, %v3497_v0 }
 0x623   :  { %vm3508_vm11 = vcmp.gt.f32.partialorder %v3500_v46, 0.0  ;;  %v3516_v61 = vmul.f32 0.2, %v3500_v46  ;;  %v3515_v28 = vmul.f32 0.2, %v6190_v2  ;;  %vm3507_vm12 = vcmp.gt.f32.partialorder %v6190_v2, 0.0 }
 0x624   :  { %v3522_v53 = vsel %vm3506_vm9, %v3498_v43, %v3514_v30  ;;  %v3521_v51 = vsel %vm3505_vm10, %v3497_v0, %v3513_v29  ;;  %v3518_v22 = vmul.f32 0.2, %v6192_v48  ;;  %vm3510_vm13 = vcmp.gt.f32.partialorder %v6192_v48, 0.0  ;;  %v5274_v34 = vld [vmem:[#allocation16 + $0x214] ss:$8 sps:$4 sm:$0xff]  }
 0x625   :  { %v3530_v54 = vpack.c.bf16 %v3522_v53, %v3522_v53  ;;  %v3529_v56 = vpack.c.bf16 %v3521_v51, %v3521_v51  ;;  %v3524_v57 = vsel %vm3508_vm11, %v3500_v46, %v3516_v61  ;;  %v3523_v7 = vsel %vm3507_vm12, %v6190_v2, %v3515_v28  ;;  %v5272_v55 = vld [vmem:[#allocation16 + $0x210] ss:$8 sps:$4 sm:$0xff]   ;;  %v5277_v38 = vld [vmem:[#allocation16 + $0x224] ss:$8 sps:$4 sm:$0xff]   ;;  %v5275_v39 = vld [vmem:[#allocation16 + $0x220] ss:$8 sps:$4 sm:$0xff]  }
 0x626   :  { %v3532_v63 = vpack.c.bf16 %v3524_v57, %v3524_v57  ;;  %v3526_v31 = vsel %vm3510_vm13, %v6192_v48, %v3518_v22  ;;  %v3531_v32 = vpack.c.bf16 %v3523_v7, %v3523_v7  ;;  %v5280_v40 = vld [vmem:[#allocation16 + $0x234] ss:$8 sps:$4 sm:$0xff]   ;;  %v5278_v41 = vld [vmem:[#allocation16 + $0x230] ss:$8 sps:$4 sm:$0xff]   ;;  %v5283_v43 = vld [vmem:[#allocation16 + $0x244] ss:$8 sps:$4 sm:$0xff]  }
 0x627   :  { %4349 = vmatprep.mubr.bf16.mxu0 %v3530_v54  ;;  %v3534_v37 = vpack.c.bf16 %v3526_v31, %v3526_v31  ;;  %v5281_v0 = vld [vmem:[#allocation16 + $0x240] ss:$8 sps:$4 sm:$0xff]   ;;  %v5286_v46 = vld [vmem:[#allocation16 + $0x254] ss:$8 sps:$4 sm:$0xff]   ;;  %v5284_v2 = vld [vmem:[#allocation16 + $0x250] ss:$8 sps:$4 sm:$0xff]  }
 0x628   :  { %4350 = vmatmul.mubr.bf16.vlgmr.msra.gmra.mrb[12].mxu0 %v3529_v56  ;;  %v5289_v48 = vld [vmem:[#allocation16 + $0x264] ss:$8 sps:$4 sm:$0xff]   ;;  %v5287_v30 = vld [vmem:[#allocation16 + $0x260] ss:$8 sps:$4 sm:$0xff]   ;;  %v5292_v29 = vld [vmem:[#allocation16 + $0x274] ss:$8 sps:$4 sm:$0xff]  }
 0x629   :  { %4359 = vmatpush1.bf16.msra.mxu0 %v5221_v52  ;;  %4390 = vmatprep.mubr.bf16.mxu0 %v3532_v63  ;;  %v5290_v61 = vld [vmem:[#allocation16 + $0x270] ss:$8 sps:$4 sm:$0xff]   ;;  %v5295_v53 = vld [vmem:[#allocation16 + $0x284] ss:$8 sps:$4 sm:$0xff]   ;;  %v5293_v51 = vld [vmem:[#allocation16 + $0x280] ss:$8 sps:$4 sm:$0xff]  }
 0x62a   :  { %4360 = vmatprep.subr.bf16.mxu0 %v5226_v62  ;;  %v5298_v54 = vld [vmem:[#allocation16 + $0x294] ss:$8 sps:$4 sm:$0xff]   ;;  %v5296_v52 = vld [vmem:[#allocation16 + $0x290] ss:$8 sps:$4 sm:$0xff]   ;;  %v5301_v56 = vld [vmem:[#allocation16 + $0x2a4] ss:$8 sps:$4 sm:$0xff]  }
 0x62b   :  { %v5299_v57 = vld [vmem:[#allocation16 + $0x2a0] ss:$8 sps:$4 sm:$0xff]   ;;  %v5304_v62 = vld [vmem:[#allocation16 + $0x2b4] ss:$8 sps:$4 sm:$0xff]   ;;  %v5302_v63 = vld [vmem:[#allocation16 + $0x2b0] ss:$8 sps:$4 sm:$0xff]  }
 0x62c   :  { %vm3509_vm14 = vcmp.gt.f32.partialorder %v6194_v47, 0.0  ;;  %vm3512_vm15 = vcmp.gt.f32.partialorder %v6196_v60, 0.0  ;;  %v5343_v28 = vld [vmem:[#allocation16 + $0x384] ss:$8 sps:$4 sm:$0xff]   ;;  %v5341_v22 = vld [vmem:[#allocation16 + $0x380] ss:$8 sps:$4 sm:$0xff]  }
 0x62d   :  { %4361 = vmatpush1.bf16.msra.mxu0 %v5224_v1  ;;  %v5307_v1 = vld [vmem:[#allocation16 + $0x2c4] ss:$8 sps:$4 sm:$0xff]   ;;  %v5347_v31 = vld [vmem:[#allocation16 + $0x3a0] ss:$8 sps:$4 sm:$0xff]   ;;  %vm3511_vm0 = vcmp.gt.f32.partialorder %v6198_v59, 0.0 }
 0x62e   :  { %4362 = vmatprep.subr.bf16.mxu0 %v5229_v16  ;;  %v5305_v16 = vld [vmem:[#allocation16 + $0x2c0] ss:$8 sps:$4 sm:$0xff]   ;;  %v5349_v7 = vld [vmem:[#allocation16 + $0x3a4] ss:$8 sps:$4 sm:$0xff]  }
 0x631   :  { %4363 = vmatpush1.bf16.msra.mxu0 %v5227_v19  ;;  %v5310_v19 = vld [vmem:[#allocation16 + $0x2d4] ss:$8 sps:$4 sm:$0xff]  }
 0x632   :  { %4364 = vmatprep.subr.bf16.mxu0 %v5232_v58  ;;  %v5308_v58 = vld [vmem:[#allocation16 + $0x2d0] ss:$8 sps:$4 sm:$0xff]  }
 0x635   :  { %4365 = vmatpush1.bf16.msra.mxu0 %v5230_v8  ;;  %v5313_v8 = vld [vmem:[#allocation16 + $0x2e4] ss:$8 sps:$4 sm:$0xff]  }
 0x636   :  { %4366 = vmatprep.subr.bf16.mxu0 %v5235_v14  ;;  %v5311_v14 = vld [vmem:[#allocation16 + $0x2e0] ss:$8 sps:$4 sm:$0xff]  }
 0x639   :  { %4367 = vmatpush1.bf16.msra.mxu0 %v5233_v20  ;;  %v5316_v20 = vld [vmem:[#allocation16 + $0x2f4] ss:$8 sps:$4 sm:$0xff]  }
 0x63a   :  { %4368 = vmatprep.subr.bf16.mxu0 %v5238_v9  ;;  %v3517_v9 = vmul.f32 0.2, %v6194_v47 }
 0x63d   :  { %4369 = vmatpush1.bf16.msra.mxu0 %v5236_v11  ;;  %v3520_v11 = vmul.f32 0.2, %v6196_v60 }
 0x63e   :  { %4370 = vmatprep.subr.bf16.mxu0 %v5241_v13  ;;  %v5314_v13 = vld [vmem:[#allocation16 + $0x2f0] ss:$8 sps:$4 sm:$0xff]  }
 0x641   :  { %4371 = vmatpush1.bf16.msra.mxu0 %v5239_v33  ;;  %v5319_v33 = vld [vmem:[#allocation16 + $0x304] ss:$8 sps:$4 sm:$0xff]  }
 0x642   :  { %4372 = vmatprep.subr.bf16.mxu0 %v5244_v36  ;;  %v3525_v36 = vsel %vm3509_vm14, %v6194_v47, %v3517_v9  ;;  %v5326_v47 = vld [vmem:[#allocation16 + $0x330] ss:$8 sps:$4 sm:$0xff]  }
 0x645   :  { %4373 = vmatpush1.bf16.msra.mxu0 %v5242_v21  ;;  %v3528_v21 = vsel %vm3512_vm15, %v6196_v60, %v3520_v11  ;;  %v5331_v60 = vld [vmem:[#allocation16 + $0x344] ss:$8 sps:$4 sm:$0xff]  }
 0x646   :  { %4374 = vmatprep.subr.bf16.mxu0 %v5247_v23  ;;  %v5317_v23 = vld [vmem:[#allocation16 + $0x300] ss:$8 sps:$4 sm:$0xff]  }
 0x649   :  { %4375 = vmatpush1.bf16.msra.mxu0 %v5245_v45  ;;  %v3533_v45 = vpack.c.bf16 %v3525_v36, %v3525_v36 }
 0x64a   :  { %4376 = vmatprep.subr.bf16.mxu0 %v5250_v50  ;;  %v5322_v50 = vld [vmem:[#allocation16 + $0x314] ss:$8 sps:$4 sm:$0xff]  }
 0x64d   :  { %4377 = vmatpush1.bf16.msra.mxu0 %v5248_v26  ;;  %v3536_v26 = vpack.c.bf16 %v3528_v21, %v3528_v21 }
 0x64e   :  { %4378 = vmatprep.subr.bf16.mxu0 %v5253_v10  ;;  %v5320_v10 = vld [vmem:[#allocation16 + $0x310] ss:$8 sps:$4 sm:$0xff]  }
 0x651   :  { %4379 = vmatpush1.bf16.msra.mxu0 %v5251_v24  ;;  %v5325_v24 = vld [vmem:[#allocation16 + $0x324] ss:$8 sps:$4 sm:$0xff]  }
 0x652   :  { %4380 = vmatprep.subr.bf16.mxu0 %v5256_v18  ;;  %v5323_v18 = vld [vmem:[#allocation16 + $0x320] ss:$8 sps:$4 sm:$0xff]  }
 0x655   :  { %4381 = vmatpush1.bf16.msra.mxu0 %v5254_v3  ;;  %v5328_v3 = vld [vmem:[#allocation16 + $0x334] ss:$8 sps:$4 sm:$0xff]  }
 0x656   :  { %4382 = vmatprep.subr.bf16.mxu0 %v5259_v15  ;;  %v5329_v15 = vld [vmem:[#allocation16 + $0x340] ss:$8 sps:$4 sm:$0xff]  }
 0x659   :  { %4383 = vmatpush1.bf16.msra.mxu0 %v5257_v17  ;;  %v5334_v17 = vld [vmem:[#allocation16 + $0x354] ss:$8 sps:$4 sm:$0xff]  }
 0x65a   :  { %4384 = vmatprep.subr.bf16.mxu0 %v5262_v42  ;;  %v5332_v42 = vld [vmem:[#allocation16 + $0x350] ss:$8 sps:$4 sm:$0xff]  }
 0x65d   :  { %4385 = vmatpush1.bf16.msra.mxu0 %v5260_v12  ;;  %v5337_v12 = vld [vmem:[#allocation16 + $0x364] ss:$8 sps:$4 sm:$0xff]  }
 0x65e   :  { %4386 = vmatprep.subr.bf16.mxu0 %v5265_v27  ;;  %v5335_v27 = vld [vmem:[#allocation16 + $0x360] ss:$8 sps:$4 sm:$0xff]  }
 0x661   :  { %4387 = vmatpush1.bf16.msra.mxu0 %v5263_v5  ;;  %v5340_v5 = vld [vmem:[#allocation16 + $0x374] ss:$8 sps:$4 sm:$0xff]  }
 0x662   :  { %4388 = vmatprep.subr.bf16.mxu0 %v5268_v25  ;;  %v5338_v25 = vld [vmem:[#allocation16 + $0x370] ss:$8 sps:$4 sm:$0xff]  }
 0x665   :  { %4389 = vmatpush1.bf16.msra.mxu0 %v5266_v49  ;;  %v5346_v49 = vld [vmem:[#allocation16 + $0x394] ss:$8 sps:$4 sm:$0xff]  }
 0x666   :  { %4399 = vmatprep.subr.bf16.mxu0 %v5271_v44  ;;  %v5344_v44 = vld [vmem:[#allocation16 + $0x390] ss:$8 sps:$4 sm:$0xff]  }
 0x668   :  { %4391 = vmatmul.mubr.bf16.vlgmr.msra.gmra.mrb[12].mxu0 %v3531_v32  ;;  %v5350_v32 = vld [vmem:[#allocation16 + $0x3b0] ss:$8 sps:$4 sm:$0xff]  }
 0x669   :  { %4400 = vmatpush1.bf16.msra.mxu0 %v5269_v35  ;;  %4431 = vmatprep.mubr.bf16.mxu0 %v3534_v37  ;;  %v5352_v35 = vld [vmem:[#allocation16 + $0x3b4] ss:$8 sps:$4 sm:$0xff]   ;;  %v5353_v37 = vld [vmem:[#allocation16 + $0x3c0] ss:$8 sps:$4 sm:$0xff]  }
 0x66a   :  { %4401 = vmatprep.subr.bf16.mxu0 %v5274_v34  ;;  %v5355_v34 = vld [vmem:[#allocation16 + $0x3c4] ss:$8 sps:$4 sm:$0xff]  }
 0x66d   :  { %4402 = vmatpush1.bf16.msra.mxu0 %v5272_v55  ;;  %v5358_v55 = vld [vmem:[#allocation16 + $0x3d4] ss:$8 sps:$4 sm:$0xff]  }
 0x66e   :  { %4403 = vmatprep.subr.bf16.mxu0 %v5277_v38  ;;  %v5356_v38 = vld [vmem:[#allocation16 + $0x3d0] ss:$8 sps:$4 sm:$0xff]  }
 0x671   :  { %4404 = vmatpush1.bf16.msra.mxu0 %v5275_v39  ;;  %v5361_v39 = vld [vmem:[#allocation16 + $0x3e4] ss:$8 sps:$4 sm:$0xff]  }
 0x672   :  { %4405 = vmatprep.subr.bf16.mxu0 %v5280_v40  ;;  %v5359_v40 = vld [vmem:[#allocation16 + $0x3e0] ss:$8 sps:$4 sm:$0xff]  }
 0x675   :  { %4406 = vmatpush1.bf16.msra.mxu0 %v5278_v41  ;;  %v5364_v41 = vld [vmem:[#allocation16 + $0x3f4] ss:$8 sps:$4 sm:$0xff]  }
 0x676   :  { %4407 = vmatprep.subr.bf16.mxu0 %v5283_v43  ;;  %v3519_v43 = vmul.f32 0.2, %v6198_v59 }
 0x679   :  { %4408 = vmatpush1.bf16.msra.mxu0 %v5281_v0  ;;  %v5362_v0 = vld [vmem:[#allocation16 + $0x3f0] ss:$8 sps:$4 sm:$0xff]  }
 0x67a   :  { %4409 = vmatprep.subr.bf16.mxu0 %v5286_v46  ;;  %v3527_v46 = vsel %vm3511_vm0, %v6198_v59, %v3519_v43 }
 0x67d   :  { %4410 = vmatpush1.bf16.msra.mxu0 %v5284_v2  ;;  %v3535_v2 = vpack.c.bf16 %v3527_v46, %v3527_v46 }
 0x67e   :  { %4411 = vmatprep.subr.bf16.mxu0 %v5289_v48  ;;  %v3665_v48 = vld [vmem:[%s6259_s28] sm:$0x3] }
 0x681   :  { %4412 = vmatpush1.bf16.msra.mxu0 %v5287_v30  ;;  %v3670_v30 = vrot.slane %v3665_v48, %v5875_v4 }
 0x682   :  { %4413 = vmatprep.subr.bf16.mxu0 %v5292_v29  ;;  %v3674_v29 = vrot.slane %v3665_v48, %v5878_v6 }
 0x685   :  { %4414 = vmatpush1.bf16.msra.mxu0 %v5290_v61 }
 0x686   :  { %4415 = vmatprep.subr.bf16.mxu0 %v5295_v53 }
 0x689   :  { %4416 = vmatpush1.bf16.msra.mxu0 %v5293_v51 }
 0x68a   :  { %4417 = vmatprep.subr.bf16.mxu0 %v5298_v54 }
 0x68d   :  { %4418 = vmatpush1.bf16.msra.mxu0 %v5296_v52 }
 0x68e   :  { %4419 = vmatprep.subr.bf16.mxu0 %v5301_v56 }
 0x691   :  { %4420 = vmatpush1.bf16.msra.mxu0 %v5299_v57 }
 0x692   :  { %4421 = vmatprep.subr.bf16.mxu0 %v5304_v62 }
 0x695   :  { %4422 = vmatpush1.bf16.msra.mxu0 %v5302_v63 }
 0x696   :  { %4423 = vmatprep.subr.bf16.mxu0 %v5307_v1 }
 0x699   :  { %4424 = vmatpush1.bf16.msra.mxu0 %v5305_v16 }
 0x69a   :  { %4425 = vmatprep.subr.bf16.mxu0 %v5310_v19 }
 0x69d   :  { %4426 = vmatpush1.bf16.msra.mxu0 %v5308_v58 }
 0x69e   :  { %4427 = vmatprep.subr.bf16.mxu0 %v5313_v8 }
 0x6a1   :  { %4428 = vmatpush1.bf16.msra.mxu0 %v5311_v14 }
 0x6a2   :  { %4429 = vmatprep.subr.bf16.mxu0 %v5316_v20 }
 0x6a5   :  { %4430 = vmatpush1.bf16.msra.mxu0 %v5314_v13 }
 0x6a6   :  { %4440 = vmatprep.subr.bf16.mxu0 %v5319_v33 }
 0x6a8   :  { %4432 = vmatmul.mubr.bf16.vlgmr.msra.gmra.mrb[12].mxu0 %v3533_v45 }
 0x6a9   :  { %4441 = vmatpush1.bf16.msra.mxu0 %v5317_v23  ;;  %4472 = vmatprep.mubr.bf16.mxu0 %v3536_v26 }
 0x6aa   :  { %4442 = vmatprep.subr.bf16.mxu0 %v5322_v50 }
 0x6ad   :  { %4443 = vmatpush1.bf16.msra.mxu0 %v5320_v10 }
 0x6ae   :  { %4444 = vmatprep.subr.bf16.mxu0 %v5325_v24 }
 0x6b1   :  { %4445 = vmatpush1.bf16.msra.mxu0 %v5323_v18 }
 0x6b2   :  { %4446 = vmatprep.subr.bf16.mxu0 %v5328_v3 }
 0x6b5   :  { %4447 = vmatpush1.bf16.msra.mxu0 %v5326_v47 }
 0x6b6   :  { %4448 = vmatprep.subr.bf16.mxu0 %v5331_v60 }
 0x6b9   :  { %4449 = vmatpush1.bf16.msra.mxu0 %v5329_v15 }
 0x6ba   :  { %4450 = vmatprep.subr.bf16.mxu0 %v5334_v17 }
 0x6bd   :  { %4451 = vmatpush1.bf16.msra.mxu0 %v5332_v42 }
 0x6be   :  { %4452 = vmatprep.subr.bf16.mxu0 %v5337_v12 }
 0x6c1   :  { %4453 = vmatpush1.bf16.msra.mxu0 %v5335_v27 }
 0x6c2   :  { %4454 = vmatprep.subr.bf16.mxu0 %v5340_v5 }
 0x6c5   :  { %4455 = vmatpush1.bf16.msra.mxu0 %v5338_v25 }
 0x6c6   :  { %4456 = vmatprep.subr.bf16.mxu0 %v5343_v28 }
 0x6c9   :  { %4457 = vmatpush1.bf16.msra.mxu0 %v5341_v22 }
 0x6ca   :  { %4458 = vmatprep.subr.bf16.mxu0 %v5346_v49 }
 0x6cd   :  { %4459 = vmatpush1.bf16.msra.mxu0 %v5344_v44 }
 0x6ce   :  { %4460 = vmatprep.subr.bf16.mxu0 %v5349_v7 }
 0x6d1   :  { %4461 = vmatpush1.bf16.msra.mxu0 %v5347_v31 }
 0x6d2   :  { %4462 = vmatprep.subr.bf16.mxu0 %v5352_v35 }
 0x6d5   :  { %4463 = vmatpush1.bf16.msra.mxu0 %v5350_v32 }
 0x6d6   :  { %4464 = vmatprep.subr.bf16.mxu0 %v5355_v34 }
 0x6d9   :  { %4465 = vmatpush1.bf16.msra.mxu0 %v5353_v37 }
 0x6da   :  { %4466 = vmatprep.subr.bf16.mxu0 %v5358_v55 }
 0x6dd   :  { %4467 = vmatpush1.bf16.msra.mxu0 %v5356_v38 }
 0x6de   :  { %4468 = vmatprep.subr.bf16.mxu0 %v5361_v39 }
 0x6e1   :  { %4469 = vmatpush1.bf16.msra.mxu0 %v5359_v40 }
 0x6e2   :  { %4470 = vmatprep.subr.bf16.mxu0 %v5364_v41 }
 0x6e5   :  { %4471 = vmatpush1.bf16.msra.mxu0 %v5362_v0 }
 0x6e8   :  { %4473 = vmatmul.mubr.bf16.vlgmr.msra.gmra.mrb[12].mxu0 %v3535_v2 }
 0x7bb   :  { %v4474_v61 = vpop.f32.mrb[12].mxu0 }
 0x7bc   :  { %v5001_v53 = vadd.f32 %v4474_v61, %v3670_v30  ;;  %v4476_v51 = vpop.f32.mrb[13].mxu0 }
 0x7bd   :  { %v5002_v54 = vadd.f32 %v4476_v51, %v3674_v29  ;;  %v4478_v52 = vpop.f32.mrb[14].mxu0 }
 0x7be   :  { %5393 = vtanh.f32 %v5001_v53  ;;  %v4479_v56 = vpop.f32.mrb[15].mxu0 }
 0x7bf   :  { %5395 = vtanh.f32 %v5002_v54 }
 0x7c8   :  { %v5394_v59 = vpop.eup %5393 }
 0x7c9   :  { %v5396_v57 = vpop.eup %5395  ;;  %4483 = vst [vmem:[#allocation17] sm:$0xff] %v5394_v59 }
 0x7ca   :  { %4484 = vst [vmem:[#allocation17 + $0x8] sm:$0xff] %v5396_v57 }
 0x7cb   :  { %5606 = shalt.err (!%p5603_p6)
}
 0x7cc   :  { %s6260_s16 = sld [smem:[#allocation27_spill]] }
 0x7d2   :  { %s5607_s3 = scalar_lea.hbm %s6260_s16, 256 }
 0x7d3   :  { %p5608_p7 = scmp.ne.s32.totalorder %s6260_s16, %s5607_s3  ;;  %p5611_p8 = scmp.lt.u32.totalorder %s5607_s3, %s6260_s16 }
 0x7d5   :  { %p5613_p9 = pnand %p5611_p8, %p5608_p7 }
 0x7d7   :  { %5616 = shalt.err (!%p5613_p9)
}
 0x7d8   :  { %4494 = dma.vmem_to_hbm [thread:$0]  %s4492_s22, 256, %s6260_s16, [#allocation4]  }
 0x7d9   :  { %5627 = dma.done.wait [#allocation4], 256  }
 0x7da   :  { %5628 = vsyncadd [#allocation4], 4294967040 }
 0x7db   :  { %4498 = vsyncpa [#allocation3], 1 }
 0x7dc   :  { %4499 = vsyncpa [#allocation6], 1 }
 0x7dd   :  { %4500 = vsyncpa [#allocation9], 1 }
 0x7de   :  { %4501 = vsyncpa [#allocation12], 1 }
 0x7df   :  { %4502 = vsyncpa [#allocation15], 1 }
 0x7e0   :  { %4503 = vsyncpa [#allocation4], 1 }

</bundles_post_ra>
